<compile_context>
chip_gen: v7x
topology: tpu7x:2x2x1
jax: 0.10.0
libtpu: 0.0.40
codegen_flags: <defaults>
</compile_context>

<pallas_src>
import functools

import jax
import jax.numpy as jnp
import numpy as np
from jax.experimental import pallas as pl
from jax.experimental.pallas import tpu as pltpu


# ----------------------------------------------------------------------------
# Small math helpers (pure jnp, shared by the Pallas kernel and the reference).
# ----------------------------------------------------------------------------
def _gelu_tanh(x):
    c = 0.7978845608028654  # sqrt(2/pi)
    return 0.5 * x * (1.0 + jnp.tanh(c * (x + 0.044715 * x * x * x)))


def _layernorm(x, gamma, beta, eps=1e-5):
    mu = jnp.mean(x, axis=-1, keepdims=True)
    var = jnp.mean((x - mu) ** 2, axis=-1, keepdims=True)
    return (x - mu) * jax.lax.rsqrt(var + eps) * gamma + beta


def _round_up(x, m):
    return ((x + m - 1) // m) * m


# ----------------------------------------------------------------------------
# Constant 0/1 "mixer" matrices: the tiny per-head score / context bmm's become
# a few MXU matmuls on [rows, nh*H]-wide lane-expanded arrays (no per-head XLU
# lane reductions, no lane concats).
#
#   score layout   cs = i*nh + j        (i = query head, j = key head)
#   context layout cc = i*H + j*hd + d
#
#   S     = ((q @ EQ) * (k @ EK)) @ RED              (scale folded into EQ)
#   E     = exp(S - rowmax(S))
#   DEN   = E @ DEN_MIX   (block-diag ones -> per-query-head sums, broadcast)
#   P     = E * reciprocal(DEN)
#   p_exp = P @ PEXP
#   ctx   = (p_exp * (v @ VEXP)) @ CRED              -> [rows, H]
# ----------------------------------------------------------------------------
def _attention_mixers(num_heads, head_dim, scale):
    H = num_heads * head_dim
    W = num_heads * H
    nh2 = num_heads * num_heads
    eq = np.zeros((H, W), np.float32)
    ek = np.zeros((H, W), np.float32)
    red = np.zeros((W, nh2), np.float32)
    den = np.zeros((nh2, nh2), np.float32)
    pexp = np.zeros((nh2, W), np.float32)
    vexp = np.zeros((H, W), np.float32)
    cred = np.zeros((W, H), np.float32)
    for i in range(num_heads):
        den[i * num_heads:(i + 1) * num_heads,
            i * num_heads:(i + 1) * num_heads] = 1.0
        for j in range(num_heads):
            for d in range(head_dim):
                cs = j * H + i * head_dim + d
                cc = i * H + j * head_dim + d
                eq[i * head_dim + d, cs] = scale  # fold attention scale here
                ek[j * head_dim + d, cs] = 1.0
                red[cs, i * num_heads + j] = 1.0
                pexp[i * num_heads + j, cc] = 1.0
                vexp[j * head_dim + d, cc] = 1.0
                cred[cc, i * head_dim + d] = 1.0
    return eq, ek, red, den, pexp, vexp, cred


# ----------------------------------------------------------------------------
# Pallas kernel: one batch tile, both attention directions fused.
# ----------------------------------------------------------------------------
def _cross_modal_kernel(
    t_ref, c_ref,
    wt_ref, bt_ref, wc_ref, bc_ref,
    wqkv_ref, bqkv_ref, wo_ref, bo_ref,
    g1_ref, be1_ref, g2_ref, be2_ref,
    w1_ref, b1_ref, w2_ref, b2_ref,
    eq_ref, ek_ref, red_ref, den_ref, pexp_ref, vexp_ref, cred_ref,
    out_ref,
    *, mm_dtype,
):
    tb = t_ref.shape[0]
    hidden = wqkv_ref.shape[0]

    def mm(x, w_ref):
        # Weights / mixers arrive pre-cast to mm_dtype (bf16); activations are
        # cast only at the MXU input, accumulation stays f32.
        return jnp.dot(x.astype(mm_dtype), w_ref[...],
                       preferred_element_type=jnp.float32)

    # ---- modality projections ------------------------------------------------
    t_hidden = mm(t_ref[...], wt_ref) + bt_ref[...]
    c_hidden = mm(c_ref[...], wc_ref) + bc_ref[...]

    # ---- both directions fused: rows [0,tb) = transcriptomics queries,
    #      rows [tb,2tb) = chemical queries (weights shared between directions).
    x = jnp.concatenate([t_hidden, c_hidden], axis=0)            # [2tb, H]

    # Fused QKV projection: one [2tb, H] @ [H, 3H] matmul.
    qkv = mm(x, wqkv_ref) + bqkv_ref[...]                        # [2tb, 3H]
    q = qkv[:, :hidden]
    # Cross attention: keys / values come from the *other* modality -> swap the
    # row halves while slicing K and V out of the fused projection.
    k = jnp.concatenate([qkv[tb:, hidden:2 * hidden],
                         qkv[:tb, hidden:2 * hidden]], axis=0)   # [2tb, H]
    v = jnp.concatenate([qkv[tb:, 2 * hidden:],
                         qkv[:tb, 2 * hidden:]], axis=0)         # [2tb, H]

    # ---- multi-head scores via lane expansion + MXU segment sums --------------
    q_exp = mm(q, eq_ref)                                        # [2tb, nh*H]
    k_exp = mm(k, ek_ref)
    scores = mm(q_exp * k_exp, red_ref)                          # [2tb, nh*nh]

    # Vectorized softmax over key heads: the global row max is a valid
    # per-row stabilizer (softmax is invariant to any per-row constant).
    m = jnp.max(scores, axis=-1, keepdims=True)
    e = jnp.exp(scores - m)
    denom = mm(e, den_ref)       # block-diag ones -> per-query-head sums
    p = e * pl.reciprocal(denom, approx=True)
    p_exp = mm(p, pexp_ref)                                      # [2tb, nh*H]

    v_exp = mm(v, vexp_ref)
    ctx = mm(p_exp * v_exp, cred_ref)                            # [2tb, H]

    # ---- output projection, residual + LN1, FFN, residual + LN2 ---------------
    attn_out = mm(ctx, wo_ref) + bo_ref[...]
    h = _layernorm(x + attn_out, g1_ref[...], be1_ref[...])
    ff = mm(_gelu_tanh(mm(h, w1_ref) + b1_ref[...]), w2_ref) + b2_ref[...]
    y = _layernorm(h + ff, g2_ref[...], be2_ref[...])            # [2tb, H]

    # Lane-dense output slab [tb, 2H] = t_out || c_out, written with two direct
    # stores (no extra lane-shifted copy in VMEM).
    out_ref[:, :hidden] = y[:tb, :]
    out_ref[:, hidden:] = y[tb:, :]


# ----------------------------------------------------------------------------
# Generation-aware tiling / VMEM budget.
# ----------------------------------------------------------------------------
def _pick_tile_and_vmem(batch, tile_b):
    vmem_cap = 128 * 1024 * 1024
    try:
        info = pltpu.get_tpu_info()
        cap = getattr(info, "vmem_capacity_bytes", None)
        if cap:
            vmem_cap = int(cap)
    except Exception:
        pass
    small_vmem = vmem_cap <= 64 * 1024 * 1024  # v7x-class (64 MiB per TC)
    if tile_b is None:
        tile_b = 128 if small_vmem else 256
    tb = max(8, min(_round_up(tile_b, 8), _round_up(batch, 8)))
    if small_vmem:
        # v7x has 2 TensorCores: keep >=2 grid steps so ("parallel",) can
        # actually split the batch grid across both cores.
        tb = min(tb, max(8, _round_up(pl.cdiv(_round_up(batch, 8), 2), 8)))
    vmem_limit = int(min(vmem_cap - 8 * 1024 * 1024, 112 * 1024 * 1024))
    return tb, vmem_limit


# ----------------------------------------------------------------------------
# Wrapper
# ----------------------------------------------------------------------------
def cross_modal_attention(transcriptomics, chemicals, params, num_heads, *,
                          tile_b=None, mm_dtype=jnp.bfloat16):
    hidden = params["wq"].shape[0]
    head_dim = hidden // num_heads
    scale = head_dim ** (-0.5)
    batch, t_dim = transcriptomics.shape
    c_dim = chemicals.shape[1]

    # ---- batch tiling (TILE_B multiple of 8; pad batch, slice after) ----------
    tb, vmem_limit = _pick_tile_and_vmem(batch, tile_b)
    b_pad = _round_up(batch, tb)
    if b_pad != batch:
        transcriptomics = jnp.pad(transcriptomics, ((0, b_pad - batch), (0, 0)))
        chemicals = jnp.pad(chemicals, ((0, b_pad - batch), (0, 0)))
    grid = (b_pad // tb,)

    # ---- fused / cast weights (bf16 at the MXU; biases & LN params stay f32) --
    def to_mm(w):
        return jnp.asarray(w, dtype=mm_dtype)

    wqkv = to_mm(jnp.concatenate([params["wq"], params["wk"], params["wv"]], axis=1))
    bqkv = jnp.concatenate([params["bq"], params["bk"], params["bv"]], axis=1)
    mixers = tuple(to_mm(m) for m in _attention_mixers(num_heads, head_dim, scale))

    const_inputs = [
        to_mm(params["wt"]), params["bt"], to_mm(params["wc"]), params["bc"],
        wqkv, bqkv, to_mm(params["wo"]), params["bo"],
        params["g1"], params["be1"], params["g2"], params["be2"],
        to_mm(params["w1"]), params["b1"], to_mm(params["w2"]), params["b2"],
        *mixers,
    ]

    out_specs = pl.BlockSpec((tb, 2 * hidden), lambda i: (i, 0))
    out_shape = jax.ShapeDtypeStruct((b_pad, 2 * hidden), jnp.float32)

    kernel = functools.partial(_cross_modal_kernel, mm_dtype=mm_dtype)

    # Rough cost hint for the XLA scheduler around the custom call.
    W = num_heads * hidden
    nh2 = num_heads * num_heads
    rows = 2 * b_pad
    flops = int(
        2 * b_pad * (t_dim + c_dim) * hidden                # modality projections
        + 2 * rows * hidden * 3 * hidden                    # fused QKV
        + 2 * rows * (3 * hidden * W + W * nh2 + nh2 * nh2  # mixer path
                      + nh2 * W + W * hidden)
        + 2 * rows * hidden * hidden                        # output projection
        + 4 * rows * hidden * 4 * hidden)                   # FFN
    transcendentals = int(rows * (nh2 + 4 * hidden))
    bytes_accessed = int(
        4 * (transcriptomics.size + chemicals.size + b_pad * 2 * hidden)
        + sum(int(a.size) * a.dtype.itemsize for a in const_inputs))
    cost = pl.CostEstimate(flops=flops, transcendentals=transcendentals,
                           bytes_accessed=bytes_accessed)

    def build(single_buffer_consts):
        if single_buffer_consts:
            # Constant index_map + never re-fetched -> single-buffer to halve
            # the resident VMEM footprint of the weights/mixers.
            const_specs = [pl.BlockSpec(a.shape, lambda i: (0, 0),
                                        pipeline_mode=pl.Buffered(1))
                           for a in const_inputs]
        else:
            const_specs = [pl.BlockSpec(a.shape, lambda i: (0, 0))
                           for a in const_inputs]
        in_specs = [pl.BlockSpec((tb, t_dim), lambda i: (i, 0)),
                    pl.BlockSpec((tb, c_dim), lambda i: (i, 0))] + const_specs
        return pl.pallas_call(
            kernel,
            grid=grid,
            in_specs=in_specs,
            out_specs=out_specs,
            out_shape=out_shape,
            compiler_params=pltpu.CompilerParams(
                # batch grid axis is independent -> shard across v7x's 2 TCs
                dimension_semantics=("parallel",),
                vmem_limit_bytes=vmem_limit),
            cost_estimate=cost,
        )

    try:
        slab = build(True)(transcriptomics, chemicals, *const_inputs)
    except Exception:
        # TODO(synk): pl.Buffered(1) single-buffering of invariant operands not
        # accepted by this JAX/Mosaic build; fall back to default pipelining.
        slab = build(False)(transcriptomics, chemicals, *const_inputs)

    t_out = slab[:batch, :hidden]
    c_out = slab[:batch, hidden:]
    return t_out, c_out


# ----------------------------------------------------------------------------
# Pure-JAX reference (PyTorch math, same bf16-at-MXU casting) for sanity check.
# ----------------------------------------------------------------------------
def reference_forward(transcriptomics, chemicals, params, num_heads,
                      mm_dtype=jnp.bfloat16):
    hidden = params["wq"].shape[0]
    head_dim = hidden // num_heads
    scale = head_dim ** (-0.5)

    def mm(x, w):
        return jnp.dot(x.astype(mm_dtype), w.astype(mm_dtype),
                       preferred_element_type=jnp.float32)

    def block(x_q, x_kv):
        b = x_q.shape[0]
        q = (mm(x_q, params["wq"]) + params["bq"]).reshape(b, num_heads, head_dim)
        k = (mm(x_kv, params["wk"]) + params["bk"]).reshape(b, num_heads, head_dim)
        v = (mm(x_kv, params["wv"]) + params["bv"]).reshape(b, num_heads, head_dim)
        s = jnp.einsum("bih,bjh->bij", q, k) * scale
        p = jax.nn.softmax(s, axis=-1)
        ctx = jnp.einsum("bij,bjh->bih", p, v).reshape(b, hidden)
        ctx = mm(ctx, params["wo"]) + params["bo"]
        h = _layernorm(x_q + ctx, params["g1"], params["be1"])
        ff = mm(_gelu_tanh(mm(h, params["w1"]) + params["b1"]), params["w2"]) + params["b2"]
        return _layernorm(h + ff, params["g2"], params["be2"])

    t_hidden = mm(transcriptomics, params["wt"]) + params["bt"]
    c_hidden = mm(chemicals, params["wc"]) + params["bc"]
    return block(t_hidden, c_hidden), block(c_hidden, t_hidden)


# ----------------------------------------------------------------------------
# Deterministic parameter init (PyTorch nn.Linear-style uniform bounds).
# ----------------------------------------------------------------------------
def init_params(key, t_dim, c_dim, hidden_dim):
    def lin(k, fan_in, fan_out):
        k1, k2 = jax.random.split(k)
        lim = 1.0 / np.sqrt(fan_in)
        w = jax.random.uniform(k1, (fan_in, fan_out), jnp.float32, -lim, lim)
        b = jax.random.uniform(k2, (1, fan_out), jnp.float32, -lim, lim)
        return w, b

    keys = jax.random.split(key, 8)
    params = {}
    params["wt"], params["bt"] = lin(keys[0], t_dim, hidden_dim)
    params["wc"], params["bc"] = lin(keys[1], c_dim, hidden_dim)
    params["wq"], params["bq"] = lin(keys[2], hidden_dim, hidden_dim)
    params["wk"], params["bk"] = lin(keys[3], hidden_dim, hidden_dim)
    params["wv"], params["bv"] = lin(keys[4], hidden_dim, hidden_dim)
    params["wo"], params["bo"] = lin(keys[5], hidden_dim, hidden_dim)
    params["g1"] = jnp.ones((1, hidden_dim), jnp.float32)
    params["be1"] = jnp.zeros((1, hidden_dim), jnp.float32)
    params["g2"] = jnp.ones((1, hidden_dim), jnp.float32)
    params["be2"] = jnp.zeros((1, hidden_dim), jnp.float32)
    params["w1"], params["b1"] = lin(keys[6], hidden_dim, 4 * hidden_dim)
    params["w2"], params["b2"] = lin(keys[7], 4 * hidden_dim, hidden_dim)
    return params


if __name__ == "__main__":
    BATCH = 12          # not a multiple of the tile -> exercises padding + a 2-step grid
    T_DIM = 24
    C_DIM = 16
    HIDDEN = 32
    NUM_HEADS = 4
    TILE_B = 8

    key = jax.random.PRNGKey(0)
    k_t, k_c, k_p = jax.random.split(key, 3)
    transcriptomics = jax.random.normal(k_t, (BATCH, T_DIM), jnp.float32)
    chemicals = jax.random.normal(k_c, (BATCH, C_DIM), jnp.float32)
    params = init_params(k_p, T_DIM, C_DIM, HIDDEN)

    t_out, c_out = cross_modal_attention(
        transcriptomics, chemicals, params, NUM_HEADS, tile_b=TILE_B)
    jax.block_until_ready((t_out, c_out))

    t_ref, c_ref = reference_forward(transcriptomics, chemicals, params, NUM_HEADS)
    # Tolerance covers bf16-at-MXU matmuls (now including the mixer path and the
    # softmax-denominator segment sum) plus the approx softmax reciprocal vs the
    # exact-division reference.
    np.testing.assert_allclose(np.asarray(t_out), np.asarray(t_ref), rtol=3e-2, atol=3e-2)
    np.testing.assert_allclose(np.asarray(c_out), np.asarray(c_ref), rtol=3e-2, atol=3e-2)

    print("KERNEL_OK")
</pallas_src>

<mosaic_0001>
module attributes {stable_mosaic.version = 11 : i64} {
  func.func @_cross_modal_kernel(%arg0: i32, %arg1: memref<8x24xf32, #tpu.memory_space<vmem>>, %arg2: memref<8x16xf32, #tpu.memory_space<vmem>>, %arg3: memref<24x32xbf16, #tpu.memory_space<vmem>>, %arg4: memref<1x32xf32, #tpu.memory_space<vmem>>, %arg5: memref<16x32xbf16, #tpu.memory_space<vmem>>, %arg6: memref<1x32xf32, #tpu.memory_space<vmem>>, %arg7: memref<32x96xbf16, #tpu.memory_space<vmem>>, %arg8: memref<1x96xf32, #tpu.memory_space<vmem>>, %arg9: memref<32x32xbf16, #tpu.memory_space<vmem>>, %arg10: memref<1x32xf32, #tpu.memory_space<vmem>>, %arg11: memref<1x32xf32, #tpu.memory_space<vmem>>, %arg12: memref<1x32xf32, #tpu.memory_space<vmem>>, %arg13: memref<1x32xf32, #tpu.memory_space<vmem>>, %arg14: memref<1x32xf32, #tpu.memory_space<vmem>>, %arg15: memref<32x128xbf16, #tpu.memory_space<vmem>>, %arg16: memref<1x128xf32, #tpu.memory_space<vmem>>, %arg17: memref<128x32xbf16, #tpu.memory_space<vmem>>, %arg18: memref<1x32xf32, #tpu.memory_space<vmem>>, %arg19: memref<32x128xbf16, #tpu.memory_space<vmem>>, %arg20: memref<32x128xbf16, #tpu.memory_space<vmem>>, %arg21: memref<128x16xbf16, #tpu.memory_space<vmem>>, %arg22: memref<16x16xbf16, #tpu.memory_space<vmem>>, %arg23: memref<16x128xbf16, #tpu.memory_space<vmem>>, %arg24: memref<32x128xbf16, #tpu.memory_space<vmem>>, %arg25: memref<128x32xbf16, #tpu.memory_space<vmem>>, %arg26: memref<8x64xf32, #tpu.memory_space<vmem>>) attributes {dimension_semantics = [#tpu.dimension_semantics<parallel>], iteration_bounds = array<i64: 2>, scalar_prefetch = 0 : i64, scratch_operands = 0 : i64, tpu.core_type = #tpu.core_type<tc>, window_params = [{transform_indices = @transform_0, window_bounds = array<i64: 8, 24>}, {transform_indices = @transform_1, window_bounds = array<i64: 8, 16>}, {pipeline_mode = #tpu.pipeline_mode<synchronous>, transform_indices = @transform_2, window_bounds = array<i64: 24, 32>}, {pipeline_mode = #tpu.pipeline_mode<synchronous>, transform_indices = @transform_3, window_bounds = array<i64: 1, 32>}, {pipeline_mode = #tpu.pipeline_mode<synchronous>, transform_indices = @transform_4, window_bounds = array<i64: 16, 32>}, {pipeline_mode = #tpu.pipeline_mode<synchronous>, transform_indices = @transform_5, window_bounds = array<i64: 1, 32>}, {pipeline_mode = #tpu.pipeline_mode<synchronous>, transform_indices = @transform_6, window_bounds = array<i64: 32, 96>}, {pipeline_mode = #tpu.pipeline_mode<synchronous>, transform_indices = @transform_7, window_bounds = array<i64: 1, 96>}, {pipeline_mode = #tpu.pipeline_mode<synchronous>, transform_indices = @transform_8, window_bounds = array<i64: 32, 32>}, {pipeline_mode = #tpu.pipeline_mode<synchronous>, transform_indices = @transform_9, window_bounds = array<i64: 1, 32>}, {pipeline_mode = #tpu.pipeline_mode<synchronous>, transform_indices = @transform_10, window_bounds = array<i64: 1, 32>}, {pipeline_mode = #tpu.pipeline_mode<synchronous>, transform_indices = @transform_11, window_bounds = array<i64: 1, 32>}, {pipeline_mode = #tpu.pipeline_mode<synchronous>, transform_indices = @transform_12, window_bounds = array<i64: 1, 32>}, {pipeline_mode = #tpu.pipeline_mode<synchronous>, transform_indices = @transform_13, window_bounds = array<i64: 1, 32>}, {pipeline_mode = #tpu.pipeline_mode<synchronous>, transform_indices = @transform_14, window_bounds = array<i64: 32, 128>}, {pipeline_mode = #tpu.pipeline_mode<synchronous>, transform_indices = @transform_15, window_bounds = array<i64: 1, 128>}, {pipeline_mode = #tpu.pipeline_mode<synchronous>, transform_indices = @transform_16, window_bounds = array<i64: 128, 32>}, {pipeline_mode = #tpu.pipeline_mode<synchronous>, transform_indices = @transform_17, window_bounds = array<i64: 1, 32>}, {pipeline_mode = #tpu.pipeline_mode<synchronous>, transform_indices = @transform_18, window_bounds = array<i64: 32, 128>}, {pipeline_mode = #tpu.pipeline_mode<synchronous>, transform_indices = @transform_19, window_bounds = array<i64: 32, 128>}, {pipeline_mode = #tpu.pipeline_mode<synchronous>, transform_indices = @transform_20, window_bounds = array<i64: 128, 16>}, {pipeline_mode = #tpu.pipeline_mode<synchronous>, transform_indices = @transform_21, window_bounds = array<i64: 16, 16>}, {pipeline_mode = #tpu.pipeline_mode<synchronous>, transform_indices = @transform_22, window_bounds = array<i64: 16, 128>}, {pipeline_mode = #tpu.pipeline_mode<synchronous>, transform_indices = @transform_23, window_bounds = array<i64: 32, 128>}, {pipeline_mode = #tpu.pipeline_mode<synchronous>, transform_indices = @transform_24, window_bounds = array<i64: 128, 32>}, {transform_indices = @transform_25, window_bounds = array<i64: 8, 64>}]} {
    %c0 = arith.constant 0 : index
    %c0_0 = arith.constant 0 : index
    %0 = vector.load %arg1[%c0, %c0_0] : memref<8x24xf32, #tpu.memory_space<vmem>>, vector<8x24xf32>
    %1 = arith.truncf %0 : vector<8x24xf32> to vector<8x24xbf16>
    %c0_1 = arith.constant 0 : index
    %c0_2 = arith.constant 0 : index
    %2 = vector.load %arg3[%c0_1, %c0_2] : memref<24x32xbf16, #tpu.memory_space<vmem>>, vector<24x32xbf16>
    %cst = arith.constant dense<0.000000e+00> : vector<8x32xf32>
    %3 = tpu.matmul %1, %2, %cst {dimension_numbers = #tpu.dot_dimension_numbers<[1], [0], [0], [1], [0, 0, 1, 1], [], []>} : vector<8x24xbf16>, vector<24x32xbf16>, vector<8x32xf32> -> vector<8x32xf32>
    %c0_3 = arith.constant 0 : index
    %c0_4 = arith.constant 0 : index
    %4 = vector.load %arg4[%c0_3, %c0_4] : memref<1x32xf32, #tpu.memory_space<vmem>>, vector<1x32xf32>
    %5 = vector.broadcast %4 : vector<1x32xf32> to vector<8x32xf32>
    %6 = arith.addf %3, %5 : vector<8x32xf32>
    %c0_5 = arith.constant 0 : index
    %c0_6 = arith.constant 0 : index
    %7 = vector.load %arg2[%c0_5, %c0_6] : memref<8x16xf32, #tpu.memory_space<vmem>>, vector<8x16xf32>
    %8 = arith.truncf %7 : vector<8x16xf32> to vector<8x16xbf16>
    %c0_7 = arith.constant 0 : index
    %c0_8 = arith.constant 0 : index
    %9 = vector.load %arg5[%c0_7, %c0_8] : memref<16x32xbf16, #tpu.memory_space<vmem>>, vector<16x32xbf16>
    %cst_9 = arith.constant dense<0.000000e+00> : vector<8x32xf32>
    %10 = tpu.matmul %8, %9, %cst_9 {dimension_numbers = #tpu.dot_dimension_numbers<[1], [0], [0], [1], [0, 0, 1, 1], [], []>} : vector<8x16xbf16>, vector<16x32xbf16>, vector<8x32xf32> -> vector<8x32xf32>
    %c0_10 = arith.constant 0 : index
    %c0_11 = arith.constant 0 : index
    %11 = vector.load %arg6[%c0_10, %c0_11] : memref<1x32xf32, #tpu.memory_space<vmem>>, vector<1x32xf32>
    %12 = vector.broadcast %11 : vector<1x32xf32> to vector<8x32xf32>
    %13 = arith.addf %10, %12 : vector<8x32xf32>
    %14 = tpu.concatenate %6, %13 in 0 : vector<8x32xf32>, vector<8x32xf32> -> vector<16x32xf32>
    %15 = arith.truncf %14 : vector<16x32xf32> to vector<16x32xbf16>
    %c0_12 = arith.constant 0 : index
    %c0_13 = arith.constant 0 : index
    %16 = vector.load %arg7[%c0_12, %c0_13] : memref<32x96xbf16, #tpu.memory_space<vmem>>, vector<32x96xbf16>
    %cst_14 = arith.constant dense<0.000000e+00> : vector<16x96xf32>
    %17 = tpu.matmul %15, %16, %cst_14 {dimension_numbers = #tpu.dot_dimension_numbers<[1], [0], [0], [1], [0, 0, 1, 1], [], []>} : vector<16x32xbf16>, vector<32x96xbf16>, vector<16x96xf32> -> vector<16x96xf32>
    %c0_15 = arith.constant 0 : index
    %c0_16 = arith.constant 0 : index
    %18 = vector.load %arg8[%c0_15, %c0_16] : memref<1x96xf32, #tpu.memory_space<vmem>>, vector<1x96xf32>
    %19 = vector.broadcast %18 : vector<1x96xf32> to vector<16x96xf32>
    %20 = arith.addf %17, %19 : vector<16x96xf32>
    %21 = vector.extract_strided_slice %20 {offsets = [0, 0], sizes = [16, 32], strides = [1, 1]} : vector<16x96xf32> to vector<16x32xf32>
    %22 = vector.extract_strided_slice %20 {offsets = [8, 32], sizes = [8, 32], strides = [1, 1]} : vector<16x96xf32> to vector<8x32xf32>
    %23 = vector.extract_strided_slice %20 {offsets = [0, 32], sizes = [8, 32], strides = [1, 1]} : vector<16x96xf32> to vector<8x32xf32>
    %24 = tpu.concatenate %22, %23 in 0 : vector<8x32xf32>, vector<8x32xf32> -> vector<16x32xf32>
    %25 = vector.extract_strided_slice %20 {offsets = [8, 64], sizes = [8, 32], strides = [1, 1]} : vector<16x96xf32> to vector<8x32xf32>
    %26 = vector.extract_strided_slice %20 {offsets = [0, 64], sizes = [8, 32], strides = [1, 1]} : vector<16x96xf32> to vector<8x32xf32>
    %27 = tpu.concatenate %25, %26 in 0 : vector<8x32xf32>, vector<8x32xf32> -> vector<16x32xf32>
    %28 = arith.truncf %21 : vector<16x32xf32> to vector<16x32xbf16>
    %c0_17 = arith.constant 0 : index
    %c0_18 = arith.constant 0 : index
    %29 = vector.load %arg19[%c0_17, %c0_18] : memref<32x128xbf16, #tpu.memory_space<vmem>>, vector<32x128xbf16>
    %cst_19 = arith.constant dense<0.000000e+00> : vector<16x128xf32>
    %30 = tpu.matmul %28, %29, %cst_19 {dimension_numbers = #tpu.dot_dimension_numbers<[1], [0], [0], [1], [0, 0, 1, 1], [], []>} : vector<16x32xbf16>, vector<32x128xbf16>, vector<16x128xf32> -> vector<16x128xf32>
    %31 = arith.truncf %24 : vector<16x32xf32> to vector<16x32xbf16>
    %c0_20 = arith.constant 0 : index
    %c0_21 = arith.constant 0 : index
    %32 = vector.load %arg20[%c0_20, %c0_21] : memref<32x128xbf16, #tpu.memory_space<vmem>>, vector<32x128xbf16>
    %cst_22 = arith.constant dense<0.000000e+00> : vector<16x128xf32>
    %33 = tpu.matmul %31, %32, %cst_22 {dimension_numbers = #tpu.dot_dimension_numbers<[1], [0], [0], [1], [0, 0, 1, 1], [], []>} : vector<16x32xbf16>, vector<32x128xbf16>, vector<16x128xf32> -> vector<16x128xf32>
    %34 = arith.mulf %30, %33 : vector<16x128xf32>
    %35 = arith.truncf %34 : vector<16x128xf32> to vector<16x128xbf16>
    %c0_23 = arith.constant 0 : index
    %c0_24 = arith.constant 0 : index
    %36 = vector.load %arg21[%c0_23, %c0_24] : memref<128x16xbf16, #tpu.memory_space<vmem>>, vector<128x16xbf16>
    %cst_25 = arith.constant dense<0.000000e+00> : vector<16x16xf32>
    %37 = tpu.matmul %35, %36, %cst_25 {dimension_numbers = #tpu.dot_dimension_numbers<[1], [0], [0], [1], [0, 0, 1, 1], [], []>} : vector<16x128xbf16>, vector<128x16xbf16>, vector<16x16xf32> -> vector<16x16xf32>
    %cst_26 = arith.constant dense<0xFF800000> : vector<16xf32>
    %38 = vector.multi_reduction <maximumf>, %37, %cst_26 [1] : vector<16x16xf32> to vector<16xf32>
    %39 = vector.shape_cast %38 : vector<16xf32> to vector<16x1xf32>
    %40 = vector.broadcast %39 : vector<16x1xf32> to vector<16x16xf32>
    %41 = arith.subf %37, %40 : vector<16x16xf32>
    %42 = math.exp %41 : vector<16x16xf32>
    %43 = arith.truncf %42 : vector<16x16xf32> to vector<16x16xbf16>
    %c0_27 = arith.constant 0 : index
    %c0_28 = arith.constant 0 : index
    %44 = vector.load %arg22[%c0_27, %c0_28] : memref<16x16xbf16, #tpu.memory_space<vmem>>, vector<16x16xbf16>
    %cst_29 = arith.constant dense<0.000000e+00> : vector<16x16xf32>
    %45 = tpu.matmul %43, %44, %cst_29 {dimension_numbers = #tpu.dot_dimension_numbers<[1], [0], [0], [1], [0, 0, 1, 1], [], []>} : vector<16x16xbf16>, vector<16x16xbf16>, vector<16x16xf32> -> vector<16x16xf32>
    %46 = tpu.reciprocal %45 {approx = true} : vector<16x16xf32> -> vector<16x16xf32>
    %47 = arith.mulf %42, %46 : vector<16x16xf32>
    %48 = arith.truncf %47 : vector<16x16xf32> to vector<16x16xbf16>
    %c0_30 = arith.constant 0 : index
    %c0_31 = arith.constant 0 : index
    %49 = vector.load %arg23[%c0_30, %c0_31] : memref<16x128xbf16, #tpu.memory_space<vmem>>, vector<16x128xbf16>
    %cst_32 = arith.constant dense<0.000000e+00> : vector<16x128xf32>
    %50 = tpu.matmul %48, %49, %cst_32 {dimension_numbers = #tpu.dot_dimension_numbers<[1], [0], [0], [1], [0, 0, 1, 1], [], []>} : vector<16x16xbf16>, vector<16x128xbf16>, vector<16x128xf32> -> vector<16x128xf32>
    %51 = arith.truncf %27 : vector<16x32xf32> to vector<16x32xbf16>
    %c0_33 = arith.constant 0 : index
    %c0_34 = arith.constant 0 : index
    %52 = vector.load %arg24[%c0_33, %c0_34] : memref<32x128xbf16, #tpu.memory_space<vmem>>, vector<32x128xbf16>
    %cst_35 = arith.constant dense<0.000000e+00> : vector<16x128xf32>
    %53 = tpu.matmul %51, %52, %cst_35 {dimension_numbers = #tpu.dot_dimension_numbers<[1], [0], [0], [1], [0, 0, 1, 1], [], []>} : vector<16x32xbf16>, vector<32x128xbf16>, vector<16x128xf32> -> vector<16x128xf32>
    %54 = arith.mulf %50, %53 : vector<16x128xf32>
    %55 = arith.truncf %54 : vector<16x128xf32> to vector<16x128xbf16>
    %c0_36 = arith.constant 0 : index
    %c0_37 = arith.constant 0 : index
    %56 = vector.load %arg25[%c0_36, %c0_37] : memref<128x32xbf16, #tpu.memory_space<vmem>>, vector<128x32xbf16>
    %cst_38 = arith.constant dense<0.000000e+00> : vector<16x32xf32>
    %57 = tpu.matmul %55, %56, %cst_38 {dimension_numbers = #tpu.dot_dimension_numbers<[1], [0], [0], [1], [0, 0, 1, 1], [], []>} : vector<16x128xbf16>, vector<128x32xbf16>, vector<16x32xf32> -> vector<16x32xf32>
    %58 = arith.truncf %57 : vector<16x32xf32> to vector<16x32xbf16>
    %c0_39 = arith.constant 0 : index
    %c0_40 = arith.constant 0 : index
    %59 = vector.load %arg9[%c0_39, %c0_40] : memref<32x32xbf16, #tpu.memory_space<vmem>>, vector<32x32xbf16>
    %cst_41 = arith.constant dense<0.000000e+00> : vector<16x32xf32>
    %60 = tpu.matmul %58, %59, %cst_41 {dimension_numbers = #tpu.dot_dimension_numbers<[1], [0], [0], [1], [0, 0, 1, 1], [], []>} : vector<16x32xbf16>, vector<32x32xbf16>, vector<16x32xf32> -> vector<16x32xf32>
    %c0_42 = arith.constant 0 : index
    %c0_43 = arith.constant 0 : index
    %61 = vector.load %arg10[%c0_42, %c0_43] : memref<1x32xf32, #tpu.memory_space<vmem>>, vector<1x32xf32>
    %62 = vector.broadcast %61 : vector<1x32xf32> to vector<16x32xf32>
    %63 = arith.addf %60, %62 : vector<16x32xf32>
    %64 = arith.addf %14, %63 : vector<16x32xf32>
    %c0_44 = arith.constant 0 : index
    %c0_45 = arith.constant 0 : index
    %65 = vector.load %arg11[%c0_44, %c0_45] : memref<1x32xf32, #tpu.memory_space<vmem>>, vector<1x32xf32>
    %c0_46 = arith.constant 0 : index
    %c0_47 = arith.constant 0 : index
    %66 = vector.load %arg12[%c0_46, %c0_47] : memref<1x32xf32, #tpu.memory_space<vmem>>, vector<1x32xf32>
    %cst_48 = arith.constant dense<0.000000e+00> : vector<16xf32>
    %67 = vector.multi_reduction <add>, %64, %cst_48 [1] : vector<16x32xf32> to vector<16xf32>
    %68 = vector.shape_cast %67 : vector<16xf32> to vector<16x1xf32>
    %cst_49 = arith.constant 3.200000e+01 : f32
    %69 = vector.broadcast %cst_49 : f32 to vector<16x1xf32>
    %70 = arith.divf %68, %69 : vector<16x1xf32>
    %71 = vector.broadcast %70 : vector<16x1xf32> to vector<16x32xf32>
    %72 = arith.subf %64, %71 : vector<16x32xf32>
    %73 = arith.mulf %72, %72 : vector<16x32xf32>
    %cst_50 = arith.constant dense<0.000000e+00> : vector<16xf32>
    %74 = vector.multi_reduction <add>, %73, %cst_50 [1] : vector<16x32xf32> to vector<16xf32>
    %75 = vector.shape_cast %74 : vector<16xf32> to vector<16x1xf32>
    %cst_51 = arith.constant 3.200000e+01 : f32
    %76 = vector.broadcast %cst_51 : f32 to vector<16x1xf32>
    %77 = arith.divf %75, %76 : vector<16x1xf32>
    %78 = vector.broadcast %70 : vector<16x1xf32> to vector<16x32xf32>
    %79 = arith.subf %64, %78 : vector<16x32xf32>
    %cst_52 = arith.constant 9.99999974E-6 : f32
    %80 = vector.broadcast %cst_52 : f32 to vector<16x1xf32>
    %81 = arith.addf %77, %80 : vector<16x1xf32>
    %82 = math.rsqrt %81 : vector<16x1xf32>
    %83 = vector.broadcast %82 : vector<16x1xf32> to vector<16x32xf32>
    %84 = arith.mulf %79, %83 : vector<16x32xf32>
    %85 = vector.broadcast %65 : vector<1x32xf32> to vector<16x32xf32>
    %86 = arith.mulf %84, %85 : vector<16x32xf32>
    %87 = vector.broadcast %66 : vector<1x32xf32> to vector<16x32xf32>
    %88 = arith.addf %86, %87 : vector<16x32xf32>
    %89 = arith.truncf %88 : vector<16x32xf32> to vector<16x32xbf16>
    %c0_53 = arith.constant 0 : index
    %c0_54 = arith.constant 0 : index
    %90 = vector.load %arg15[%c0_53, %c0_54] : memref<32x128xbf16, #tpu.memory_space<vmem>>, vector<32x128xbf16>
    %cst_55 = arith.constant dense<0.000000e+00> : vector<16x128xf32>
    %91 = tpu.matmul %89, %90, %cst_55 {dimension_numbers = #tpu.dot_dimension_numbers<[1], [0], [0], [1], [0, 0, 1, 1], [], []>} : vector<16x32xbf16>, vector<32x128xbf16>, vector<16x128xf32> -> vector<16x128xf32>
    %c0_56 = arith.constant 0 : index
    %c0_57 = arith.constant 0 : index
    %92 = vector.load %arg16[%c0_56, %c0_57] : memref<1x128xf32, #tpu.memory_space<vmem>>, vector<1x128xf32>
    %93 = vector.broadcast %92 : vector<1x128xf32> to vector<16x128xf32>
    %94 = arith.addf %91, %93 : vector<16x128xf32>
    %cst_58 = arith.constant 5.000000e-01 : f32
    %95 = vector.broadcast %cst_58 : f32 to vector<16x128xf32>
    %96 = arith.mulf %95, %94 : vector<16x128xf32>
    %cst_59 = arith.constant 4.471500e-02 : f32
    %97 = vector.broadcast %cst_59 : f32 to vector<16x128xf32>
    %98 = arith.mulf %97, %94 : vector<16x128xf32>
    %99 = arith.mulf %98, %94 : vector<16x128xf32>
    %100 = arith.mulf %99, %94 : vector<16x128xf32>
    %101 = arith.addf %94, %100 : vector<16x128xf32>
    %cst_60 = arith.constant 0.797884583 : f32
    %102 = vector.broadcast %cst_60 : f32 to vector<16x128xf32>
    %103 = arith.mulf %102, %101 : vector<16x128xf32>
    %104 = math.tanh %103 : vector<16x128xf32>
    %cst_61 = arith.constant 1.000000e+00 : f32
    %105 = vector.broadcast %cst_61 : f32 to vector<16x128xf32>
    %106 = arith.addf %105, %104 : vector<16x128xf32>
    %107 = arith.mulf %96, %106 : vector<16x128xf32>
    %108 = arith.truncf %107 : vector<16x128xf32> to vector<16x128xbf16>
    %c0_62 = arith.constant 0 : index
    %c0_63 = arith.constant 0 : index
    %109 = vector.load %arg17[%c0_62, %c0_63] : memref<128x32xbf16, #tpu.memory_space<vmem>>, vector<128x32xbf16>
    %cst_64 = arith.constant dense<0.000000e+00> : vector<16x32xf32>
    %110 = tpu.matmul %108, %109, %cst_64 {dimension_numbers = #tpu.dot_dimension_numbers<[1], [0], [0], [1], [0, 0, 1, 1], [], []>} : vector<16x128xbf16>, vector<128x32xbf16>, vector<16x32xf32> -> vector<16x32xf32>
    %c0_65 = arith.constant 0 : index
    %c0_66 = arith.constant 0 : index
    %111 = vector.load %arg18[%c0_65, %c0_66] : memref<1x32xf32, #tpu.memory_space<vmem>>, vector<1x32xf32>
    %112 = vector.broadcast %111 : vector<1x32xf32> to vector<16x32xf32>
    %113 = arith.addf %110, %112 : vector<16x32xf32>
    %114 = arith.addf %88, %113 : vector<16x32xf32>
    %c0_67 = arith.constant 0 : index
    %c0_68 = arith.constant 0 : index
    %115 = vector.load %arg13[%c0_67, %c0_68] : memref<1x32xf32, #tpu.memory_space<vmem>>, vector<1x32xf32>
    %c0_69 = arith.constant 0 : index
    %c0_70 = arith.constant 0 : index
    %116 = vector.load %arg14[%c0_69, %c0_70] : memref<1x32xf32, #tpu.memory_space<vmem>>, vector<1x32xf32>
    %cst_71 = arith.constant dense<0.000000e+00> : vector<16xf32>
    %117 = vector.multi_reduction <add>, %114, %cst_71 [1] : vector<16x32xf32> to vector<16xf32>
    %118 = vector.shape_cast %117 : vector<16xf32> to vector<16x1xf32>
    %cst_72 = arith.constant 3.200000e+01 : f32
    %119 = vector.broadcast %cst_72 : f32 to vector<16x1xf32>
    %120 = arith.divf %118, %119 : vector<16x1xf32>
    %121 = vector.broadcast %120 : vector<16x1xf32> to vector<16x32xf32>
    %122 = arith.subf %114, %121 : vector<16x32xf32>
    %123 = arith.mulf %122, %122 : vector<16x32xf32>
    %cst_73 = arith.constant dense<0.000000e+00> : vector<16xf32>
    %124 = vector.multi_reduction <add>, %123, %cst_73 [1] : vector<16x32xf32> to vector<16xf32>
    %125 = vector.shape_cast %124 : vector<16xf32> to vector<16x1xf32>
    %cst_74 = arith.constant 3.200000e+01 : f32
    %126 = vector.broadcast %cst_74 : f32 to vector<16x1xf32>
    %127 = arith.divf %125, %126 : vector<16x1xf32>
    %128 = vector.broadcast %120 : vector<16x1xf32> to vector<16x32xf32>
    %129 = arith.subf %114, %128 : vector<16x32xf32>
    %cst_75 = arith.constant 9.99999974E-6 : f32
    %130 = vector.broadcast %cst_75 : f32 to vector<16x1xf32>
    %131 = arith.addf %127, %130 : vector<16x1xf32>
    %132 = math.rsqrt %131 : vector<16x1xf32>
    %133 = vector.broadcast %132 : vector<16x1xf32> to vector<16x32xf32>
    %134 = arith.mulf %129, %133 : vector<16x32xf32>
    %135 = vector.broadcast %115 : vector<1x32xf32> to vector<16x32xf32>
    %136 = arith.mulf %134, %135 : vector<16x32xf32>
    %137 = vector.broadcast %116 : vector<1x32xf32> to vector<16x32xf32>
    %138 = arith.addf %136, %137 : vector<16x32xf32>
    %139 = vector.extract_strided_slice %138 {offsets = [0, 0], sizes = [8, 32], strides = [1, 1]} : vector<16x32xf32> to vector<8x32xf32>
    %c0_76 = arith.constant 0 : index
    %c0_77 = arith.constant 0 : index
    %140 = vector.load %arg26[%c0_76, %c0_77] : memref<8x64xf32, #tpu.memory_space<vmem>>, vector<8x32xf32>
    tpu.vector_store %arg26[%c0_76, %c0_77], %139 {strides = array<i32>} : memref<8x64xf32, #tpu.memory_space<vmem>>, vector<8x32xf32>,
    %141 = vector.extract_strided_slice %138 {offsets = [8, 0], sizes = [8, 32], strides = [1, 1]} : vector<16x32xf32> to vector<8x32xf32>
    %c0_78 = arith.constant 0 : index
    %c32 = arith.constant 32 : index
    %142 = vector.load %arg26[%c0_78, %c32] : memref<8x64xf32, #tpu.memory_space<vmem>>, vector<8x32xf32>
    tpu.vector_store %arg26[%c0_78, %c32], %141 {strides = array<i32>} : memref<8x64xf32, #tpu.memory_space<vmem>>, vector<8x32xf32>,
    return
  }
  func.func @transform_0(%arg0: i32) -> (i32, i32) {
    %c0_i32 = arith.constant 0 : i32
    %c0_i32_0 = arith.constant 0 : i32
    return %arg0, %c0_i32 : i32, i32
  }
  func.func @transform_1(%arg0: i32) -> (i32, i32) {
    %c0_i32 = arith.constant 0 : i32
    %c0_i32_0 = arith.constant 0 : i32
    return %arg0, %c0_i32 : i32, i32
  }
  func.func @transform_2(%arg0: i32) -> (i32, i32) {
    %c0_i32 = arith.constant 0 : i32
    %c0_i32_0 = arith.constant 0 : i32
    %c0_i32_1 = arith.constant 0 : i32
    return %c0_i32, %c0_i32_0 : i32, i32
  }
  func.func @transform_3(%arg0: i32) -> (i32, i32) {
    %c0_i32 = arith.constant 0 : i32
    %c0_i32_0 = arith.constant 0 : i32
    %c0_i32_1 = arith.constant 0 : i32
    return %c0_i32, %c0_i32_0 : i32, i32
  }
  func.func @transform_4(%arg0: i32) -> (i32, i32) {
    %c0_i32 = arith.constant 0 : i32
    %c0_i32_0 = arith.constant 0 : i32
    %c0_i32_1 = arith.constant 0 : i32
    return %c0_i32, %c0_i32_0 : i32, i32
  }
  func.func @transform_5(%arg0: i32) -> (i32, i32) {
    %c0_i32 = arith.constant 0 : i32
    %c0_i32_0 = arith.constant 0 : i32
    %c0_i32_1 = arith.constant 0 : i32
    return %c0_i32, %c0_i32_0 : i32, i32
  }
  func.func @transform_6(%arg0: i32) -> (i32, i32) {
    %c0_i32 = arith.constant 0 : i32
    %c0_i32_0 = arith.constant 0 : i32
    %c0_i32_1 = arith.constant 0 : i32
    return %c0_i32, %c0_i32_0 : i32, i32
  }
  func.func @transform_7(%arg0: i32) -> (i32, i32) {
    %c0_i32 = arith.constant 0 : i32
    %c0_i32_0 = arith.constant 0 : i32
    %c0_i32_1 = arith.constant 0 : i32
    return %c0_i32, %c0_i32_0 : i32, i32
  }
  func.func @transform_8(%arg0: i32) -> (i32, i32) {
    %c0_i32 = arith.constant 0 : i32
    %c0_i32_0 = arith.constant 0 : i32
    %c0_i32_1 = arith.constant 0 : i32
    return %c0_i32, %c0_i32_0 : i32, i32
  }
  func.func @transform_9(%arg0: i32) -> (i32, i32) {
    %c0_i32 = arith.constant 0 : i32
    %c0_i32_0 = arith.constant 0 : i32
    %c0_i32_1 = arith.constant 0 : i32
    return %c0_i32, %c0_i32_0 : i32, i32
  }
  func.func @transform_10(%arg0: i32) -> (i32, i32) {
    %c0_i32 = arith.constant 0 : i32
    %c0_i32_0 = arith.constant 0 : i32
    %c0_i32_1 = arith.constant 0 : i32
    return %c0_i32, %c0_i32_0 : i32, i32
  }
  func.func @transform_11(%arg0: i32) -> (i32, i32) {
    %c0_i32 = arith.constant 0 : i32
    %c0_i32_0 = arith.constant 0 : i32
    %c0_i32_1 = arith.constant 0 : i32
    return %c0_i32, %c0_i32_0 : i32, i32
  }
  func.func @transform_12(%arg0: i32) -> (i32, i32) {
    %c0_i32 = arith.constant 0 : i32
    %c0_i32_0 = arith.constant 0 : i32
    %c0_i32_1 = arith.constant 0 : i32
    return %c0_i32, %c0_i32_0 : i32, i32
  }
  func.func @transform_13(%arg0: i32) -> (i32, i32) {
    %c0_i32 = arith.constant 0 : i32
    %c0_i32_0 = arith.constant 0 : i32
    %c0_i32_1 = arith.constant 0 : i32
    return %c0_i32, %c0_i32_0 : i32, i32
  }
  func.func @transform_14(%arg0: i32) -> (i32, i32) {
    %c0_i32 = arith.constant 0 : i32
    %c0_i32_0 = arith.constant 0 : i32
    %c0_i32_1 = arith.constant 0 : i32
    return %c0_i32, %c0_i32_0 : i32, i32
  }
  func.func @transform_15(%arg0: i32) -> (i32, i32) {
    %c0_i32 = arith.constant 0 : i32
    %c0_i32_0 = arith.constant 0 : i32
    %c0_i32_1 = arith.constant 0 : i32
    return %c0_i32, %c0_i32_0 : i32, i32
  }
  func.func @transform_16(%arg0: i32) -> (i32, i32) {
    %c0_i32 = arith.constant 0 : i32
    %c0_i32_0 = arith.constant 0 : i32
    %c0_i32_1 = arith.constant 0 : i32
    return %c0_i32, %c0_i32_0 : i32, i32
  }
  func.func @transform_17(%arg0: i32) -> (i32, i32) {
    %c0_i32 = arith.constant 0 : i32
    %c0_i32_0 = arith.constant 0 : i32
    %c0_i32_1 = arith.constant 0 : i32
    return %c0_i32, %c0_i32_0 : i32, i32
  }
  func.func @transform_18(%arg0: i32) -> (i32, i32) {
    %c0_i32 = arith.constant 0 : i32
    %c0_i32_0 = arith.constant 0 : i32
    %c0_i32_1 = arith.constant 0 : i32
    return %c0_i32, %c0_i32_0 : i32, i32
  }
  func.func @transform_19(%arg0: i32) -> (i32, i32) {
    %c0_i32 = arith.constant 0 : i32
    %c0_i32_0 = arith.constant 0 : i32
    %c0_i32_1 = arith.constant 0 : i32
    return %c0_i32, %c0_i32_0 : i32, i32
  }
  func.func @transform_20(%arg0: i32) -> (i32, i32) {
    %c0_i32 = arith.constant 0 : i32
    %c0_i32_0 = arith.constant 0 : i32
    %c0_i32_1 = arith.constant 0 : i32
    return %c0_i32, %c0_i32_0 : i32, i32
  }
  func.func @transform_21(%arg0: i32) -> (i32, i32) {
    %c0_i32 = arith.constant 0 : i32
    %c0_i32_0 = arith.constant 0 : i32
    %c0_i32_1 = arith.constant 0 : i32
    return %c0_i32, %c0_i32_0 : i32, i32
  }
  func.func @transform_22(%arg0: i32) -> (i32, i32) {
    %c0_i32 = arith.constant 0 : i32
    %c0_i32_0 = arith.constant 0 : i32
    %c0_i32_1 = arith.constant 0 : i32
    return %c0_i32, %c0_i32_0 : i32, i32
  }
  func.func @transform_23(%arg0: i32) -> (i32, i32) {
    %c0_i32 = arith.constant 0 : i32
    %c0_i32_0 = arith.constant 0 : i32
    %c0_i32_1 = arith.constant 0 : i32
    return %c0_i32, %c0_i32_0 : i32, i32
  }
  func.func @transform_24(%arg0: i32) -> (i32, i32) {
    %c0_i32 = arith.constant 0 : i32
    %c0_i32_0 = arith.constant 0 : i32
    %c0_i32_1 = arith.constant 0 : i32
    return %c0_i32, %c0_i32_0 : i32, i32
  }
  func.func @transform_25(%arg0: i32) -> (i32, i32) {
    %c0_i32 = arith.constant 0 : i32
    %c0_i32_0 = arith.constant 0 : i32
    return %arg0, %c0_i32 : i32, i32
  }
}

module attributes {stable_mosaic.version = 11 : i64} {
  func.func @_cross_modal_kernel(%arg0: i32, %arg1: memref<8x24xf32, #tpu.memory_space<vmem>>, %arg2: memref<8x16xf32, #tpu.memory_space<vmem>>, %arg3: memref<24x32xbf16, #tpu.memory_space<vmem>>, %arg4: memref<1x32xf32, #tpu.memory_space<vmem>>, %arg5: memref<16x32xbf16, #tpu.memory_space<vmem>>, %arg6: memref<1x32xf32, #tpu.memory_space<vmem>>, %arg7: memref<32x96xbf16, #tpu.memory_space<vmem>>, %arg8: memref<1x96xf32, #tpu.memory_space<vmem>>, %arg9: memref<32x32xbf16, #tpu.memory_space<vmem>>, %arg10: memref<1x32xf32, #tpu.memory_space<vmem>>, %arg11: memref<1x32xf32, #tpu.memory_space<vmem>>, %arg12: memref<1x32xf32, #tpu.memory_space<vmem>>, %arg13: memref<1x32xf32, #tpu.memory_space<vmem>>, %arg14: memref<1x32xf32, #tpu.memory_space<vmem>>, %arg15: memref<32x128xbf16, #tpu.memory_space<vmem>>, %arg16: memref<1x128xf32, #tpu.memory_space<vmem>>, %arg17: memref<128x32xbf16, #tpu.memory_space<vmem>>, %arg18: memref<1x32xf32, #tpu.memory_space<vmem>>, %arg19: memref<32x128xbf16, #tpu.memory_space<vmem>>, %arg20: memref<32x128xbf16, #tpu.memory_space<vmem>>, %arg21: memref<128x16xbf16, #tpu.memory_space<vmem>>, %arg22: memref<16x16xbf16, #tpu.memory_space<vmem>>, %arg23: memref<16x128xbf16, #tpu.memory_space<vmem>>, %arg24: memref<32x128xbf16, #tpu.memory_space<vmem>>, %arg25: memref<128x32xbf16, #tpu.memory_space<vmem>>, %arg26: memref<8x64xf32, #tpu.memory_space<vmem>>) attributes {dimension_semantics = [#tpu.dimension_semantics<parallel>], iteration_bounds = array<i64: 2>, scalar_prefetch = 0 : i64, scratch_operands = 0 : i64, tpu.core_type = #tpu.core_type<tc>, window_params = [{transform_indices = @transform_0, window_bounds = array<i64: 8, 24>}, {transform_indices = @transform_1, window_bounds = array<i64: 8, 16>}, {pipeline_mode = #tpu.pipeline_mode<synchronous>, transform_indices = @transform_2, window_bounds = array<i64: 24, 32>}, {pipeline_mode = #tpu.pipeline_mode<synchronous>, transform_indices = @transform_3, window_bounds = array<i64: 1, 32>}, {pipeline_mode = #tpu.pipeline_mode<synchronous>, transform_indices = @transform_4, window_bounds = array<i64: 16, 32>}, {pipeline_mode = #tpu.pipeline_mode<synchronous>, transform_indices = @transform_5, window_bounds = array<i64: 1, 32>}, {pipeline_mode = #tpu.pipeline_mode<synchronous>, transform_indices = @transform_6, window_bounds = array<i64: 32, 96>}, {pipeline_mode = #tpu.pipeline_mode<synchronous>, transform_indices = @transform_7, window_bounds = array<i64: 1, 96>}, {pipeline_mode = #tpu.pipeline_mode<synchronous>, transform_indices = @transform_8, window_bounds = array<i64: 32, 32>}, {pipeline_mode = #tpu.pipeline_mode<synchronous>, transform_indices = @transform_9, window_bounds = array<i64: 1, 32>}, {pipeline_mode = #tpu.pipeline_mode<synchronous>, transform_indices = @transform_10, window_bounds = array<i64: 1, 32>}, {pipeline_mode = #tpu.pipeline_mode<synchronous>, transform_indices = @transform_11, window_bounds = array<i64: 1, 32>}, {pipeline_mode = #tpu.pipeline_mode<synchronous>, transform_indices = @transform_12, window_bounds = array<i64: 1, 32>}, {pipeline_mode = #tpu.pipeline_mode<synchronous>, transform_indices = @transform_13, window_bounds = array<i64: 1, 32>}, {pipeline_mode = #tpu.pipeline_mode<synchronous>, transform_indices = @transform_14, window_bounds = array<i64: 32, 128>}, {pipeline_mode = #tpu.pipeline_mode<synchronous>, transform_indices = @transform_15, window_bounds = array<i64: 1, 128>}, {pipeline_mode = #tpu.pipeline_mode<synchronous>, transform_indices = @transform_16, window_bounds = array<i64: 128, 32>}, {pipeline_mode = #tpu.pipeline_mode<synchronous>, transform_indices = @transform_17, window_bounds = array<i64: 1, 32>}, {pipeline_mode = #tpu.pipeline_mode<synchronous>, transform_indices = @transform_18, window_bounds = array<i64: 32, 128>}, {pipeline_mode = #tpu.pipeline_mode<synchronous>, transform_indices = @transform_19, window_bounds = array<i64: 32, 128>}, {pipeline_mode = #tpu.pipeline_mode<synchronous>, transform_indices = @transform_20, window_bounds = array<i64: 128, 16>}, {pipeline_mode = #tpu.pipeline_mode<synchronous>, transform_indices = @transform_21, window_bounds = array<i64: 16, 16>}, {pipeline_mode = #tpu.pipeline_mode<synchronous>, transform_indices = @transform_22, window_bounds = array<i64: 16, 128>}, {pipeline_mode = #tpu.pipeline_mode<synchronous>, transform_indices = @transform_23, window_bounds = array<i64: 32, 128>}, {pipeline_mode = #tpu.pipeline_mode<synchronous>, transform_indices = @transform_24, window_bounds = array<i64: 128, 32>}, {transform_indices = @transform_25, window_bounds = array<i64: 8, 64>}]} {
    %c0 = arith.constant 0 : index
    %c0_0 = arith.constant 0 : index
    %0 = vector.load %arg1[%c0, %c0_0] : memref<8x24xf32, #tpu.memory_space<vmem>>, vector<8x24xf32>
    %1 = arith.truncf %0 : vector<8x24xf32> to vector<8x24xbf16>
    %c0_1 = arith.constant 0 : index
    %c0_2 = arith.constant 0 : index
    %2 = vector.load %arg3[%c0_1, %c0_2] : memref<24x32xbf16, #tpu.memory_space<vmem>>, vector<24x32xbf16>
    %cst = arith.constant dense<0.000000e+00> : vector<8x32xf32>
    %3 = tpu.matmul %1, %2, %cst {dimension_numbers = #tpu.dot_dimension_numbers<[1], [0], [0], [1], [0, 0, 1, 1], [], []>} : vector<8x24xbf16>, vector<24x32xbf16>, vector<8x32xf32> -> vector<8x32xf32>
    %c0_3 = arith.constant 0 : index
    %c0_4 = arith.constant 0 : index
    %4 = vector.load %arg4[%c0_3, %c0_4] : memref<1x32xf32, #tpu.memory_space<vmem>>, vector<1x32xf32>
    %5 = vector.broadcast %4 : vector<1x32xf32> to vector<8x32xf32>
    %6 = arith.addf %3, %5 : vector<8x32xf32>
    %c0_5 = arith.constant 0 : index
    %c0_6 = arith.constant 0 : index
    %7 = vector.load %arg2[%c0_5, %c0_6] : memref<8x16xf32, #tpu.memory_space<vmem>>, vector<8x16xf32>
    %8 = arith.truncf %7 : vector<8x16xf32> to vector<8x16xbf16>
    %c0_7 = arith.constant 0 : index
    %c0_8 = arith.constant 0 : index
    %9 = vector.load %arg5[%c0_7, %c0_8] : memref<16x32xbf16, #tpu.memory_space<vmem>>, vector<16x32xbf16>
    %cst_9 = arith.constant dense<0.000000e+00> : vector<8x32xf32>
    %10 = tpu.matmul %8, %9, %cst_9 {dimension_numbers = #tpu.dot_dimension_numbers<[1], [0], [0], [1], [0, 0, 1, 1], [], []>} : vector<8x16xbf16>, vector<16x32xbf16>, vector<8x32xf32> -> vector<8x32xf32>
    %c0_10 = arith.constant 0 : index
    %c0_11 = arith.constant 0 : index
    %11 = vector.load %arg6[%c0_10, %c0_11] : memref<1x32xf32, #tpu.memory_space<vmem>>, vector<1x32xf32>
    %12 = vector.broadcast %11 : vector<1x32xf32> to vector<8x32xf32>
    %13 = arith.addf %10, %12 : vector<8x32xf32>
    %14 = tpu.concatenate %6, %13 in 0 : vector<8x32xf32>, vector<8x32xf32> -> vector<16x32xf32>
    %15 = arith.truncf %14 : vector<16x32xf32> to vector<16x32xbf16>
    %c0_12 = arith.constant 0 : index
    %c0_13 = arith.constant 0 : index
    %16 = vector.load %arg7[%c0_12, %c0_13] : memref<32x96xbf16, #tpu.memory_space<vmem>>, vector<32x96xbf16>
    %cst_14 = arith.constant dense<0.000000e+00> : vector<16x96xf32>
    %17 = tpu.matmul %15, %16, %cst_14 {dimension_numbers = #tpu.dot_dimension_numbers<[1], [0], [0], [1], [0, 0, 1, 1], [], []>} : vector<16x32xbf16>, vector<32x96xbf16>, vector<16x96xf32> -> vector<16x96xf32>
    %c0_15 = arith.constant 0 : index
    %c0_16 = arith.constant 0 : index
    %18 = vector.load %arg8[%c0_15, %c0_16] : memref<1x96xf32, #tpu.memory_space<vmem>>, vector<1x96xf32>
    %19 = vector.broadcast %18 : vector<1x96xf32> to vector<16x96xf32>
    %20 = arith.addf %17, %19 : vector<16x96xf32>
    %21 = vector.extract_strided_slice %20 {offsets = [0, 0], sizes = [16, 32], strides = [1, 1]} : vector<16x96xf32> to vector<16x32xf32>
    %22 = vector.extract_strided_slice %20 {offsets = [8, 32], sizes = [8, 32], strides = [1, 1]} : vector<16x96xf32> to vector<8x32xf32>
    %23 = vector.extract_strided_slice %20 {offsets = [0, 32], sizes = [8, 32], strides = [1, 1]} : vector<16x96xf32> to vector<8x32xf32>
    %24 = tpu.concatenate %22, %23 in 0 : vector<8x32xf32>, vector<8x32xf32> -> vector<16x32xf32>
    %25 = vector.extract_strided_slice %20 {offsets = [8, 64], sizes = [8, 32], strides = [1, 1]} : vector<16x96xf32> to vector<8x32xf32>
    %26 = vector.extract_strided_slice %20 {offsets = [0, 64], sizes = [8, 32], strides = [1, 1]} : vector<16x96xf32> to vector<8x32xf32>
    %27 = tpu.concatenate %25, %26 in 0 : vector<8x32xf32>, vector<8x32xf32> -> vector<16x32xf32>
    %28 = arith.truncf %21 : vector<16x32xf32> to vector<16x32xbf16>
    %c0_17 = arith.constant 0 : index
    %c0_18 = arith.constant 0 : index
    %29 = vector.load %arg19[%c0_17, %c0_18] : memref<32x128xbf16, #tpu.memory_space<vmem>>, vector<32x128xbf16>
    %cst_19 = arith.constant dense<0.000000e+00> : vector<16x128xf32>
    %30 = tpu.matmul %28, %29, %cst_19 {dimension_numbers = #tpu.dot_dimension_numbers<[1], [0], [0], [1], [0, 0, 1, 1], [], []>} : vector<16x32xbf16>, vector<32x128xbf16>, vector<16x128xf32> -> vector<16x128xf32>
    %31 = arith.truncf %24 : vector<16x32xf32> to vector<16x32xbf16>
    %c0_20 = arith.constant 0 : index
    %c0_21 = arith.constant 0 : index
    %32 = vector.load %arg20[%c0_20, %c0_21] : memref<32x128xbf16, #tpu.memory_space<vmem>>, vector<32x128xbf16>
    %cst_22 = arith.constant dense<0.000000e+00> : vector<16x128xf32>
    %33 = tpu.matmul %31, %32, %cst_22 {dimension_numbers = #tpu.dot_dimension_numbers<[1], [0], [0], [1], [0, 0, 1, 1], [], []>} : vector<16x32xbf16>, vector<32x128xbf16>, vector<16x128xf32> -> vector<16x128xf32>
    %34 = arith.mulf %30, %33 : vector<16x128xf32>
    %35 = arith.truncf %34 : vector<16x128xf32> to vector<16x128xbf16>
    %c0_23 = arith.constant 0 : index
    %c0_24 = arith.constant 0 : index
    %36 = vector.load %arg21[%c0_23, %c0_24] : memref<128x16xbf16, #tpu.memory_space<vmem>>, vector<128x16xbf16>
    %cst_25 = arith.constant dense<0.000000e+00> : vector<16x16xf32>
    %37 = tpu.matmul %35, %36, %cst_25 {dimension_numbers = #tpu.dot_dimension_numbers<[1], [0], [0], [1], [0, 0, 1, 1], [], []>} : vector<16x128xbf16>, vector<128x16xbf16>, vector<16x16xf32> -> vector<16x16xf32>
    %cst_26 = arith.constant dense<0xFF800000> : vector<16xf32>
    %38 = vector.multi_reduction <maximumf>, %37, %cst_26 [1] : vector<16x16xf32> to vector<16xf32>
    %39 = vector.shape_cast %38 : vector<16xf32> to vector<16x1xf32>
    %40 = vector.broadcast %39 : vector<16x1xf32> to vector<16x16xf32>
    %41 = arith.subf %37, %40 : vector<16x16xf32>
    %42 = math.exp %41 : vector<16x16xf32>
    %43 = arith.truncf %42 : vector<16x16xf32> to vector<16x16xbf16>
    %c0_27 = arith.constant 0 : index
    %c0_28 = arith.constant 0 : index
    %44 = vector.load %arg22[%c0_27, %c0_28] : memref<16x16xbf16, #tpu.memory_space<vmem>>, vector<16x16xbf16>
    %cst_29 = arith.constant dense<0.000000e+00> : vector<16x16xf32>
    %45 = tpu.matmul %43, %44, %cst_29 {dimension_numbers = #tpu.dot_dimension_numbers<[1], [0], [0], [1], [0, 0, 1, 1], [], []>} : vector<16x16xbf16>, vector<16x16xbf16>, vector<16x16xf32> -> vector<16x16xf32>
    %46 = tpu.reciprocal %45 {approx = true} : vector<16x16xf32> -> vector<16x16xf32>
    %47 = arith.mulf %42, %46 : vector<16x16xf32>
    %48 = arith.truncf %47 : vector<16x16xf32> to vector<16x16xbf16>
    %c0_30 = arith.constant 0 : index
    %c0_31 = arith.constant 0 : index
    %49 = vector.load %arg23[%c0_30, %c0_31] : memref<16x128xbf16, #tpu.memory_space<vmem>>, vector<16x128xbf16>
    %cst_32 = arith.constant dense<0.000000e+00> : vector<16x128xf32>
    %50 = tpu.matmul %48, %49, %cst_32 {dimension_numbers = #tpu.dot_dimension_numbers<[1], [0], [0], [1], [0, 0, 1, 1], [], []>} : vector<16x16xbf16>, vector<16x128xbf16>, vector<16x128xf32> -> vector<16x128xf32>
    %51 = arith.truncf %27 : vector<16x32xf32> to vector<16x32xbf16>
    %c0_33 = arith.constant 0 : index
    %c0_34 = arith.constant 0 : index
    %52 = vector.load %arg24[%c0_33, %c0_34] : memref<32x128xbf16, #tpu.memory_space<vmem>>, vector<32x128xbf16>
    %cst_35 = arith.constant dense<0.000000e+00> : vector<16x128xf32>
    %53 = tpu.matmul %51, %52, %cst_35 {dimension_numbers = #tpu.dot_dimension_numbers<[1], [0], [0], [1], [0, 0, 1, 1], [], []>} : vector<16x32xbf16>, vector<32x128xbf16>, vector<16x128xf32> -> vector<16x128xf32>
    %54 = arith.mulf %50, %53 : vector<16x128xf32>
    %55 = arith.truncf %54 : vector<16x128xf32> to vector<16x128xbf16>
    %c0_36 = arith.constant 0 : index
    %c0_37 = arith.constant 0 : index
    %56 = vector.load %arg25[%c0_36, %c0_37] : memref<128x32xbf16, #tpu.memory_space<vmem>>, vector<128x32xbf16>
    %cst_38 = arith.constant dense<0.000000e+00> : vector<16x32xf32>
    %57 = tpu.matmul %55, %56, %cst_38 {dimension_numbers = #tpu.dot_dimension_numbers<[1], [0], [0], [1], [0, 0, 1, 1], [], []>} : vector<16x128xbf16>, vector<128x32xbf16>, vector<16x32xf32> -> vector<16x32xf32>
    %58 = arith.truncf %57 : vector<16x32xf32> to vector<16x32xbf16>
    %c0_39 = arith.constant 0 : index
    %c0_40 = arith.constant 0 : index
    %59 = vector.load %arg9[%c0_39, %c0_40] : memref<32x32xbf16, #tpu.memory_space<vmem>>, vector<32x32xbf16>
    %cst_41 = arith.constant dense<0.000000e+00> : vector<16x32xf32>
    %60 = tpu.matmul %58, %59, %cst_41 {dimension_numbers = #tpu.dot_dimension_numbers<[1], [0], [0], [1], [0, 0, 1, 1], [], []>} : vector<16x32xbf16>, vector<32x32xbf16>, vector<16x32xf32> -> vector<16x32xf32>
    %c0_42 = arith.constant 0 : index
    %c0_43 = arith.constant 0 : index
    %61 = vector.load %arg10[%c0_42, %c0_43] : memref<1x32xf32, #tpu.memory_space<vmem>>, vector<1x32xf32>
    %62 = vector.broadcast %61 : vector<1x32xf32> to vector<16x32xf32>
    %63 = arith.addf %60, %62 : vector<16x32xf32>
    %64 = arith.addf %14, %63 : vector<16x32xf32>
    %c0_44 = arith.constant 0 : index
    %c0_45 = arith.constant 0 : index
    %65 = vector.load %arg11[%c0_44, %c0_45] : memref<1x32xf32, #tpu.memory_space<vmem>>, vector<1x32xf32>
    %c0_46 = arith.constant 0 : index
    %c0_47 = arith.constant 0 : index
    %66 = vector.load %arg12[%c0_46, %c0_47] : memref<1x32xf32, #tpu.memory_space<vmem>>, vector<1x32xf32>
    %cst_48 = arith.constant dense<0.000000e+00> : vector<16xf32>
    %67 = vector.multi_reduction <add>, %64, %cst_48 [1] : vector<16x32xf32> to vector<16xf32>
    %68 = vector.shape_cast %67 : vector<16xf32> to vector<16x1xf32>
    %cst_49 = arith.constant 3.200000e+01 : f32
    %69 = vector.broadcast %cst_49 : f32 to vector<16x1xf32>
    %70 = arith.divf %68, %69 : vector<16x1xf32>
    %71 = vector.broadcast %70 : vector<16x1xf32> to vector<16x32xf32>
    %72 = arith.subf %64, %71 : vector<16x32xf32>
    %73 = arith.mulf %72, %72 : vector<16x32xf32>
    %cst_50 = arith.constant dense<0.000000e+00> : vector<16xf32>
    %74 = vector.multi_reduction <add>, %73, %cst_50 [1] : vector<16x32xf32> to vector<16xf32>
    %75 = vector.shape_cast %74 : vector<16xf32> to vector<16x1xf32>
    %cst_51 = arith.constant 3.200000e+01 : f32
    %76 = vector.broadcast %cst_51 : f32 to vector<16x1xf32>
    %77 = arith.divf %75, %76 : vector<16x1xf32>
    %78 = vector.broadcast %70 : vector<16x1xf32> to vector<16x32xf32>
    %79 = arith.subf %64, %78 : vector<16x32xf32>
    %cst_52 = arith.constant 9.99999974E-6 : f32
    %80 = vector.broadcast %cst_52 : f32 to vector<16x1xf32>
    %81 = arith.addf %77, %80 : vector<16x1xf32>
    %82 = math.rsqrt %81 : vector<16x1xf32>
    %83 = vector.broadcast %82 : vector<16x1xf32> to vector<16x32xf32>
    %84 = arith.mulf %79, %83 : vector<16x32xf32>
    %85 = vector.broadcast %65 : vector<1x32xf32> to vector<16x32xf32>
    %86 = arith.mulf %84, %85 : vector<16x32xf32>
    %87 = vector.broadcast %66 : vector<1x32xf32> to vector<16x32xf32>
    %88 = arith.addf %86, %87 : vector<16x32xf32>
    %89 = arith.truncf %88 : vector<16x32xf32> to vector<16x32xbf16>
    %c0_53 = arith.constant 0 : index
    %c0_54 = arith.constant 0 : index
    %90 = vector.load %arg15[%c0_53, %c0_54] : memref<32x128xbf16, #tpu.memory_space<vmem>>, vector<32x128xbf16>
    %cst_55 = arith.constant dense<0.000000e+00> : vector<16x128xf32>
    %91 = tpu.matmul %89, %90, %cst_55 {dimension_numbers = #tpu.dot_dimension_numbers<[1], [0], [0], [1], [0, 0, 1, 1], [], []>} : vector<16x32xbf16>, vector<32x128xbf16>, vector<16x128xf32> -> vector<16x128xf32>
    %c0_56 = arith.constant 0 : index
    %c0_57 = arith.constant 0 : index
    %92 = vector.load %arg16[%c0_56, %c0_57] : memref<1x128xf32, #tpu.memory_space<vmem>>, vector<1x128xf32>
    %93 = vector.broadcast %92 : vector<1x128xf32> to vector<16x128xf32>
    %94 = arith.addf %91, %93 : vector<16x128xf32>
    %cst_58 = arith.constant 5.000000e-01 : f32
    %95 = vector.broadcast %cst_58 : f32 to vector<16x128xf32>
    %96 = arith.mulf %95, %94 : vector<16x128xf32>
    %cst_59 = arith.constant 4.471500e-02 : f32
    %97 = vector.broadcast %cst_59 : f32 to vector<16x128xf32>
    %98 = arith.mulf %97, %94 : vector<16x128xf32>
    %99 = arith.mulf %98, %94 : vector<16x128xf32>
    %100 = arith.mulf %99, %94 : vector<16x128xf32>
    %101 = arith.addf %94, %100 : vector<16x128xf32>
    %cst_60 = arith.constant 0.797884583 : f32
    %102 = vector.broadcast %cst_60 : f32 to vector<16x128xf32>
    %103 = arith.mulf %102, %101 : vector<16x128xf32>
    %104 = math.tanh %103 : vector<16x128xf32>
    %cst_61 = arith.constant 1.000000e+00 : f32
    %105 = vector.broadcast %cst_61 : f32 to vector<16x128xf32>
    %106 = arith.addf %105, %104 : vector<16x128xf32>
    %107 = arith.mulf %96, %106 : vector<16x128xf32>
    %108 = arith.truncf %107 : vector<16x128xf32> to vector<16x128xbf16>
    %c0_62 = arith.constant 0 : index
    %c0_63 = arith.constant 0 : index
    %109 = vector.load %arg17[%c0_62, %c0_63] : memref<128x32xbf16, #tpu.memory_space<vmem>>, vector<128x32xbf16>
    %cst_64 = arith.constant dense<0.000000e+00> : vector<16x32xf32>
    %110 = tpu.matmul %108, %109, %cst_64 {dimension_numbers = #tpu.dot_dimension_numbers<[1], [0], [0], [1], [0, 0, 1, 1], [], []>} : vector<16x128xbf16>, vector<128x32xbf16>, vector<16x32xf32> -> vector<16x32xf32>
    %c0_65 = arith.constant 0 : index
    %c0_66 = arith.constant 0 : index
    %111 = vector.load %arg18[%c0_65, %c0_66] : memref<1x32xf32, #tpu.memory_space<vmem>>, vector<1x32xf32>
    %112 = vector.broadcast %111 : vector<1x32xf32> to vector<16x32xf32>
    %113 = arith.addf %110, %112 : vector<16x32xf32>
    %114 = arith.addf %88, %113 : vector<16x32xf32>
    %c0_67 = arith.constant 0 : index
    %c0_68 = arith.constant 0 : index
    %115 = vector.load %arg13[%c0_67, %c0_68] : memref<1x32xf32, #tpu.memory_space<vmem>>, vector<1x32xf32>
    %c0_69 = arith.constant 0 : index
    %c0_70 = arith.constant 0 : index
    %116 = vector.load %arg14[%c0_69, %c0_70] : memref<1x32xf32, #tpu.memory_space<vmem>>, vector<1x32xf32>
    %cst_71 = arith.constant dense<0.000000e+00> : vector<16xf32>
    %117 = vector.multi_reduction <add>, %114, %cst_71 [1] : vector<16x32xf32> to vector<16xf32>
    %118 = vector.shape_cast %117 : vector<16xf32> to vector<16x1xf32>
    %cst_72 = arith.constant 3.200000e+01 : f32
    %119 = vector.broadcast %cst_72 : f32 to vector<16x1xf32>
    %120 = arith.divf %118, %119 : vector<16x1xf32>
    %121 = vector.broadcast %120 : vector<16x1xf32> to vector<16x32xf32>
    %122 = arith.subf %114, %121 : vector<16x32xf32>
    %123 = arith.mulf %122, %122 : vector<16x32xf32>
    %cst_73 = arith.constant dense<0.000000e+00> : vector<16xf32>
    %124 = vector.multi_reduction <add>, %123, %cst_73 [1] : vector<16x32xf32> to vector<16xf32>
    %125 = vector.shape_cast %124 : vector<16xf32> to vector<16x1xf32>
    %cst_74 = arith.constant 3.200000e+01 : f32
    %126 = vector.broadcast %cst_74 : f32 to vector<16x1xf32>
    %127 = arith.divf %125, %126 : vector<16x1xf32>
    %128 = vector.broadcast %120 : vector<16x1xf32> to vector<16x32xf32>
    %129 = arith.subf %114, %128 : vector<16x32xf32>
    %cst_75 = arith.constant 9.99999974E-6 : f32
    %130 = vector.broadcast %cst_75 : f32 to vector<16x1xf32>
    %131 = arith.addf %127, %130 : vector<16x1xf32>
    %132 = math.rsqrt %131 : vector<16x1xf32>
    %133 = vector.broadcast %132 : vector<16x1xf32> to vector<16x32xf32>
    %134 = arith.mulf %129, %133 : vector<16x32xf32>
    %135 = vector.broadcast %115 : vector<1x32xf32> to vector<16x32xf32>
    %136 = arith.mulf %134, %135 : vector<16x32xf32>
    %137 = vector.broadcast %116 : vector<1x32xf32> to vector<16x32xf32>
    %138 = arith.addf %136, %137 : vector<16x32xf32>
    %139 = vector.extract_strided_slice %138 {offsets = [0, 0], sizes = [8, 32], strides = [1, 1]} : vector<16x32xf32> to vector<8x32xf32>
    %c0_76 = arith.constant 0 : index
    %c0_77 = arith.constant 0 : index
    %140 = vector.load %arg26[%c0_76, %c0_77] : memref<8x64xf32, #tpu.memory_space<vmem>>, vector<8x32xf32>
    tpu.vector_store %arg26[%c0_76, %c0_77], %139 {strides = array<i32>} : memref<8x64xf32, #tpu.memory_space<vmem>>, vector<8x32xf32>,
    %141 = vector.extract_strided_slice %138 {offsets = [8, 0], sizes = [8, 32], strides = [1, 1]} : vector<16x32xf32> to vector<8x32xf32>
    %c0_78 = arith.constant 0 : index
    %c32 = arith.constant 32 : index
    %142 = vector.load %arg26[%c0_78, %c32] : memref<8x64xf32, #tpu.memory_space<vmem>>, vector<8x32xf32>
    tpu.vector_store %arg26[%c0_78, %c32], %141 {strides = array<i32>} : memref<8x64xf32, #tpu.memory_space<vmem>>, vector<8x32xf32>,
    return
  }
  func.func @transform_0(%arg0: i32) -> (i32, i32) {
    %c0_i32 = arith.constant 0 : i32
    %c0_i32_0 = arith.constant 0 : i32
    return %arg0, %c0_i32 : i32, i32
  }
  func.func @transform_1(%arg0: i32) -> (i32, i32) {
    %c0_i32 = arith.constant 0 : i32
    %c0_i32_0 = arith.constant 0 : i32
    return %arg0, %c0_i32 : i32, i32
  }
  func.func @transform_2(%arg0: i32) -> (i32, i32) {
    %c0_i32 = arith.constant 0 : i32
    %c0_i32_0 = arith.constant 0 : i32
    %c0_i32_1 = arith.constant 0 : i32
    return %c0_i32, %c0_i32_0 : i32, i32
  }
  func.func @transform_3(%arg0: i32) -> (i32, i32) {
    %c0_i32 = arith.constant 0 : i32
    %c0_i32_0 = arith.constant 0 : i32
    %c0_i32_1 = arith.constant 0 : i32
    return %c0_i32, %c0_i32_0 : i32, i32
  }
  func.func @transform_4(%arg0: i32) -> (i32, i32) {
    %c0_i32 = arith.constant 0 : i32
    %c0_i32_0 = arith.constant 0 : i32
    %c0_i32_1 = arith.constant 0 : i32
    return %c0_i32, %c0_i32_0 : i32, i32
  }
  func.func @transform_5(%arg0: i32) -> (i32, i32) {
    %c0_i32 = arith.constant 0 : i32
    %c0_i32_0 = arith.constant 0 : i32
    %c0_i32_1 = arith.constant 0 : i32
    return %c0_i32, %c0_i32_0 : i32, i32
  }
  func.func @transform_6(%arg0: i32) -> (i32, i32) {
    %c0_i32 = arith.constant 0 : i32
    %c0_i32_0 = arith.constant 0 : i32
    %c0_i32_1 = arith.constant 0 : i32
    return %c0_i32, %c0_i32_0 : i32, i32
  }
  func.func @transform_7(%arg0: i32) -> (i32, i32) {
    %c0_i32 = arith.constant 0 : i32
    %c0_i32_0 = arith.constant 0 : i32
    %c0_i32_1 = arith.constant 0 : i32
    return %c0_i32, %c0_i32_0 : i32, i32
  }
  func.func @transform_8(%arg0: i32) -> (i32, i32) {
    %c0_i32 = arith.constant 0 : i32
    %c0_i32_0 = arith.constant 0 : i32
    %c0_i32_1 = arith.constant 0 : i32
    return %c0_i32, %c0_i32_0 : i32, i32
  }
  func.func @transform_9(%arg0: i32) -> (i32, i32) {
    %c0_i32 = arith.constant 0 : i32
    %c0_i32_0 = arith.constant 0 : i32
    %c0_i32_1 = arith.constant 0 : i32
    return %c0_i32, %c0_i32_0 : i32, i32
  }
  func.func @transform_10(%arg0: i32) -> (i32, i32) {
    %c0_i32 = arith.constant 0 : i32
    %c0_i32_0 = arith.constant 0 : i32
    %c0_i32_1 = arith.constant 0 : i32
    return %c0_i32, %c0_i32_0 : i32, i32
  }
  func.func @transform_11(%arg0: i32) -> (i32, i32) {
    %c0_i32 = arith.constant 0 : i32
    %c0_i32_0 = arith.constant 0 : i32
    %c0_i32_1 = arith.constant 0 : i32
    return %c0_i32, %c0_i32_0 : i32, i32
  }
  func.func @transform_12(%arg0: i32) -> (i32, i32) {
    %c0_i32 = arith.constant 0 : i32
    %c0_i32_0 = arith.constant 0 : i32
    %c0_i32_1 = arith.constant 0 : i32
    return %c0_i32, %c0_i32_0 : i32, i32
  }
  func.func @transform_13(%arg0: i32) -> (i32, i32) {
    %c0_i32 = arith.constant 0 : i32
    %c0_i32_0 = arith.constant 0 : i32
    %c0_i32_1 = arith.constant 0 : i32
    return %c0_i32, %c0_i32_0 : i32, i32
  }
  func.func @transform_14(%arg0: i32) -> (i32, i32) {
    %c0_i32 = arith.constant 0 : i32
    %c0_i32_0 = arith.constant 0 : i32
    %c0_i32_1 = arith.constant 0 : i32
    return %c0_i32, %c0_i32_0 : i32, i32
  }
  func.func @transform_15(%arg0: i32) -> (i32, i32) {
    %c0_i32 = arith.constant 0 : i32
    %c0_i32_0 = arith.constant 0 : i32
    %c0_i32_1 = arith.constant 0 : i32
    return %c0_i32, %c0_i32_0 : i32, i32
  }
  func.func @transform_16(%arg0: i32) -> (i32, i32) {
    %c0_i32 = arith.constant 0 : i32
    %c0_i32_0 = arith.constant 0 : i32
    %c0_i32_1 = arith.constant 0 : i32
    return %c0_i32, %c0_i32_0 : i32, i32
  }
  func.func @transform_17(%arg0: i32) -> (i32, i32) {
    %c0_i32 = arith.constant 0 : i32
    %c0_i32_0 = arith.constant 0 : i32
    %c0_i32_1 = arith.constant 0 : i32
    return %c0_i32, %c0_i32_0 : i32, i32
  }
  func.func @transform_18(%arg0: i32) -> (i32, i32) {
    %c0_i32 = arith.constant 0 : i32
    %c0_i32_0 = arith.constant 0 : i32
    %c0_i32_1 = arith.constant 0 : i32
    return %c0_i32, %c0_i32_0 : i32, i32
  }
  func.func @transform_19(%arg0: i32) -> (i32, i32) {
    %c0_i32 = arith.constant 0 : i32
    %c0_i32_0 = arith.constant 0 : i32
    %c0_i32_1 = arith.constant 0 : i32
    return %c0_i32, %c0_i32_0 : i32, i32
  }
  func.func @transform_20(%arg0: i32) -> (i32, i32) {
    %c0_i32 = arith.constant 0 : i32
    %c0_i32_0 = arith.constant 0 : i32
    %c0_i32_1 = arith.constant 0 : i32
    return %c0_i32, %c0_i32_0 : i32, i32
  }
  func.func @transform_21(%arg0: i32) -> (i32, i32) {
    %c0_i32 = arith.constant 0 : i32
    %c0_i32_0 = arith.constant 0 : i32
    %c0_i32_1 = arith.constant 0 : i32
    return %c0_i32, %c0_i32_0 : i32, i32
  }
  func.func @transform_22(%arg0: i32) -> (i32, i32) {
    %c0_i32 = arith.constant 0 : i32
    %c0_i32_0 = arith.constant 0 : i32
    %c0_i32_1 = arith.constant 0 : i32
    return %c0_i32, %c0_i32_0 : i32, i32
  }
  func.func @transform_23(%arg0: i32) -> (i32, i32) {
    %c0_i32 = arith.constant 0 : i32
    %c0_i32_0 = arith.constant 0 : i32
    %c0_i32_1 = arith.constant 0 : i32
    return %c0_i32, %c0_i32_0 : i32, i32
  }
  func.func @transform_24(%arg0: i32) -> (i32, i32) {
    %c0_i32 = arith.constant 0 : i32
    %c0_i32_0 = arith.constant 0 : i32
    %c0_i32_1 = arith.constant 0 : i32
    return %c0_i32, %c0_i32_0 : i32, i32
  }
  func.func @transform_25(%arg0: i32) -> (i32, i32) {
    %c0_i32 = arith.constant 0 : i32
    %c0_i32_0 = arith.constant 0 : i32
    return %arg0, %c0_i32 : i32, i32
  }
}

</mosaic_0001>

<bundles_post_ra>
// kernel: tpu_custom_call.1
= control target key start
LH: loop header
LB: loop body
LE: loop exit
PB: predicated region body
PF: predicated region fallthrough
CT: control target
= control target key end

     0   :  { %s5037_s0 = inlined_call_operand.hbm [shape: f32[16,24], index: 0, kind: input, shape index: {}]   ;;  %s5038_s1 = inlined_call_operand.hbm [shape: f32[16,16], index: 1, kind: input, shape index: {}]   ;;  %s5039_s2 = inlined_call_operand.hbm [shape: bf16[24,32], index: 2, kind: input, shape index: {}]   ;;  %s5040_s3 = inlined_call_operand.hbm [shape: f32[1,32], index: 3, kind: input, shape index: {}]   ;;  %s5041_s4 = inlined_call_operand.hbm [shape: bf16[16,32], index: 4, kind: input, shape index: {}]   ;;  %s5042_s5 = inlined_call_operand.hbm [shape: f32[1,32], index: 5, kind: input, shape index: {}]   ;;  %s5043_s6 = inlined_call_operand.hbm [shape: bf16[32,96], index: 6, kind: input, shape index: {}]   ;;  %s5044_s7 = inlined_call_operand.hbm [shape: f32[1,96], index: 7, kind: input, shape index: {}]   ;;  %s5045_s8 = inlined_call_operand.hbm [shape: bf16[32,32], index: 8, kind: input, shape index: {}]   ;;  %s5046_s9 = inlined_call_operand.hbm [shape: f32[1,32], index: 9, kind: input, shape index: {}]   ;;  %s5047_s10 = inlined_call_operand.hbm [shape: f32[1,32], index: 10, kind: input, shape index: {}]   ;;  %s5048_s11 = inlined_call_operand.hbm [shape: f32[1,32], index: 11, kind: input, shape index: {}]   ;;  %s5049_s12 = inlined_call_operand.hbm [shape: f32[1,32], index: 12, kind: input, shape index: {}]   ;;  %s5050_s13 = inlined_call_operand.hbm [shape: f32[1,32], index: 13, kind: input, shape index: {}]   ;;  %s5051_s14 = inlined_call_operand.hbm [shape: bf16[32,128], index: 14, kind: input, shape index: {}]   ;;  %s5052_s15 = inlined_call_operand.hbm [shape: f32[1,128], index: 15, kind: input, shape index: {}]   ;;  %s5053_s16 = inlined_call_operand.hbm [shape: bf16[128,32], index: 16, kind: input, shape index: {}]   ;;  %s5054_s17 = inlined_call_operand.hbm [shape: f32[1,32], index: 17, kind: input, shape index: {}]   ;;  %s5055_s18 = inlined_call_operand.hbm [shape: bf16[32,128], index: 18, kind: input, shape index: {}]   ;;  %s5056_s19 = inlined_call_operand.hbm [shape: bf16[32,128], index: 19, kind: input, shape index: {}]   ;;  %s5057_s20 = inlined_call_operand.hbm [shape: bf16[128,16], index: 20, kind: input, shape index: {}]   ;;  %s5058_s21 = inlined_call_operand.hbm [shape: bf16[16,16], index: 21, kind: input, shape index: {}]   ;;  %s5059_s22 = inlined_call_operand.hbm [shape: bf16[16,128], index: 22, kind: input, shape index: {}]   ;;  %s5060_s23 = inlined_call_operand.hbm [shape: bf16[32,128], index: 23, kind: input, shape index: {}]   ;;  %s5061_s24 = inlined_call_operand.hbm [shape: bf16[128,32], index: 24, kind: input, shape index: {}]   ;;  %s5062_s25 = inlined_call_operand.hbm [shape: f32[16,64], index: 25, kind: output, shape index: {}]  }
   0x1   :  { %5099 = sst [smem:[#allocation63_spill]] %s5037_s0 }
   0x2   :  { %5100 = sst [smem:[#allocation64_spill]] %s5038_s1 }
   0x3   :  { %5101 = sst [smem:[#allocation65_spill]] %s5039_s2 }
   0x4   :  { %5102 = sst [smem:[#allocation66_spill]] %s5040_s3 }
   0x5   :  { %5103 = sst [smem:[#allocation67_spill]] %s5041_s4 }
   0x6   :  { %5104 = sst [smem:[#allocation68_spill]] %s5042_s5 }
   0x7   :  { %5105 = sst [smem:[#allocation69_spill]] %s5043_s6 }
   0x8   :  { %5106 = sst [smem:[#allocation70_spill]] %s5044_s7 }
   0x9   :  { %5107 = sst [smem:[#allocation71_spill]] %s5045_s8 }
   0xa   :  { %5108 = sst [smem:[#allocation72_spill]] %s5046_s9 }
   0xb   :  { %5109 = sst [smem:[#allocation73_spill]] %s5047_s10 }
   0xc   :  { %5110 = sst [smem:[#allocation74_spill]] %s5048_s11 }
   0xd   :  { %5111 = sst [smem:[#allocation75_spill]] %s5049_s12 }
   0xe   :  { %5112 = sst [smem:[#allocation76_spill]] %s5050_s13 }
   0xf   :  { %5113 = sst [smem:[#allocation77_spill]] %s5051_s14 }
  0x10   :  { %5114 = sst [smem:[#allocation78_spill]] %s5052_s15 }
  0x11   :  { %5115 = sst [smem:[#allocation79_spill]] %s5053_s16 }
  0x12   :  { %5116 = sst [smem:[#allocation80_spill]] %s5054_s17 }
  0x13   :  { %5117 = sst [smem:[#allocation81_spill]] %s5055_s18 }
  0x14   :  { %5118 = sst [smem:[#allocation82_spill]] %s5056_s19 }
  0x15   :  { %5119 = sst [smem:[#allocation83_spill]] %s5057_s20 }
  0x16   :  { %5120 = sst [smem:[#allocation84_spill]] %s5059_s22 }
  0x17   :  { %5121 = sst [smem:[#allocation85_spill]] %s5061_s24 }
  0x18   :  { %5122 = sst [smem:[#allocation86_spill]] %s5062_s25 }
  0x19   :  { %30 = vsyncpa [#allocation3], 0 }
  0x1a   :  { %32 = vsyncpa [#allocation3 + $0x1], 0 }
  0x1b   :  { %33 = vsyncpa [#allocation6], 0 }
  0x1c   :  { %35 = vsyncpa [#allocation6 + $0x1], 0 }
  0x1d   :  { %36 = vsyncpa [#allocation9], 0 }
  0x1e   :  { %37 = vsyncpa [#allocation12], 0 }
  0x1f   :  { %38 = vsyncpa [#allocation15], 0 }
  0x20   :  { %39 = vsyncpa [#allocation18], 0 }
  0x21   :  { %40 = vsyncpa [#allocation21], 0 }
  0x22   :  { %41 = vsyncpa [#allocation24], 0 }
  0x23   :  { %42 = vsyncpa [#allocation27], 0 }
  0x24   :  { %43 = vsyncpa [#allocation30], 0 }
  0x25   :  { %44 = vsyncpa [#allocation33], 0 }
  0x26   :  { %45 = vsyncpa [#allocation36], 0 }
  0x27   :  { %46 = vsyncpa [#allocation39], 0 }
  0x28   :  { %47 = vsyncpa [#allocation4], 0 }
  0x29   :  { %49 = vsyncpa [#allocation4 + $0x1], 0  ;;  %s4194_s29 = smov 0   ;;  %s4196_s2 = smov 0  }
  0x2a   :  { %s4198_s6 = smov 0   ;;  %s4200_s30 = smov 0  }
  0x2b LB: > { %5123 = sst [smem:[#allocation57_spill]] %s4017_s29  ;;  %s4031_s7 = smov [#allocation7]   ;;  %s4029_s30 = sphi %s4200_s30, %s4717_s30   ;;  %s4025_s6 = sphi %s4198_s6, %s5207_s6   ;;  %s4021_s2 = sphi %s4196_s2, %s5206_s2   ;;  %s4017_s29 = sphi %s4194_s29, %s5205_s29  }
  0x2c   : > { %5124 = sst [smem:[#allocation58_spill]] %s4021_s2  ;;  %s633_s3 = sshll.u32 %s4031_s7, 4  ;;  %s4220_s3 = int_to_ptr.vmem [resolvable:$true] %s633_s3 }
  0x2d   : > { %5125 = sst [smem:[#allocation59_spill]] %s4025_s6  ;;  %s4215_s26 = sadd.s32 4294967295, %s4029_s30  }
  0x2e   : > { %5126 = sst [smem:[#allocation60_spill]] %s4029_s30  ;;  %p2548_p0 = scmp.ge.s32.totalorder %s4029_s30, 1 }
  0x2f   : > { %5127 = sst [smem:[#allocation61_spill]] %s4215_s26  ;;  %p5089_p1 = scmp.eq.s32.totalorder %s4215_s26, 0 }
  0x30   : > { %p621_p2 = scmp.lt.s32.totalorder %s4029_s30, 3  ;;  %s4032_s8 = smov [#allocation8]  }
  0x31   : > { %s647_s27 = sshll.u32 %s4032_s8, 4  ;;  %s4033_s28 = smov [#allocation11]   ;;  %s4235_s27 = int_to_ptr.vmem [resolvable:$true] %s647_s27 }
  0x32   : > { %p4222_p3 = pnand %p2548_p0, %p621_p2  ;;  %s671_s9 = sshll.u32 %s4033_s28, 4  ;;  %s4237_s9 = int_to_ptr.vmem [resolvable:$true] %s671_s9 }
  0x33   : > { %s5131_s7 = sld [smem:[#allocation65_spill]] }
  0x34   : > { %s5128_s1 = scalar_select %p4222_p3, 1, 0 }
  0x35   : > { %p2955_p5 = pneg %p4222_p3 }
  0x36   : > { %5129 = sst [smem:[#allocation62_spill]] %s5128_s1 }
  0x37   : > { %p4231_p6 = pnand %p2955_p5, %p5089_p1 }
  0x39   : > { %s3207_s25 = scalar_lea.hbm %s5131_s7, 192  ;;  %p4247_p8 = pneg %p4231_p6 }
  0x3a   : > { %p3208_p7 = scmp.ne.s32.totalorder %s5131_s7, %s3207_s25  ;;  %p3214_p11 = scmp.lt.u32.totalorder %s3207_s25, %s5131_s7 }
  0x3c   : > { %p3210_p9 = pnand %p4247_p8, %p3208_p7 }
  0x3e   : > { %p3211_p10 = pneg %p3210_p9 }
  0x40   : > { %p3216_p12 = pnand %p3214_p11, %p3211_p10 }
  0x42   : > { %3219 = shalt.err (!%p3216_p12)
}
  0x43   : > { %s3220_s29 = scalar_lea.vmem %s4220_s3, 192  ;;  %p3228_p5 = scmp.lt.s32.totalorder %s4220_s3, %s4220_s3 }
  0x44   : > { %p3221_p13 = scmp.ne.s32.totalorder %s4220_s3, %s3220_s29  ;;  %p3229_p4 = scmp.lt.s32.totalorder %s3220_s29, %s3220_s29 }
  0x46   : > { %p3223_p0 = pnand %p3221_p13, %p4247_p8  ;;  %p3230_p7 = por %p3229_p4, %p3228_p5 }
  0x48   : > { %p3224_p2 = pneg %p3223_p0 }
  0x4a   : > { %p3231_p9 = pnand %p3230_p7, %p3224_p2 }
  0x4c   : > { %3234 = shalt.err (!%p3231_p9)
}
  0x4d   : > { %s5085_s1 = smov 64   ;;  %s5087_s25 = smov 4  }
  0x4e   : > { %2958 = dma.hbm_to_vmem [thread:$0]  (!%p4231_p6), %s5131_s7, 192, %s4220_s3, [#allocation6], %s5085_s1, %s5085_s1, %s5087_s25  }
  0x4f   : > { %s5133_s2 = sld [smem:[#allocation66_spill]] }
  0x55   : > { %s5134_s24 = smov %s5133_s2  ;;  %s3235_s29 = scalar_lea.hbm %s5133_s2, 16 }
  0x56   : > { %p3236_p4 = scmp.ne.s32.totalorder %s5134_s24, %s3235_s29  ;;  %p3242_p12 = scmp.lt.u32.totalorder %s3235_s29, %s5134_s24 }
  0x58   : > { %p3238_p10 = pnand %p3236_p4, %p4247_p8 }
  0x5a   : > { %p3239_p11 = pneg %p3238_p10 }
  0x5c   : > { %p3244_p13 = pnand %p3242_p12, %p3239_p11 }
  0x5e   : > { %3247 = shalt.err (!%p3244_p13)
}
  0x5f   : > { %s3248_s3 = scalar_lea.vmem %s4235_s27, 16  ;;  %s3255_s2 = scalar_lea.vmem %s4235_s27, 32 }
  0x60   : > { %p3249_p0 = scmp.ne.s32.totalorder %s4235_s27, %s3248_s3  ;;  %p3256_p7 = scmp.lt.s32.totalorder %s4235_s27, %s4235_s27 }
  0x61   : > { %p3257_p9 = scmp.lt.s32.totalorder %s3255_s2, %s3248_s3 }
  0x62   : > { %p3251_p2 = pnand %p3249_p0, %p4247_p8 }
  0x63   : > { %p3258_p4 = por %p3257_p9, %p3256_p7 }
  0x64   : > { %p3252_p5 = pneg %p3251_p2 }
  0x66   : > { %p3259_p10 = pnand %p3258_p4, %p3252_p5 }
  0x68   : > { %3262 = shalt.err (!%p3259_p10)
}
  0x69   : > { %2961 = dma.hbm_to_vmem [thread:$0]  (!%p4231_p6), %s5134_s24, 16, %s4235_s27, [#allocation9]  }
  0x6a   : > { %s5135_s26 = sld [smem:[#allocation68_spill]] }
  0x70   : > { %s3263_s5 = scalar_lea.hbm %s5135_s26, 16 }
  0x71   : > { %p3264_p11 = scmp.ne.s32.totalorder %s5135_s26, %s3263_s5  ;;  %p3270_p0 = scmp.lt.u32.totalorder %s3263_s5, %s5135_s26 }
  0x73   : > { %p3266_p12 = pnand %p3264_p11, %p4247_p8 }
  0x75   : > { %p3267_p13 = pneg %p3266_p12 }
  0x77   : > { %p3272_p2 = pnand %p3270_p0, %p3267_p13 }
  0x79   : > { %3275 = shalt.err (!%p3272_p2)
}
  0x7a   : > { %s3276_s27 = scalar_lea.vmem %s4237_s9, 16  ;;  %s3283_s2 = scalar_lea.vmem %s4237_s9, 32 }
  0x7b   : > { %p3277_p5 = scmp.ne.s32.totalorder %s4237_s9, %s3276_s27  ;;  %p3284_p4 = scmp.lt.s32.totalorder %s4237_s9, %s4237_s9 }
  0x7c   : > { %p3285_p10 = scmp.lt.s32.totalorder %s3283_s2, %s3276_s27 }
  0x7d   : > { %p3279_p7 = pnand %p3277_p5, %p4247_p8 }
  0x7e   : > { %p3286_p11 = por %p3285_p10, %p3284_p4 }
  0x7f   : > { %p3280_p9 = pneg %p3279_p7 }
  0x81   : > { %p3287_p12 = pnand %p3286_p11, %p3280_p9 }
  0x83   : > { %3290 = shalt.err (!%p3287_p12)
}
  0x84   : > { %2967 = dma.hbm_to_vmem [thread:$0]  (!%p4231_p6), %s5135_s26, 16, %s4237_s9, [#allocation12]  }
  0x85   : > { %s4036_s6 = smov [#allocation14]   ;;  %s4037_s5 = smov [#allocation17]  }
  0x86   : > { %s695_s30 = sshll.u32 %s4036_s6, 4  ;;  %s719_s0 = sshll.u32 %s4037_s5, 4  ;;  %s696_s30 = int_to_ptr.vmem [resolvable:$true] %s695_s30  ;;  %s720_s0 = int_to_ptr.vmem [resolvable:$true] %s719_s0 }
  0x87   : > { %s5136_s3 = sld [smem:[#allocation70_spill]] }
  0x8d   : > { %s3291_s27 = scalar_lea.hbm %s5136_s3, 16 }
  0x8e   : > { %p3292_p13 = scmp.ne.s32.totalorder %s5136_s3, %s3291_s27  ;;  %p3298_p5 = scmp.lt.u32.totalorder %s3291_s27, %s5136_s3 }
  0x90   : > { %p3294_p0 = pnand %p3292_p13, %p4247_p8 }
  0x92   : > { %p3295_p2 = pneg %p3294_p0 }
  0x94   : > { %p3300_p7 = pnand %p3298_p5, %p3295_p2 }
  0x96   : > { %3303 = shalt.err (!%p3300_p7)
}
  0x97   : > { %s3304_s9 = scalar_lea.vmem %s696_s30, 16  ;;  %s3311_s22 = scalar_lea.vmem %s696_s30, 32 }
  0x98   : > { %p3305_p9 = scmp.ne.s32.totalorder %s696_s30, %s3304_s9  ;;  %p3312_p11 = scmp.lt.s32.totalorder %s696_s30, %s696_s30 }
  0x99   : > { %p3313_p12 = scmp.lt.s32.totalorder %s3311_s22, %s3304_s9 }
  0x9a   : > { %p3307_p4 = pnand %p3305_p9, %p4247_p8 }
  0x9b   : > { %p3314_p1 = por %p3313_p12, %p3312_p11 }
  0x9c   : > { %p3308_p10 = pneg %p3307_p4 }
  0x9e   : > { %p3315_p3 = pnand %p3314_p1, %p3308_p10 }
  0xa0   : > { %3318 = shalt.err (!%p3315_p3)
}
  0xa1   : > { %2973 = dma.hbm_to_vmem [thread:$0]  (!%p4231_p6), %s5136_s3, 16, %s696_s30, [#allocation15]  }
  0xa2   : > { %s5137_s28 = sld [smem:[#allocation72_spill]] }
  0xa8   : > { %s3319_s29 = scalar_lea.hbm %s5137_s28, 16 }
  0xa9   : > { %p3320_p13 = scmp.ne.s32.totalorder %s5137_s28, %s3319_s29  ;;  %p3326_p3 = scmp.lt.u32.totalorder %s3319_s29, %s5137_s28 }
  0xab   : > { %p3322_p0 = pnand %p3320_p13, %p4247_p8 }
  0xad   : > { %p3323_p1 = pneg %p3322_p0 }
  0xaf   : > { %p3328_p2 = pnand %p3326_p3, %p3323_p1 }
  0xb1   : > { %3331 = shalt.err (!%p3328_p2)
}
  0xb2   : > { %s3332_s22 = scalar_lea.vmem %s720_s0, 16  ;;  %s3339_s30 = scalar_lea.vmem %s720_s0, 32 }
  0xb3   : > { %p3333_p5 = scmp.ne.s32.totalorder %s720_s0, %s3332_s22  ;;  %p3340_p4 = scmp.lt.s32.totalorder %s720_s0, %s720_s0 }
  0xb4   : > { %p3341_p10 = scmp.lt.s32.totalorder %s3339_s30, %s3332_s22 }
  0xb5   : > { %p3335_p7 = pnand %p3333_p5, %p4247_p8 }
  0xb6   : > { %p3342_p11 = por %p3341_p10, %p3340_p4 }
  0xb7   : > { %p3336_p9 = pneg %p3335_p7 }
  0xb9   : > { %p3343_p12 = pnand %p3342_p11, %p3336_p9 }
  0xbb   : > { %3346 = shalt.err (!%p3343_p12)
}
  0xbc   : > { %2979 = dma.hbm_to_vmem [thread:$0]  (!%p4231_p6), %s5137_s28, 16, %s720_s0, [#allocation18]  }
  0xbd   : > { %s4038_s25 = smov [#allocation20]   ;;  %s4039_s29 = smov [#allocation23]  }
  0xbe   : > { %s741_s5 = sshll.u32 %s4038_s25, 4  ;;  %s763_s27 = sshll.u32 %s4039_s29, 4  ;;  %s742_s5 = int_to_ptr.vmem [resolvable:$true] %s741_s5  ;;  %s764_s27 = int_to_ptr.vmem [resolvable:$true] %s763_s27 }
  0xbf   : > { %s5138_s11 = sld [smem:[#allocation74_spill]] }
  0xc5   : > { %s3347_s9 = scalar_lea.hbm %s5138_s11, 16 }
  0xc6   : > { %p3348_p13 = scmp.ne.s32.totalorder %s5138_s11, %s3347_s9  ;;  %p3354_p3 = scmp.lt.u32.totalorder %s3347_s9, %s5138_s11 }
  0xc8   : > { %p3350_p0 = pnand %p3348_p13, %p4247_p8 }
  0xca   : > { %p3351_p1 = pneg %p3350_p0 }
  0xcc   : > { %p3356_p2 = pnand %p3354_p3, %p3351_p1 }
  0xce   : > { %3359 = shalt.err (!%p3356_p2)
}
  0xcf   : > { %s3360_s0 = scalar_lea.vmem %s742_s5, 16  ;;  %s3367_s6 = scalar_lea.vmem %s742_s5, 32 }
  0xd0   : > { %p3361_p5 = scmp.ne.s32.totalorder %s742_s5, %s3360_s0  ;;  %p3368_p4 = scmp.lt.s32.totalorder %s742_s5, %s742_s5 }
  0xd1   : > { %p3369_p10 = scmp.lt.s32.totalorder %s3367_s6, %s3360_s0 }
  0xd2   : > { %p3363_p7 = pnand %p3361_p5, %p4247_p8 }
  0xd3   : > { %p3370_p11 = por %p3369_p10, %p3368_p4 }
  0xd4   : > { %p3364_p9 = pneg %p3363_p7 }
  0xd6   : > { %p3371_p12 = pnand %p3370_p11, %p3364_p9 }
  0xd8   : > { %3374 = shalt.err (!%p3371_p12)
}
  0xd9   : > { %2985 = dma.hbm_to_vmem [thread:$0]  (!%p4231_p6), %s5138_s11, 16, %s742_s5, [#allocation21]  }
  0xda   : > { %s5139_s13 = sld [smem:[#allocation76_spill]] }
  0xe0   : > { %s3375_s20 = scalar_lea.hbm %s5139_s13, 16 }
  0xe1   : > { %p3376_p13 = scmp.ne.s32.totalorder %s5139_s13, %s3375_s20  ;;  %p3382_p3 = scmp.lt.u32.totalorder %s3375_s20, %s5139_s13 }
  0xe3   : > { %p3378_p0 = pnand %p3376_p13, %p4247_p8 }
  0xe5   : > { %p3379_p1 = pneg %p3378_p0 }
  0xe7   : > { %p3384_p2 = pnand %p3382_p3, %p3379_p1 }
  0xe9   : > { %3387 = shalt.err (!%p3384_p2)
}
  0xea   : > { %s3388_s0 = scalar_lea.vmem %s764_s27, 16  ;;  %s3395_s5 = scalar_lea.vmem %s764_s27, 32 }
  0xeb   : > { %p3389_p5 = scmp.ne.s32.totalorder %s764_s27, %s3388_s0  ;;  %p3396_p4 = scmp.lt.s32.totalorder %s764_s27, %s764_s27 }
  0xec   : > { %p3397_p10 = scmp.lt.s32.totalorder %s3395_s5, %s3388_s0 }
  0xed   : > { %p3391_p7 = pnand %p3389_p5, %p4247_p8 }
  0xee   : > { %p3398_p11 = por %p3397_p10, %p3396_p4 }
  0xef   : > { %p3392_p9 = pneg %p3391_p7 }
  0xf1   : > { %p3399_p12 = pnand %p3398_p11, %p3392_p9 }
  0xf3   : > { %3402 = shalt.err (!%p3399_p12)
}
  0xf4   : > { %2991 = dma.hbm_to_vmem [thread:$0]  (!%p4231_p6), %s5139_s13, 16, %s764_s27, [#allocation24]  }
  0xf5   : > { %s4040_s29 = smov [#allocation26]   ;;  %s4041_s2 = smov [#allocation29]  }
  0xf6   : > { %s787_s3 = sshll.u32 %s4040_s29, 4  ;;  %s811_s20 = sshll.u32 %s4041_s2, 4  ;;  %s788_s3 = int_to_ptr.vmem [resolvable:$true] %s787_s3  ;;  %s812_s20 = int_to_ptr.vmem [resolvable:$true] %s811_s20 }
  0xf7   : > { %s5140_s15 = sld [smem:[#allocation78_spill]] }
  0xfd   : > { %s3403_s30 = scalar_lea.hbm %s5140_s15, 16 }
  0xfe   : > { %p3404_p13 = scmp.ne.s32.totalorder %s5140_s15, %s3403_s30  ;;  %p3410_p3 = scmp.lt.u32.totalorder %s3403_s30, %s5140_s15 }
 0x100   : > { %p3406_p0 = pnand %p3404_p13, %p4247_p8 }
 0x102   : > { %p3407_p1 = pneg %p3406_p0 }
 0x104   : > { %p3412_p2 = pnand %p3410_p3, %p3407_p1 }
 0x106   : > { %3415 = shalt.err (!%p3412_p2)
}
 0x107   : > { %s3416_s27 = scalar_lea.vmem %s788_s3, 16  ;;  %s3423_s25 = scalar_lea.vmem %s788_s3, 32 }
 0x108   : > { %p3417_p5 = scmp.ne.s32.totalorder %s788_s3, %s3416_s27  ;;  %p3424_p4 = scmp.lt.s32.totalorder %s788_s3, %s788_s3 }
 0x109   : > { %p3425_p10 = scmp.lt.s32.totalorder %s3423_s25, %s3416_s27 }
 0x10a   : > { %p3419_p7 = pnand %p3417_p5, %p4247_p8 }
 0x10b   : > { %p3426_p11 = por %p3425_p10, %p3424_p4 }
 0x10c   : > { %p3420_p9 = pneg %p3419_p7 }
 0x10e   : > { %p3427_p12 = pnand %p3426_p11, %p3420_p9 }
 0x110   : > { %3430 = shalt.err (!%p3427_p12)
}
 0x111   : > { %2997 = dma.hbm_to_vmem [thread:$0]  (!%p4231_p6), %s5140_s15, 16, %s788_s3, [#allocation27]  }
 0x112   : > { %s5141_s17 = sld [smem:[#allocation80_spill]] }
 0x118   : > { %s3431_s30 = scalar_lea.hbm %s5141_s17, 16 }
 0x119   : > { %p3432_p13 = scmp.ne.s32.totalorder %s5141_s17, %s3431_s30  ;;  %p3438_p3 = scmp.lt.u32.totalorder %s3431_s30, %s5141_s17 }
 0x11b   : > { %p3434_p0 = pnand %p3432_p13, %p4247_p8 }
 0x11d   : > { %p3435_p1 = pneg %p3434_p0 }
 0x11f   : > { %p3440_p2 = pnand %p3438_p3, %p3435_p1 }
 0x121   : > { %3443 = shalt.err (!%p3440_p2)
}
 0x122   : > { %s3444_s27 = scalar_lea.vmem %s812_s20, 16  ;;  %s3451_s3 = scalar_lea.vmem %s812_s20, 32 }
 0x123   : > { %p3445_p5 = scmp.ne.s32.totalorder %s812_s20, %s3444_s27  ;;  %p3452_p4 = scmp.lt.s32.totalorder %s812_s20, %s812_s20 }
 0x124   : > { %p3453_p10 = scmp.lt.s32.totalorder %s3451_s3, %s3444_s27 }
 0x125   : > { %p3447_p7 = pnand %p3445_p5, %p4247_p8 }
 0x126   : > { %p3454_p11 = por %p3453_p10, %p3452_p4 }
 0x127   : > { %p3448_p9 = pneg %p3447_p7 }
 0x129   : > { %p3455_p12 = pnand %p3454_p11, %p3448_p9 }
 0x12b   : > { %3458 = shalt.err (!%p3455_p12)
}
 0x12c   : > { %3003 = dma.hbm_to_vmem [thread:$0]  (!%p4231_p6), %s5141_s17, 16, %s812_s20, [#allocation30]  }
 0x12d   : > { %s4042_s2 = smov [#allocation32]   ;;  %s4043_s22 = smov [#allocation35]  }
 0x12e   : > { %s834_s9 = sshll.u32 %s4042_s2, 4  ;;  %s860_s30 = sshll.u32 %s4043_s22, 4  ;;  %s835_s9 = int_to_ptr.vmem [resolvable:$true] %s834_s9  ;;  %s861_s30 = int_to_ptr.vmem [resolvable:$true] %s860_s30 }
 0x12f   : > { %s5142_s19 = sld [smem:[#allocation82_spill]] }
 0x135   : > { %s3459_s5 = scalar_lea.hbm %s5142_s19, 256 }
 0x136   : > { %p3460_p13 = scmp.ne.s32.totalorder %s5142_s19, %s3459_s5  ;;  %p3466_p3 = scmp.lt.u32.totalorder %s3459_s5, %s5142_s19 }
 0x138   : > { %p3462_p0 = pnand %p3460_p13, %p4247_p8 }
 0x13a   : > { %p3463_p1 = pneg %p3462_p0 }
 0x13c   : > { %p3468_p2 = pnand %p3466_p3, %p3463_p1 }
 0x13e   : > { %3471 = shalt.err (!%p3468_p2)
}
 0x13f   : > { %s3472_s20 = scalar_lea.vmem %s835_s9, 256  ;;  %p3480_p4 = scmp.lt.s32.totalorder %s835_s9, %s835_s9 }
 0x140   : > { %p3473_p5 = scmp.ne.s32.totalorder %s835_s9, %s3472_s20  ;;  %p3481_p10 = scmp.lt.s32.totalorder %s3472_s20, %s3472_s20 }
 0x142   : > { %p3475_p7 = pnand %p3473_p5, %p4247_p8  ;;  %p3482_p11 = por %p3481_p10, %p3480_p4 }
 0x144   : > { %p3476_p9 = pneg %p3475_p7 }
 0x146   : > { %p3483_p12 = pnand %p3482_p11, %p3476_p9 }
 0x148   : > { %3486 = shalt.err (!%p3483_p12)
}
 0x149   : > { %s5143_s29 = smov 4   ;;  %s5144_s2 = smov 64  }
 0x14a   : > { %3009 = dma.hbm_to_vmem [thread:$0]  (!%p4231_p6), %s5142_s19, 256, %s835_s9, [#allocation33], %s5144_s2, %s5144_s2, %s5143_s29  }
 0x14b   : > { %s3487_s6 = scalar_lea.hbm %s5058_s21, 128 }
 0x14c   : > { %p3488_p13 = scmp.ne.s32.totalorder %s5058_s21, %s3487_s6  ;;  %p3494_p3 = scmp.lt.u32.totalorder %s3487_s6, %s5058_s21 }
 0x14e   : > { %p3490_p0 = pnand %p3488_p13, %p4247_p8 }
 0x150   : > { %p3491_p1 = pneg %p3490_p0 }
 0x152   : > { %p3496_p2 = pnand %p3494_p3, %p3491_p1 }
 0x154   : > { %3499 = shalt.err (!%p3496_p2)
}
 0x155   : > { %s3500_s22 = scalar_lea.vmem %s861_s30, 128  ;;  %p3508_p4 = scmp.lt.s32.totalorder %s861_s30, %s861_s30 }
 0x156   : > { %p3501_p5 = scmp.ne.s32.totalorder %s861_s30, %s3500_s22  ;;  %p3509_p10 = scmp.lt.s32.totalorder %s3500_s22, %s3500_s22 }
 0x158   : > { %p3503_p7 = pnand %p3501_p5, %p4247_p8  ;;  %p3510_p11 = por %p3509_p10, %p3508_p4 }
 0x15a   : > { %p3504_p9 = pneg %p3503_p7 }
 0x15c   : > { %p3511_p12 = pnand %p3510_p11, %p3504_p9 }
 0x15e   : > { %3514 = shalt.err (!%p3511_p12)
}
 0x15f   : > { %3015 = dma.hbm_to_vmem [thread:$0]  (!%p4231_p6), %s5058_s21, 128, %s861_s30, [#allocation36], %s5144_s2, %s5144_s2, %s5143_s29  }
 0x160   : > { %s4044_s0 = smov [#allocation38]   ;;  %s4045_s6 = smov [#allocation10]  }
 0x161   : > { %s886_s5 = sshll.u32 %s4044_s0, 4  ;;  %s657_s27 = sshll.u32 %s4045_s6, 4  ;;  %s887_s5 = int_to_ptr.vmem [resolvable:$true] %s886_s5  ;;  %s658_s27 = int_to_ptr.vmem [resolvable:$true] %s657_s27 }
 0x162   : > { %s3515_s20 = scalar_lea.hbm %s5060_s23, 256 }
 0x163   : > { %p3516_p13 = scmp.ne.s32.totalorder %s5060_s23, %s3515_s20  ;;  %p3522_p3 = scmp.lt.u32.totalorder %s3515_s20, %s5060_s23 }
 0x165   : > { %p3518_p0 = pnand %p3516_p13, %p4247_p8 }
 0x167   : > { %p3519_p1 = pneg %p3518_p0 }
 0x169   : > { %p3524_p2 = pnand %p3522_p3, %p3519_p1 }
 0x16b   : > { %3527 = shalt.err (!%p3524_p2)
}
 0x16c   : > { %s3528_s30 = scalar_lea.vmem %s887_s5, 256  ;;  %p3536_p4 = scmp.lt.s32.totalorder %s887_s5, %s887_s5 }
 0x16d   : > { %p3529_p5 = scmp.ne.s32.totalorder %s887_s5, %s3528_s30  ;;  %p3537_p10 = scmp.lt.s32.totalorder %s3528_s30, %s3528_s30 }
 0x16f   : > { %p3531_p7 = pnand %p3529_p5, %p4247_p8  ;;  %p3538_p11 = por %p3537_p10, %p3536_p4 }
 0x171   : > { %p3532_p9 = pneg %p3531_p7 }
 0x173   : > { %p3539_p12 = pnand %p3538_p11, %p3532_p9 }
 0x175   : > { %3542 = shalt.err (!%p3539_p12)
}
 0x176   : > { %3021 = dma.hbm_to_vmem [thread:$0]  (!%p4231_p6), %s5060_s23, 256, %s887_s5, [#allocation39], %s5144_s2, %s5144_s2, %s5143_s29  }
 0x177   : > { %s5145_s6 = sld [smem:[#allocation67_spill]] }
 0x17d   : > { %s5146_s3 = smov %s5145_s6  ;;  %s3543_s25 = scalar_lea.hbm %s5145_s6, 128 }
 0x17e   : > { %p3544_p13 = scmp.ne.s32.totalorder %s5146_s3, %s3543_s25  ;;  %p3550_p3 = scmp.lt.u32.totalorder %s3543_s25, %s5146_s3 }
 0x180   : > { %p3546_p0 = pnand %p3544_p13, %p4247_p8 }
 0x182   : > { %p3547_p1 = pneg %p3546_p0 }
 0x184   : > { %p3552_p2 = pnand %p3550_p3, %p3547_p1 }
 0x186   : > { %3555 = shalt.err (!%p3552_p2)
}
 0x187   : > { %s3556_s11 = scalar_lea.vmem %s658_s27, 128  ;;  %p3564_p4 = scmp.lt.s32.totalorder %s658_s27, %s658_s27 }
 0x188   : > { %p3557_p5 = scmp.ne.s32.totalorder %s658_s27, %s3556_s11  ;;  %p3565_p10 = scmp.lt.s32.totalorder %s3556_s11, %s3556_s11 }
 0x18a   : > { %p3559_p7 = pnand %p3557_p5, %p4247_p8  ;;  %p3566_p11 = por %p3565_p10, %p3564_p4 }
 0x18c   : > { %p3560_p9 = pneg %p3559_p7 }
 0x18e   : > { %p3567_p12 = pnand %p3566_p11, %p3560_p9 }
 0x190   : > { %3570 = shalt.err (!%p3567_p12)
}
 0x191   : > { %2964 = dma.hbm_to_vmem [thread:$0]  (!%p4231_p6), %s5146_s3, 128, %s658_s27, [#allocation9], %s5144_s2, %s5144_s2, %s5143_s29  }
 0x192   : > { %s4046_s1 = smov [#allocation13]   ;;  %s4047_s6 = smov [#allocation16]  }
 0x193   : > { %s681_s0 = sshll.u32 %s4046_s1, 4  ;;  %s705_s25 = sshll.u32 %s4047_s6, 4  ;;  %s682_s0 = int_to_ptr.vmem [resolvable:$true] %s681_s0  ;;  %s706_s25 = int_to_ptr.vmem [resolvable:$true] %s705_s25 }
 0x194   : > { %s5147_s9 = sld [smem:[#allocation69_spill]] }
 0x19a   : > { %s3571_s30 = scalar_lea.hbm %s5147_s9, 256 }
 0x19b   : > { %p3572_p13 = scmp.ne.s32.totalorder %s5147_s9, %s3571_s30  ;;  %p3578_p3 = scmp.lt.u32.totalorder %s3571_s30, %s5147_s9 }
 0x19d   : > { %p3574_p0 = pnand %p3572_p13, %p4247_p8 }
 0x19f   : > { %p3575_p1 = pneg %p3574_p0 }
 0x1a1   : > { %p3580_p2 = pnand %p3578_p3, %p3575_p1 }
 0x1a3   : > { %3583 = shalt.err (!%p3580_p2)
}
 0x1a4   : > { %s3584_s27 = scalar_lea.vmem %s682_s0, 256  ;;  %p3592_p4 = scmp.lt.s32.totalorder %s682_s0, %s682_s0 }
 0x1a5   : > { %p3585_p5 = scmp.ne.s32.totalorder %s682_s0, %s3584_s27  ;;  %p3593_p10 = scmp.lt.s32.totalorder %s3584_s27, %s3584_s27 }
 0x1a7   : > { %p3587_p7 = pnand %p3585_p5, %p4247_p8  ;;  %p3594_p11 = por %p3593_p10, %p3592_p4 }
 0x1a9   : > { %p3588_p9 = pneg %p3587_p7 }
 0x1ab   : > { %p3595_p12 = pnand %p3594_p11, %p3588_p9 }
 0x1ad   : > { %3598 = shalt.err (!%p3595_p12)
}
 0x1ae   : > { %2970 = dma.hbm_to_vmem [thread:$0]  (!%p4231_p6), %s5147_s9, 256, %s682_s0, [#allocation12], %s5144_s2, %s5144_s2, %s5143_s29  }
 0x1af   : > { %s5148_s6 = sld [smem:[#allocation71_spill]] }
 0x1b5   : > { %s5149_s20 = smov %s5148_s6  ;;  %s3599_s22 = scalar_lea.hbm %s5148_s6, 256 }
 0x1b6   : > { %p3600_p13 = scmp.ne.s32.totalorder %s5149_s20, %s3599_s22  ;;  %p3606_p3 = scmp.lt.u32.totalorder %s3599_s22, %s5149_s20 }
 0x1b8   : > { %p3602_p0 = pnand %p3600_p13, %p4247_p8 }
 0x1ba   : > { %p3603_p1 = pneg %p3602_p0 }
 0x1bc   : > { %p3608_p2 = pnand %p3606_p3, %p3603_p1 }
 0x1be   : > { %3611 = shalt.err (!%p3608_p2)
}
 0x1bf   : > { %s3612_s13 = scalar_lea.vmem %s706_s25, 256  ;;  %p3620_p4 = scmp.lt.s32.totalorder %s706_s25, %s706_s25 }
 0x1c0   : > { %p3613_p5 = scmp.ne.s32.totalorder %s706_s25, %s3612_s13  ;;  %p3621_p10 = scmp.lt.s32.totalorder %s3612_s13, %s3612_s13 }
 0x1c2   : > { %p3615_p7 = pnand %p3613_p5, %p4247_p8  ;;  %p3622_p11 = por %p3621_p10, %p3620_p4 }
 0x1c4   : > { %p3616_p9 = pneg %p3615_p7 }
 0x1c6   : > { %p3623_p12 = pnand %p3622_p11, %p3616_p9 }
 0x1c8   : > { %3626 = shalt.err (!%p3623_p12)
}
 0x1c9   : > { %2976 = dma.hbm_to_vmem [thread:$0]  (!%p4231_p6), %s5149_s20, 256, %s706_s25, [#allocation15], %s5144_s2, %s5144_s2, %s5143_s29  }
 0x1ca   : > { %s4048_s7 = smov [#allocation19]   ;;  %s4049_s6 = smov [#allocation22]  }
 0x1cb   : > { %s730_s1 = sshll.u32 %s4048_s7, 4  ;;  %s752_s22 = sshll.u32 %s4049_s6, 4  ;;  %s731_s1 = int_to_ptr.vmem [resolvable:$true] %s730_s1  ;;  %s753_s22 = int_to_ptr.vmem [resolvable:$true] %s752_s22 }
 0x1cc   : > { %s5150_s10 = sld [smem:[#allocation73_spill]] }
 0x1d2   : > { %s3627_s5 = scalar_lea.hbm %s5150_s10, 16 }
 0x1d3   : > { %p3628_p13 = scmp.ne.s32.totalorder %s5150_s10, %s3627_s5  ;;  %p3634_p3 = scmp.lt.u32.totalorder %s3627_s5, %s5150_s10 }
 0x1d5   : > { %p3630_p0 = pnand %p3628_p13, %p4247_p8 }
 0x1d7   : > { %p3631_p1 = pneg %p3630_p0 }
 0x1d9   : > { %p3636_p2 = pnand %p3634_p3, %p3631_p1 }
 0x1db   : > { %3639 = shalt.err (!%p3636_p2)
}
 0x1dc   : > { %s3640_s25 = scalar_lea.vmem %s731_s1, 16  ;;  %s3647_s15 = scalar_lea.vmem %s731_s1, 32 }
 0x1dd   : > { %p3641_p5 = scmp.ne.s32.totalorder %s731_s1, %s3640_s25  ;;  %p3648_p4 = scmp.lt.s32.totalorder %s731_s1, %s731_s1 }
 0x1de   : > { %p3649_p10 = scmp.lt.s32.totalorder %s3647_s15, %s3640_s25 }
 0x1df   : > { %p3643_p7 = pnand %p3641_p5, %p4247_p8 }
 0x1e0   : > { %p3650_p11 = por %p3649_p10, %p3648_p4 }
 0x1e1   : > { %p3644_p9 = pneg %p3643_p7 }
 0x1e3   : > { %p3651_p12 = pnand %p3650_p11, %p3644_p9 }
 0x1e5   : > { %3654 = shalt.err (!%p3651_p12)
}
 0x1e6   : > { %2982 = dma.hbm_to_vmem [thread:$0]  (!%p4231_p6), %s5150_s10, 16, %s731_s1, [#allocation18]  }
 0x1e7   : > { %s5151_s12 = sld [smem:[#allocation75_spill]] }
 0x1ed   : > { %s3655_s11 = scalar_lea.hbm %s5151_s12, 16 }
 0x1ee   : > { %p3656_p13 = scmp.ne.s32.totalorder %s5151_s12, %s3655_s11  ;;  %p3662_p3 = scmp.lt.u32.totalorder %s3655_s11, %s5151_s12 }
 0x1f0   : > { %p3658_p0 = pnand %p3656_p13, %p4247_p8 }
 0x1f2   : > { %p3659_p1 = pneg %p3658_p0 }
 0x1f4   : > { %p3664_p2 = pnand %p3662_p3, %p3659_p1 }
 0x1f6   : > { %3667 = shalt.err (!%p3664_p2)
}
 0x1f7   : > { %s3668_s25 = scalar_lea.vmem %s753_s22, 16  ;;  %s3675_s1 = scalar_lea.vmem %s753_s22, 32 }
 0x1f8   : > { %p3669_p5 = scmp.ne.s32.totalorder %s753_s22, %s3668_s25  ;;  %p3676_p4 = scmp.lt.s32.totalorder %s753_s22, %s753_s22 }
 0x1f9   : > { %p3677_p10 = scmp.lt.s32.totalorder %s3675_s1, %s3668_s25 }
 0x1fa   : > { %p3671_p7 = pnand %p3669_p5, %p4247_p8 }
 0x1fb   : > { %p3678_p11 = por %p3677_p10, %p3676_p4 }
 0x1fc   : > { %p3672_p9 = pneg %p3671_p7 }
 0x1fe   : > { %p3679_p12 = pnand %p3678_p11, %p3672_p9 }
 0x200   : > { %3682 = shalt.err (!%p3679_p12)
}
 0x201   : > { %2988 = dma.hbm_to_vmem [thread:$0]  (!%p4231_p6), %s5151_s12, 16, %s753_s22, [#allocation21]  }
 0x202   : > { %s4050_s6 = smov [#allocation25]   ;;  %s4051_s30 = smov [#allocation28]  }
 0x203   : > { %s773_s3 = sshll.u32 %s4050_s6, 4  ;;  %s797_s11 = sshll.u32 %s4051_s30, 4  ;;  %s774_s3 = int_to_ptr.vmem [resolvable:$true] %s773_s3  ;;  %s798_s11 = int_to_ptr.vmem [resolvable:$true] %s797_s11 }
 0x204   : > { %s5152_s14 = sld [smem:[#allocation77_spill]] }
 0x20a   : > { %s3683_s13 = scalar_lea.hbm %s5152_s14, 256 }
 0x20b   : > { %p3684_p13 = scmp.ne.s32.totalorder %s5152_s14, %s3683_s13  ;;  %p3690_p3 = scmp.lt.u32.totalorder %s3683_s13, %s5152_s14 }
 0x20d   : > { %p3686_p0 = pnand %p3684_p13, %p4247_p8 }
 0x20f   : > { %p3687_p1 = pneg %p3686_p0 }
 0x211   : > { %p3692_p2 = pnand %p3690_p3, %p3687_p1 }
 0x213   : > { %3695 = shalt.err (!%p3692_p2)
}
 0x214   : > { %s3696_s22 = scalar_lea.vmem %s774_s3, 256  ;;  %p3704_p4 = scmp.lt.s32.totalorder %s774_s3, %s774_s3 }
 0x215   : > { %p3697_p5 = scmp.ne.s32.totalorder %s774_s3, %s3696_s22  ;;  %p3705_p10 = scmp.lt.s32.totalorder %s3696_s22, %s3696_s22 }
 0x217   : > { %p3699_p7 = pnand %p3697_p5, %p4247_p8  ;;  %p3706_p11 = por %p3705_p10, %p3704_p4 }
 0x219   : > { %p3700_p9 = pneg %p3699_p7 }
 0x21b   : > { %p3707_p12 = pnand %p3706_p11, %p3700_p9 }
 0x21d   : > { %3710 = shalt.err (!%p3707_p12)
}
 0x21e   : > { %2994 = dma.hbm_to_vmem [thread:$0]  (!%p4231_p6), %s5152_s14, 256, %s774_s3, [#allocation24], %s5144_s2, %s5144_s2, %s5143_s29  }
 0x21f   : > { %s5153_s16 = sld [smem:[#allocation79_spill]] }
 0x225   : > { %s3711_s27 = scalar_lea.hbm %s5153_s16, 1024 }
 0x226   : > { %p3712_p13 = scmp.ne.s32.totalorder %s5153_s16, %s3711_s27  ;;  %p3718_p3 = scmp.lt.u32.totalorder %s3711_s27, %s5153_s16 }
 0x228   : > { %p3714_p0 = pnand %p3712_p13, %p4247_p8 }
 0x22a   : > { %p3715_p1 = pneg %p3714_p0 }
 0x22c   : > { %p3720_p2 = pnand %p3718_p3, %p3715_p1 }
 0x22e   : > { %3723 = shalt.err (!%p3720_p2)
}
 0x22f   : > { %s3724_s15 = scalar_lea.vmem %s798_s11, 1024  ;;  %p3732_p4 = scmp.lt.s32.totalorder %s798_s11, %s798_s11 }
 0x230   : > { %p3725_p5 = scmp.ne.s32.totalorder %s798_s11, %s3724_s15  ;;  %p3733_p10 = scmp.lt.s32.totalorder %s3724_s15, %s3724_s15 }
 0x232   : > { %p3727_p7 = pnand %p3725_p5, %p4247_p8  ;;  %p3734_p11 = por %p3733_p10, %p3732_p4 }
 0x234   : > { %p3728_p9 = pneg %p3727_p7 }
 0x236   : > { %p3735_p12 = pnand %p3734_p11, %p3728_p9 }
 0x238   : > { %3738 = shalt.err (!%p3735_p12)
}
 0x239   : > { %3000 = dma.hbm_to_vmem [thread:$0]  (!%p4231_p6), %s5153_s16, 1024, %s798_s11, [#allocation27], %s5144_s2, %s5144_s2, %s5143_s29  }
 0x23a   : > { %s4052_s7 = smov [#allocation31]   ;;  %s4053_s30 = smov [#allocation34]  }
 0x23b   : > { %s821_s6 = sshll.u32 %s4052_s7, 4  ;;  %s847_s5 = sshll.u32 %s4053_s30, 4  ;;  %s822_s6 = int_to_ptr.vmem [resolvable:$true] %s821_s6  ;;  %s848_s5 = int_to_ptr.vmem [resolvable:$true] %s847_s5 }
 0x23c   : > { %s5154_s18 = sld [smem:[#allocation81_spill]] }
 0x242   : > { %s3739_s0 = scalar_lea.hbm %s5154_s18, 256 }
 0x243   : > { %p3740_p13 = scmp.ne.s32.totalorder %s5154_s18, %s3739_s0  ;;  %p3746_p3 = scmp.lt.u32.totalorder %s3739_s0, %s5154_s18 }
 0x245   : > { %p3742_p0 = pnand %p3740_p13, %p4247_p8 }
 0x247   : > { %p3743_p1 = pneg %p3742_p0 }
 0x249   : > { %p3748_p2 = pnand %p3746_p3, %p3743_p1 }
 0x24b   : > { %3751 = shalt.err (!%p3748_p2)
}
 0x24c   : > { %s3752_s11 = scalar_lea.vmem %s822_s6, 256  ;;  %p3760_p4 = scmp.lt.s32.totalorder %s822_s6, %s822_s6 }
 0x24d   : > { %p3753_p5 = scmp.ne.s32.totalorder %s822_s6, %s3752_s11  ;;  %p3761_p10 = scmp.lt.s32.totalorder %s3752_s11, %s3752_s11 }
 0x24f   : > { %p3755_p7 = pnand %p3753_p5, %p4247_p8  ;;  %p3762_p11 = por %p3761_p10, %p3760_p4 }
 0x251   : > { %p3756_p9 = pneg %p3755_p7 }
 0x253   : > { %p3763_p12 = pnand %p3762_p11, %p3756_p9 }
 0x255   : > { %3766 = shalt.err (!%p3763_p12)
}
 0x256   : > { %3006 = dma.hbm_to_vmem [thread:$0]  (!%p4231_p6), %s5154_s18, 256, %s822_s6, [#allocation30], %s5144_s2, %s5144_s2, %s5143_s29  }
 0x257   : > { %s5155_s13 = sld [smem:[#allocation83_spill]] }
 0x25d   : > { %s3767_s0 = scalar_lea.hbm %s5155_s13, 1024 }
 0x25e   : > { %p3768_p13 = scmp.ne.s32.totalorder %s5155_s13, %s3767_s0  ;;  %p3774_p3 = scmp.lt.u32.totalorder %s3767_s0, %s5155_s13 }
 0x260   : > { %p3770_p0 = pnand %p3768_p13, %p4247_p8 }
 0x262   : > { %p3771_p1 = pneg %p3770_p0 }
 0x264   : > { %p3776_p2 = pnand %p3774_p3, %p3771_p1 }
 0x266   : > { %3779 = shalt.err (!%p3776_p2)
}
 0x267   : > { %s3780_s11 = scalar_lea.vmem %s848_s5, 1024  ;;  %p3788_p4 = scmp.lt.s32.totalorder %s848_s5, %s848_s5 }
 0x268   : > { %p3781_p5 = scmp.ne.s32.totalorder %s848_s5, %s3780_s11  ;;  %p3789_p10 = scmp.lt.s32.totalorder %s3780_s11, %s3780_s11 }
 0x26a   : > { %p3783_p7 = pnand %p3781_p5, %p4247_p8  ;;  %p3790_p11 = por %p3789_p10, %p3788_p4 }
 0x26c   : > { %p3784_p9 = pneg %p3783_p7 }
 0x26e   : > { %p3791_p12 = pnand %p3790_p11, %p3784_p9 }
 0x270   : > { %3794 = shalt.err (!%p3791_p12)
}
 0x271   : > { %3012 = dma.hbm_to_vmem [thread:$0]  (!%p4231_p6), %s5155_s13, 1024, %s848_s5, [#allocation33], %s5144_s2, %s5144_s2, %s5143_s29  }
 0x272   : > { %s4054_s7 = smov [#allocation37]   ;;  %s4055_s27 = smov [#allocation40]  }
 0x273   : > { %s873_s30 = sshll.u32 %s4054_s7, 4  ;;  %s899_s0 = sshll.u32 %s4055_s27, 4  ;;  %s874_s30 = int_to_ptr.vmem [resolvable:$true] %s873_s30  ;;  %s900_s0 = int_to_ptr.vmem [resolvable:$true] %s899_s0 }
 0x274   : > { %s5156_s15 = sld [smem:[#allocation84_spill]] }
 0x27a   : > { %s3795_s3 = scalar_lea.hbm %s5156_s15, 128 }
 0x27b   : > { %p3796_p13 = scmp.ne.s32.totalorder %s5156_s15, %s3795_s3  ;;  %p3802_p3 = scmp.lt.u32.totalorder %s3795_s3, %s5156_s15 }
 0x27d   : > { %p3798_p0 = pnand %p3796_p13, %p4247_p8 }
 0x27f   : > { %p3799_p1 = pneg %p3798_p0 }
 0x281   : > { %p3804_p2 = pnand %p3802_p3, %p3799_p1 }
 0x283   : > { %3807 = shalt.err (!%p3804_p2)
}
 0x284   : > { %s3808_s5 = scalar_lea.vmem %s874_s30, 128  ;;  %p3816_p4 = scmp.lt.s32.totalorder %s874_s30, %s874_s30 }
 0x285   : > { %p3809_p5 = scmp.ne.s32.totalorder %s874_s30, %s3808_s5  ;;  %p3817_p10 = scmp.lt.s32.totalorder %s3808_s5, %s3808_s5 }
 0x287   : > { %p3811_p7 = pnand %p3809_p5, %p4247_p8  ;;  %p3818_p11 = por %p3817_p10, %p3816_p4 }
 0x289   : > { %p3812_p9 = pneg %p3811_p7 }
 0x28b   : > { %p3819_p12 = pnand %p3818_p11, %p3812_p9 }
 0x28d   : > { %3822 = shalt.err (!%p3819_p12)
}
 0x28e   : > { %3018 = dma.hbm_to_vmem [thread:$0]  (!%p4231_p6), %s5156_s15, 128, %s874_s30, [#allocation36], %s5144_s2, %s5144_s2, %s5143_s29  }
 0x28f   : > { %s5157_s27 = sld [smem:[#allocation85_spill]] }
 0x295   : > { %s3823_s25 = scalar_lea.hbm %s5157_s27, 1024 }
 0x296   : > { %p3824_p13 = scmp.ne.s32.totalorder %s5157_s27, %s3823_s25  ;;  %p3830_p3 = scmp.lt.u32.totalorder %s3823_s25, %s5157_s27 }
 0x298   : > { %p3826_p0 = pnand %p3824_p13, %p4247_p8 }
 0x29a   : > { %p3827_p1 = pneg %p3826_p0 }
 0x29c   : > { %p3832_p2 = pnand %p3830_p3, %p3827_p1 }
 0x29e   : > { %3835 = shalt.err (!%p3832_p2)
}
 0x29f   : > { %s3836_s5 = scalar_lea.vmem %s900_s0, 1024  ;;  %p3844_p4 = scmp.lt.s32.totalorder %s900_s0, %s900_s0 }
 0x2a0   : > { %p3837_p5 = scmp.ne.s32.totalorder %s900_s0, %s3836_s5  ;;  %p3845_p10 = scmp.lt.s32.totalorder %s3836_s5, %s3836_s5 }
 0x2a2   : > { %p3839_p7 = pnand %p3837_p5, %p4247_p8  ;;  %p3846_p11 = por %p3845_p10, %p3844_p4 }
 0x2a4   : > { %p3840_p9 = pneg %p3839_p7 }
 0x2a6   : > { %p3847_p12 = pnand %p3846_p11, %p3840_p9 }
 0x2a8   : > { %3850 = shalt.err (!%p3847_p12)
}
 0x2a9   : > { %s5158_s9 = sld [smem:[#allocation60_spill]]  ;;  %s5159_s22 = sld [smem:[#allocation59_spill]] }
 0x2aa   : > { %s5160_s8 = sld [smem:[#allocation58_spill]]  ;;  %s5161_s7 = sld [smem:[#allocation57_spill]] }
 0x2ab   : > { %s5162_s25 = sld [smem:[#allocation61_spill]]  ;;  %s5169_s14 = sld [smem:[#allocation64_spill]] }
 0x2ac   : > { %3024 = dma.hbm_to_vmem [thread:$0]  (!%p4231_p6), %s5157_s27, 1024, %s900_s0, [#allocation39], %s5144_s2, %s5144_s2, %s5143_s29  }
 0x2af   : > { %s2547_s4 = sadd.s32 4294967294, %s5158_s9   ;;  %s4717_s30 = sadd.s32 1, %s5158_s9  }
 0x2b0   : > { %s62_s1 = sadd.s32 1, %s5159_s22  ;;  %s59_s3 = ssub.s32 %s5158_s9, %s4717_s30 }
 0x2b1   : > { %p69_p8 = scmp.ne.s32.totalorder %s5159_s22, %s5160_s8  ;;  %p60_p13 = scmp.eq.s32.totalorder %s59_s3, 0 }
 0x2b2   : > { %p70_p0 = scmp.eq.s32.totalorder %s5158_s9, 0  ;;  %p75_p1 = scmp.ne.s32.totalorder %s5160_s8, %s5161_s7 }
 0x2b3   : > { %p608_p3 = scmp.eq.s32.totalorder %s5162_s25, 1  ;;  %p5163_p5 = scmp.eq.s32.totalorder %s5162_s25, 0 }
 0x2b4   : > { %s4729_s11 = scalar_select %p60_p13, %s5159_s22, %s62_s1  }
 0x2b5   : > { %p71_p2 = por %p70_p0, %p69_p8  ;;  %p4733_p7 = por %p5163_p5, %p75_p1 }
 0x2b6   : > { %p4737_p6 = por %p608_p3, %p69_p8  ;;  %p614_p9 = scmp.eq.s32.totalorder %s2547_s4, 1 }
 0x2b7   : > { %s5164_s6 = scalar_select %p4733_p7, 1, 0 }
 0x2b8   : > { %s5165_s29 = scalar_select %p4737_p6, 1, 0 }
 0x2b9   : > { %p3059_p4 = scmp.lt.s32.totalorder %s5158_s9, 2  ;;  %s913_s2 = sand.u32 1, %s5159_s22  }
 0x2ba   : > { %p4743_p10 = por %p614_p9, %p75_p1  ;;  %s4747_s5 = sshll.u32 %s913_s2, 3 }
 0x2bb   : > { %s2574_s10 = sshll.u32 %s5158_s9, 7  ;;  %s5167_s25 = sld [smem:[#allocation63_spill]] }
 0x2bc   : > { %s5166_s0 = scalar_select %p4743_p10, 1, 0 }
 0x2bd   : > { %s917_s4 = scalar_lea.vmem [#allocation2], %s4747_s5  ;;  %p4756_p11 = pnand %p3059_p4, %p71_p2 }
 0x2be   : > { %s924_s3 = sshll.u32 %s917_s4, 4  ;;  %s4765_s8 = scalar_lea.hbm %s5169_s14, %s2574_s10  ;;  %s4760_s3 = int_to_ptr.vmem [resolvable:$true] %s924_s3 }
 0x2bf   : > { %s914_s7 = scalar_lea.sflag [#allocation3], %s913_s2  ;;  %p3853_p8 = pneg %p4756_p11 }
 0x2c1   : > { %s4753_s1 = scalar_lea.hbm %s5167_s25, %s2574_s10  ;;  %s3856_s17 = scalar_lea.hbm %s5167_s25, 256 }
 0x2c2   : > { %s3851_s15 = scalar_lea.hbm %s4753_s1, 128  ;;  %p3857_p1 = scmp.lt.u32.totalorder %s4753_s1, %s5167_s25 }
 0x2c3   : > { %p3852_p12 = scmp.ne.s32.totalorder %s4753_s1, %s3851_s15  ;;  %p3858_p3 = scmp.lt.u32.totalorder %s3856_s17, %s3851_s15 }
 0x2c4   : > { %p3860_p5 = scmp.lt.u32.totalorder %s3851_s15, %s4753_s1 }
 0x2c5   : > { %p3854_p13 = pnand %p3853_p8, %p3852_p12  ;;  %p3859_p2 = por %p3858_p3, %p3857_p1 }
 0x2c7   : > { %p3855_p0 = pneg %p3854_p13  ;;  %p3861_p9 = por %p3860_p5, %p3859_p2 }
 0x2c9   : > { %p3862_p4 = pnand %p3861_p9, %p3855_p0 }
 0x2cb   : > { %3865 = shalt.err (!%p3862_p4)
}
 0x2cc   : > { %s3866_s12 = scalar_lea.vmem %s4760_s3, 128  ;;  %s4056_s16 = smov [#allocation2]  }
 0x2cd   : > { %p3867_p12 = scmp.ne.s32.totalorder %s4760_s3, %s3866_s12  ;;  %s3871_s13 = sshll.u32 %s4056_s16, 4  ;;  %s3872_s13 = int_to_ptr.vmem [resolvable:$false] %s3871_s13 }
 0x2ce   : > { %s3873_s18 = scalar_lea.vmem %s3872_s13, 256  ;;  %p3874_p6 = scmp.lt.s32.totalorder %s4760_s3, %s3872_s13 }
 0x2cf   : > { %p3869_p13 = pnand %p3867_p12, %p3853_p8  ;;  %p3875_p1 = scmp.lt.s32.totalorder %s3873_s18, %s3866_s12 }
 0x2d1   : > { %p3870_p10 = pneg %p3869_p13  ;;  %p3876_p3 = por %p3875_p1, %p3874_p6 }
 0x2d3   : > { %p3877_p2 = pnand %p3876_p3, %p3870_p10 }
 0x2d5   : > { %3880 = shalt.err (!%p3877_p2)
}
 0x2d6   : > { %3028 = dma.hbm_to_vmem [thread:$0]  (!%p4756_p11), %s4753_s1, 128, %s4760_s3, %s914_s7  }
 0x2d7   : > { %s931_s17 = sand.u32 1, %s5158_s9   ;;  %s935_s19 = scalar_lea.vmem [#allocation5], %s4747_s5 }
 0x2d8   : > { %s942_s15 = sshll.u32 %s935_s19, 4  ;;  %s932_s2 = scalar_lea.sflag [#allocation6], %s931_s17  ;;  %s943_s15 = int_to_ptr.vmem [resolvable:$true] %s942_s15 }
 0x2d9   : > { %s3881_s10 = scalar_lea.hbm %s4765_s8, 128  ;;  %s3886_s16 = scalar_lea.hbm %s5169_s14, 256 }
 0x2da   : > { %p3882_p6 = scmp.ne.s32.totalorder %s4765_s8, %s3881_s10  ;;  %p3887_p5 = scmp.lt.u32.totalorder %s4765_s8, %s5169_s14 }
 0x2db   : > { %p3888_p9 = scmp.lt.u32.totalorder %s3886_s16, %s3881_s10  ;;  %p3890_p12 = scmp.lt.u32.totalorder %s3881_s10, %s4765_s8 }
 0x2dc   : > { %p3884_p10 = pnand %p3882_p6, %p3853_p8 }
 0x2dd   : > { %p3889_p4 = por %p3888_p9, %p3887_p5 }
 0x2de   : > { %p3885_p0 = pneg %p3884_p10 }
 0x2df   : > { %p3891_p13 = por %p3890_p12, %p3889_p4 }
 0x2e1   : > { %p3892_p1 = pnand %p3891_p13, %p3885_p0 }
 0x2e3   : > { %3895 = shalt.err (!%p3892_p1)
}
 0x2e4   : > { %s3896_s9 = scalar_lea.vmem %s943_s15, 128  ;;  %s4057_s5 = smov [#allocation5]  }
 0x2e5   : > { %p3897_p3 = scmp.ne.s32.totalorder %s943_s15, %s3896_s9  ;;  %s3901_s1 = sshll.u32 %s4057_s5, 4  ;;  %s3902_s1 = int_to_ptr.vmem [resolvable:$false] %s3901_s1 }
 0x2e6   : > { %s3903_s3 = scalar_lea.vmem %s3902_s1, 256  ;;  %p3904_p10 = scmp.lt.s32.totalorder %s943_s15, %s3902_s1 }
 0x2e7   : > { %p3899_p2 = pnand %p3897_p3, %p3853_p8  ;;  %p3905_p7 = scmp.lt.s32.totalorder %s3903_s3, %s3896_s9 }
 0x2e9   : > { %p3900_p6 = pneg %p3899_p2  ;;  %p3906_p5 = por %p3905_p7, %p3904_p10 }
 0x2eb   : > { %p3907_p9 = pnand %p3906_p5, %p3900_p6 }
 0x2ed   : > { %3910 = shalt.err (!%p3907_p9)
}
 0x2ee   : > { %3031 = dma.hbm_to_vmem [thread:$0]  (!%p4756_p11), %s4765_s8, 128, %s943_s15, %s932_s2  }
 0x2ef   : > { %s5170_s7 = sld [smem:[#allocation62_spill]] }
 0x2f5   : > { %p5171_p0 = scmp.ne.s32.totalorder %s5170_s7, 0 }
 0x2f6   : > { %s5172_s17 = sld [smem:[#allocation58_spill]] (!%p5171_p0)  ;;  %p5173_p7 = scmp.ne.s32.totalorder (!%p5171_p0), %s5164_s6, 0 }
 0x2f7   : > { %951 = sbr.rel (%p5171_p0) target bundleno = 4083 (0xff3), region = 120 }
 0x2fc   : > { %s4816_s19 = sand.u32 (!%p5171_p0), 1, %s5172_s17  }
 0x2fd   : > { %s4819_s10 = sshll.u32 (!%p5171_p0), %s4816_s19, 3  ;;  %s954_s4 = scalar_lea.sflag (!%p5171_p0), [#allocation3], %s4816_s19 }
 0x2fe   : > { %s957_s12 = scalar_lea.vmem [#allocation2], %s4819_s10 }
 0x2ff   : > { %3956 = dma.done.wait (%p5173_p7), %s954_s4, 128  }
 0x300   : > { %3958 = vsyncadd (%p5173_p7), %s954_s4, 4294967168  ;;  %s5174_s22 = sld [smem:[#allocation61_spill]]  ;;  %s966_s2 = scalar_lea.vmem [#allocation5], %s4819_s10 }
 0x306   : > { %s962_s8 = sand.u32 1, %s5174_s22  }
 0x307   : > { %s963_s15 = scalar_lea.sflag [#allocation6], %s962_s8 }
 0x308   : > { %3960 = dma.done.wait (%p5173_p7), %s963_s15, 128  }
 0x309   : > { %3962 = vsyncadd (%p5173_p7), %s963_s15, 4294967168  ;;  %p5175_p11 = scmp.eq.s32.totalorder %s5174_s22, 0 }
 0x30b   : > { %3964 = dma.done.wait (%p5175_p11), [#allocation6], 192   ;;  %p5176_p8 = pmov %p5175_p11 }
 0x30d   : > { %3966 = vsyncadd (%p5176_p8), [#allocation6], 4294967104  ;;  %p5177_p4 = pmov %p5176_p8 }
 0x30f   : > { %3968 = dma.done.wait (%p5177_p4), [#allocation9], 144   ;;  %p5178_p12 = pmov %p5177_p4 }
 0x310   : > { %p5179_p13 = pmov %p5177_p4 }
 0x311   : > { %3970 = vsyncadd (%p5178_p12), [#allocation9], 4294967152 }
 0x312   : > { %3972 = dma.done.wait (%p5179_p13), [#allocation12], 272   ;;  %p5180_p1 = pmov %p5177_p4 }
 0x314   : > { %3974 = vsyncadd (%p5180_p1), [#allocation12], 4294967024  ;;  %p5181_p3 = pmov %p5180_p1 }
 0x315   : > { %p5182_p2 = pmov %p5180_p1 }
 0x316   : > { %3976 = dma.done.wait (%p5181_p3), [#allocation15], 272  }
 0x317   : > { %3978 = vsyncadd (%p5182_p2), [#allocation15], 4294967024  ;;  %p5183_p6 = pmov %p5180_p1 }
 0x318   : > { %p5184_p10 = pmov %p5180_p1 }
 0x319   : > { %3980 = dma.done.wait (%p5183_p6), [#allocation18], 32  }
 0x31a   : > { %3982 = vsyncadd (%p5184_p10), [#allocation18], 4294967264  ;;  %p5185_p5 = pmov %p5180_p1 }
 0x31b   : > { %p5186_p9 = pmov %p5180_p1 }
 0x31c   : > { %3984 = dma.done.wait (%p5185_p5), [#allocation21], 32  }
 0x31d   : > { %3986 = vsyncadd (%p5186_p9), [#allocation21], 4294967264  ;;  %p5187_p0 = pmov %p5180_p1 }
 0x31f   : > { %3988 = dma.done.wait (%p5187_p0), [#allocation24], 272   ;;  %p5188_p7 = pmov %p5187_p0 }
 0x320   : > { %p5189_p11 = pmov %p5187_p0 }
 0x321   : > { %3990 = vsyncadd (%p5188_p7), [#allocation24], 4294967024 }
 0x322   : > { %3992 = dma.done.wait (%p5189_p11), [#allocation27], 1040   ;;  %p5190_p8 = pmov %p5187_p0 }
 0x323   : > { %p5191_p4 = pmov %p5187_p0 }
 0x324   : > { %3994 = vsyncadd (%p5190_p8), [#allocation27], 4294966256 }
 0x325   : > { %3996 = dma.done.wait (%p5191_p4), [#allocation30], 272   ;;  %p5192_p12 = pmov %p5187_p0 }
 0x326   : > { %p5193_p13 = pmov %p5187_p0 }
 0x327   : > { %3998 = vsyncadd (%p5192_p12), [#allocation30], 4294967024 }
 0x328   : > { %4000 = dma.done.wait (%p5193_p13), [#allocation33], 1280   ;;  %p5194_p1 = pmov %p5187_p0 }
 0x329   : > { %p5195_p3 = pmov %p5187_p0 }
 0x32a   : > { %4002 = vsyncadd (%p5194_p1), [#allocation33], 4294966016 }
 0x32b   : > { %4004 = dma.done.wait (%p5195_p3), [#allocation36], 256   ;;  %p5196_p2 = pmov %p5187_p0 }
 0x32c   : > { %p5197_p6 = pmov %p5187_p0 }
 0x32d   : > { %4006 = vsyncadd (%p5196_p2), [#allocation36], 4294967040 }
 0x32e   : > { %4008 = dma.done.wait (%p5197_p6), [#allocation39], 1280   ;;  %p5198_p10 = pmov %p5187_p0 }
 0x32f   : > { %v4058_v0 = vmov 0.0   ;;  %vm4059_vm0 = vmmov 0   ;;  %v3146_v1 = vld [vmem:[#allocation7] sm:$0xff]   ;;  %vm1156_vm1 = vcmask 1043456   ;;  %v3147_v2 = vld [vmem:[#allocation7 + $0x8] ss:$0 sps:$4 sm:$0xff]  }
 0x330   : > { %4010 = vsyncadd (%p5198_p10), [#allocation39], 4294966016  ;;  %2723 = vmatprep.subr.bf16.mxu1 %v4058_v0  ;;  %2727 = vmatprep.mubr.msk.bf16.mxu1 %vm4059_vm0, %v4058_v0  ;;  %v1131_v3 = vld [vmem:[%s957_s12] sm:$0xff]  ;;  %v1158_v4 = vsel %vm1156_vm1, %v3147_v2, 0  ;;  %vm1152_vm2 = vcmask 195584   ;;  %vm1217_vm3 = vcmask 130048  }
 0x331   : > { %2745 = vmatprep.subr.bf16.mxu0 %v4058_v0  ;;  %2749 = vmatprep.mubr.msk.bf16.mxu0 %vm4059_vm0, %v4058_v0  ;;  %v3148_v5 = vld [vmem:[#allocation10] sm:$0xff]   ;;  %v1132_v6 = vpack.c.bf16 %v1131_v3, %v1131_v3  ;;  %v3149_v9 = vld [vmem:[#allocation13] sm:$0xff]   ;;  %v3150_v10 = vld [vmem:[#allocation13 + $0x8] sm:$0xff]   ;;  %vm1285_vm4 = vcmask 261120   ;;  %s4060_s6 = smov 96   ;;  %s4061_s16 = smov 64  }
 0x332   : > { %2724 = vmatpush3.bf16.msra.mxu1 %v3146_v1  ;;  %v1200_v7 = vld [vmem:[%s966_s2] sm:$0xff]  ;;  %v2604_v15 = vld [vmem:[#allocation8] ss:$0 sm:$0xff]  ;;  %v3152_v25 = vld [vmem:[#allocation31 + $0x8] sm:$0xff]   ;;  %s4062_s13 = smov 32   ;;  %s1129_s18 = scalar_lea.vmem [#allocation41], %s4819_s10 }
 0x333   : > { %2725 = vmatprep.subr.bf16.mxu1 %v4058_v0  ;;  %v1201_v8 = vpack.c.bf16 %v1200_v7, %v1200_v7  ;;  %v2608_v16 = vld [vmem:[#allocation11] ss:$0 sm:$0xff]  ;;  %v3151_v24 = vld [vmem:[#allocation31] sm:$0xff]   ;;  %v3153_v26 = vld [vmem:[#allocation32] sm:$0xff]   ;;  %s2666_s9 = sshll.u32 %s5174_s22, 7  ;;  %s2236_s5 = sshll.u32 %s1129_s18, 4  ;;  %s4995_s5 = int_to_ptr.vmem [resolvable:$true] %s2236_s5 }
 0x334   : > { %2746 = vmatpush3.bf16.msra.mxu0 %v3151_v24  ;;  %v3154_v27 = vld [vmem:[#allocation32 + $0x8] sm:$0xff]   ;;  %v2611_v28 = vld [vmem:[#allocation14] ss:$0 sm:$0xff]  ;;  %v3155_v37 = vld [vmem:[#allocation34] sm:$0xff]   ;;  %vm2220_vm5 = vcmask 523520   ;;  %s5199_s7 = sld [smem:[#allocation86_spill]] }
 0x335   : > { %2747 = vmatprep.subr.bf16.mxu0 %v4058_v0  ;;  %v3156_v38 = vld [vmem:[#allocation34 + $0x8] sm:$0xff]   ;;  %v3157_v39 = vld [vmem:[#allocation34 + $0x10] sm:$0xff]   ;;  %v3158_v40 = vld [vmem:[#allocation34 + $0x18] sm:$0xff]   ;;  %s2223_s4 = scalar_lea.sflag [#allocation4], %s4816_s19  ;;  %s3911_s12 = scalar_lea.vmem %s4995_s5, 128 }
 0x336   : > { %2726 = vmatpush3.bf16.msra.mxu1 %v1158_v4  ;;  %v3159_v41 = vld [vmem:[#allocation34 + $0x20] sm:$0xff]   ;;  %v3160_v42 = vld [vmem:[#allocation34 + $0x28] sm:$0xff]   ;;  %v3161_v44 = vld [vmem:[#allocation34 + $0x30] sm:$0xff]   ;;  %p3912_p5 = scmp.ne.s32.totalorder %s4995_s5, %s3911_s12  ;;  %p5200_p9 = scmp.ne.s32.totalorder %s5165_s29, 0 }
 0x337   : > { %2731 = vmatprep.subr.bf16.mxu1 %v4058_v0  ;;  %v3162_v45 = vld [vmem:[#allocation34 + $0x38] sm:$0xff]   ;;  %v3163_v63 = vld [vmem:[#allocation35] sm:$0xff]   ;;  %s4063_s10 = smov [#allocation41]  }
 0x338   : > { %2748 = vmatpush3.bf16.msra.mxu0 %v3152_v25  ;;  %v3167_v24 = vld [vmem:[#allocation40] sm:$0xff]   ;;  %p3913_p0 = pnand %p3912_p5, %p5200_p9  ;;  %s3915_s22 = sshll.u32 %s4063_s10, 4  ;;  %s3916_s22 = int_to_ptr.vmem [resolvable:$false] %s3915_s22 }
 0x339   : > { %2728 = vmatmul.mubr.msk.bf16.vlgmr.msra.gmra.mrb[0].mxu1 %vm1152_vm2, %v1132_v6  ;;  %2761 = vmatprep.subr.bf16.mxu0 %v4058_v0  ;;  %s3917_s8 = scalar_lea.vmem %s3916_s22, 256  ;;  %p3918_p11 = scmp.lt.s32.totalorder %s4995_s5, %s3916_s22 }
 0x33a   : > { %2732 = vmatpush3.bf16.msra.mxu1 %v3148_v5  ;;  %2733 = vmatprep.mubr.msk.bf16.mxu1 %vm4059_vm0, %v4058_v0  ;;  %s4993_s17 = scalar_lea.hbm %s5199_s7, %s2666_s9  ;;  %p3914_p7 = pneg %p3913_p0 }
 0x33b   : > { %2737 = vmatprep.subr.bf16.mxu1 %v4058_v0  ;;  %p3919_p8 = scmp.lt.s32.totalorder %s3917_s8, %s3911_s12 }
 0x33d   : > { %p3920_p4 = por %p3919_p8, %p3918_p11 }
 0x33f   : > { %p3921_p12 = pnand %p3920_p4, %p3914_p7 }
 0x341   : > { %2734 = vmatmul.mubr.msk.bf16.vlgmr.msra.gmra.mrb[4].mxu1 %vm1217_vm3, %v1201_v8 }
 0x342   : > { %2741 = vmatprep.mubr.msk.bf16.mxu1 %vm4059_vm0, %v4058_v0  ;;  %2738 = vmatpush3.bf16.msra.mxu1 %v3149_v9 }
 0x343   : > { %2739 = vmatprep.subr.bf16.mxu1 %v4058_v0 }
 0x346   : > { %2740 = vmatpush3.bf16.msra.mxu1 %v3150_v10  ;;  %v3164_v10 = vld [vmem:[#allocation37] sm:$0xff]  }
 0x347   : > { %2753 = vmatprep.subr.bf16.mxu1 %v4058_v0 }
 0x40c   : > { %v1194_v11 = vpop.f32.mrb[0].mxu1 }
 0x40d   : > { %v2729_v12 = vpop.f32.mrb[1].mxu1  ;;  %v4901_v18 = vadd.f32 %v2604_v15, %v1194_v11 }
 0x40e   : > { %v1197_v13 = vpop.f32.mrb[2].mxu1 }
 0x40f   : > { %v2730_v14 = vpop.f32.mrb[3].mxu1 }
 0x414   : > { %v1255_v17 = vpop.f32.mrb[4].mxu1 }
 0x415   : > { %v4903_v19 = vadd.f32 %v2608_v16, %v1255_v17  ;;  %v2735_v20 = vpop.f32.mrb[5].mxu1 }
 0x416   : > { %v1258_v21 = vpop.f32.mrb[6].mxu1 }
 0x417   : > { %v1261_v22 = vpack.c.bf16 %v4903_v19, %v4901_v18  ;;  %v2736_v23 = vpop.f32.mrb[7].mxu1  ;;  %v3165_v21 = vld [vmem:[#allocation38] sm:$0xff]  }
 0x418   : > { %v3166_v23 = vld [vmem:[#allocation38 + $0x8] sm:$0xff]  }
 0x419   : > { %2742 = vmatmul.mubr.msk.bf16.vlgmr.msra.gmra.mrb[8].mxu1 %vm1285_vm4, %v1261_v22 }
 0x41a   : > { %2757 = vmatprep.mubr.msk.bf16.mxu1 %vm4059_vm0, %v4058_v0  ;;  %2754 = vmatpush3.bf16.msra.mxu1 %v3153_v26  ;;  %v3168_v26 = vld [vmem:[#allocation40 + $0x8] sm:$0xff]  }
 0x41b   : > { %2755 = vmatprep.subr.bf16.mxu1 %v4058_v0 }
 0x41e   : > { %2756 = vmatpush3.bf16.msra.mxu1 %v3154_v27  ;;  %v3169_v27 = vld [vmem:[#allocation40 + $0x10] sm:$0xff]  }
 0x41f   : > { %2781 = vmatprep.subr.bf16.mxu1 %v4058_v0 }
 0x4ec   : > { %v1323_v29 = vpop.f32.mrb[8].mxu1 }
 0x4ed   : > { %v2743_v30 = vpop.f32.mrb[9].mxu1  ;;  %v1324_v32 = vadd.f32 %v2611_v28, %v1323_v29  ;;  %v3171_v29 = vld [vmem:[#allocation40 + $0x20] sm:$0xff]  }
 0x4ee   : > { %v1326_v31 = vpop.f32.mrb[10].mxu1  ;;  %v3172_v30 = vld [vmem:[#allocation40 + $0x28] sm:$0xff]  }
 0x4ef   : > { %v1327_v33 = vadd.f32 %v2611_v28, %v1326_v31  ;;  %v2744_v34 = vpop.f32.mrb[11].mxu1  ;;  %v3170_v28 = vld [vmem:[#allocation40 + $0x18] sm:$0xff]   ;;  %v3173_v31 = vld [vmem:[#allocation40 + $0x30] sm:$0xff]  }
 0x4f1   : > { %v1330_v35 = vpack.c.bf16 %v1327_v33, %v1324_v32  ;;  %v1391_v36 = vpack.c.bf16 %v1324_v32, %v1327_v33  ;;  %v3174_v32 = vld [vmem:[#allocation40 + $0x38] sm:$0xff]  }
 0x4f2   : > { %v3175_v33 = vld [vmem:[#allocation16] sm:$0xff]  }
 0x4f3   : > { %1397 = vrot.lane.b32.xlu0 %v1391_v36, %s4060_s6  ;;  %2750 = vmatmul.mubr.msk.bf16.vlgmr.msra.gmra.mrb[0].mxu0 %vm1285_vm4, %v1330_v35 }
 0x4f4   : > { %2777 = vmatprep.mubr.msk.bf16.mxu0 %vm4059_vm0, %v4058_v0  ;;  %2762 = vmatpush3.bf16.msra.mxu0 %v3155_v37 }
 0x4f5   : > { %2763 = vmatprep.subr.bf16.mxu0 %v4058_v0 }
 0x4f8   : > { %2764 = vmatpush3.bf16.msra.mxu0 %v3156_v38 }
 0x4f9   : > { %2765 = vmatprep.subr.bf16.mxu0 %v4058_v0 }
 0x4fc   : > { %2766 = vmatpush3.bf16.msra.mxu0 %v3157_v39 }
 0x4fd   : > { %2767 = vmatprep.subr.bf16.mxu0 %v4058_v0 }
 0x500   : > { %2768 = vmatpush3.bf16.msra.mxu0 %v3158_v40 }
 0x501   : > { %2769 = vmatprep.subr.bf16.mxu0 %v4058_v0 }
 0x504   : > { %2770 = vmatpush3.bf16.msra.mxu0 %v3159_v41 }
 0x505   : > { %2771 = vmatprep.subr.bf16.mxu0 %v4058_v0 }
 0x508   : > { %2772 = vmatpush3.bf16.msra.mxu0 %v3160_v42 }
 0x509   : > { %2773 = vmatprep.subr.bf16.mxu0 %v4058_v0 }
 0x50c   : > { %2774 = vmatpush3.bf16.msra.mxu0 %v3161_v44 }
 0x50d   : > { %2775 = vmatprep.subr.bf16.mxu0 %v4058_v0 }
 0x510   : > { %2776 = vmatpush3.bf16.msra.mxu0 %v3162_v45  ;;  %v3176_v45 = vld [vmem:[#allocation16 + $0x8] sm:$0xff]  }
 0x511   : > { %2821 = vmatprep.subr.bf16.mxu0 %v4058_v0 }
 0x565   : > { %v1398_v43 = vpop.permute.xlu0 %1397 }
 0x566   : > { %2758 = vmatmul.mubr.msk.bf16.vlgmr.msra.gmra.mrb[12].mxu1 %vm1285_vm4, %v1398_v43 }
 0x567   : > { %2783 = vmatprep.mubr.msk.bf16.mxu1 %vm4059_vm0, %v4058_v0  ;;  %2782 = vmatpush3.bf16.msra.mxu1 %v3163_v63 }
 0x568   : > { %2787 = vmatprep.subr.bf16.mxu1 %v4058_v0 }
 0x5c6   : > { %v1384_v46 = vpop.f32.mrb[0].mxu0 }
 0x5c7   : > { %v2751_v47 = vpop.f32.mrb[1].mxu0 }
 0x5c8   : > { %v1387_v48 = vpop.f32.mrb[2].mxu0 }
 0x5c9   : > { %v2752_v49 = vpop.f32.mrb[3].mxu0 }
 0x639   : > { %v1448_v50 = vpop.f32.mrb[12].mxu1 }
 0x63a   : > { %v1455_v51 = vmul.f32 %v1448_v50, %v1384_v46  ;;  %v2759_v52 = vpop.f32.mrb[13].mxu1 }
 0x63b   : > { %v1451_v53 = vpop.f32.mrb[14].mxu1 }
 0x63c   : > { %v1456_v54 = vmul.f32 %v1451_v53, %v1387_v48  ;;  %v2760_v55 = vpop.f32.mrb[15].mxu1 }
 0x63e   : > { %v1457_v56 = vpack.c.bf16 %v1456_v54, %v1455_v51  ;;  %v2644_v51 = vld [vmem:[#allocation17] ss:$0 sm:$0xff] }
 0x640   : > { %2778 = vmatmul.mubr.bf16.vlgmr.msra.gmra.mrb[4].mxu0 %v1457_v56 }
 0x641   : > { %2825 = vmatprep.mubr.msk.bf16.mxu0 %vm4059_vm0, %v4058_v0  ;;  %2822 = vmatpush3.bf16.msra.mxu0 %v3175_v33  ;;  %v3184_v33 = vld [vmem:[#allocation28 + $0x28] sm:$0xff]  }
 0x642   : > { %2823 = vmatprep.subr.bf16.mxu0 %v4058_v0 }
 0x645   : > { %2824 = vmatpush3.bf16.msra.mxu0 %v3176_v45 }
 0x646   : > { %2829 = vmatprep.subr.bf16.mxu0 %v4058_v0 }
 0x713   : > { %v1556_v57 = vpop.f32.mrb[4].mxu0 }
 0x714   : > { %v2779_v58 = vpop.f32.mrb[5].mxu0  ;;  %v1563_v59 = vsel %vm1217_vm3, %v1556_v57, -inf }
 0x715   : > { %1564 = vmax.xlane.f32.xlu0 %v1563_v59  ;;  %v1559_v60 = vpop.f32.mrb[6].mxu0 }
 0x716   : > { %v2780_v61 = vpop.f32.mrb[7].mxu0  ;;  %v1566_v62 = vsel %vm1217_vm3, %v1559_v60, -inf }
 0x717   : > { %1567 = vmax.xlane.f32.xlu1 %v1566_v62 }
 0x728   : > { %1689 = vrot.lane.b32.xlu1 %v1391_v36, %s4061_s16 }
 0x7a2   : > { %v1565_v1 = vpop.xlane.xlu0 %1564 }
 0x7a3   : > { %v1569_v2 = vsub.f32 %v1556_v57, %v1565_v1 }
 0x7a4   : > { %v1568_v3 = vpop.xlane.xlu1 %1567 }
 0x7a5   : > { %v1571_v4 = vmul.f32 1.442695, %v1569_v2  ;;  %v1570_v5 = vsub.f32 %v1559_v60, %v1568_v3 }
 0x7a7   : > { %v1573_v6 = vmul.f32 1.442695, %v1570_v5  ;;  %3187 = vpow2.f32 %v1571_v4 }
 0x7a8   : > { %v1690_v25 = vpop.permute.xlu1 %1689 }
 0x7a9   : > { %3189 = vpow2.f32 %v1573_v6 }
 0x7b1   : > { %v3188_v7 = vpop.eup %3187 }
 0x7b3   : > { %v3190_v8 = vpop.eup %3189 }
 0x7b4   : > { %v1575_v9 = vpack.c.bf16 %v3190_v8, %v3188_v7 }
 0x7b6   : > { %2784 = vmatmul.mubr.msk.bf16.vlgmr.msra.gmra.mrb[16].mxu1 %vm1217_vm3, %v1575_v9 }
 0x7b7   : > { %2789 = vmatprep.mubr.msk.bf16.mxu1 %vm4059_vm0, %v4058_v0  ;;  %2788 = vmatpush3.bf16.msra.mxu1 %v3164_v10 }
 0x7b8   : > { %2793 = vmatprep.subr.bf16.mxu1 %v4058_v0 }
 0x889   : > { %v1621_v11 = vpop.f32.mrb[16].mxu1 }
 0x88a   : > { %3191 = vrcp.f32 %v1621_v11  ;;  %v2785_v12 = vpop.f32.mrb[17].mxu1 }
 0x88b   : > { %v1624_v13 = vpop.f32.mrb[18].mxu1 }
 0x88c   : > { %3193 = vrcp.f32 %v1624_v13  ;;  %v2786_v14 = vpop.f32.mrb[19].mxu1 }
 0x894   : > { %v3192_v15 = vpop.eup %3191 }
 0x895   : > { %v1630_v17 = vmul.f32 %v3192_v15, %v3188_v7 }
 0x896   : > { %v3194_v16 = vpop.eup %3193 }
 0x897   : > { %v1631_v20 = vmul.f32 %v3194_v16, %v3190_v8  ;;  %v3177_v8 = vld [vmem:[#allocation25] sm:$0xff]  }
 0x899   : > { %v1632_v22 = vpack.c.bf16 %v1631_v20, %v1630_v17  ;;  %v2648_v17 = vld [vmem:[#allocation19] ss:$0 sm:$0xff] }
 0x89b   : > { %2790 = vmatmul.mubr.msk.bf16.vlgmr.msra.gmra.mrb[20].mxu1 %vm1217_vm3, %v1632_v22 }
 0x89c   : > { %2794 = vmatpush3.bf16.msra.mxu1 %v3165_v21  ;;  %2797 = vmatprep.mubr.msk.bf16.mxu1 %vm4059_vm0, %v4058_v0 }
 0x89d   : > { %2795 = vmatprep.subr.bf16.mxu1 %v4058_v0 }
 0x8a0   : > { %2796 = vmatpush3.bf16.msra.mxu1 %v3166_v23  ;;  %v2649_v23 = vld [vmem:[#allocation20] ss:$0 sm:$0xff] }
 0x8a1   : > { %2801 = vmatprep.subr.bf16.mxu1 %v4058_v0 }
 0x8a3   : > { %2798 = vmatmul.mubr.msk.bf16.vlgmr.msra.gmra.mrb[24].mxu1 %vm1285_vm4, %v1690_v25 }
 0x8a4   : > { %2802 = vmatpush3.bf16.msra.mxu1 %v3167_v24  ;;  %2817 = vmatprep.mubr.msk.bf16.mxu1 %vm4059_vm0, %v4058_v0 }
 0x8a5   : > { %2803 = vmatprep.subr.bf16.mxu1 %v4058_v0 }
 0x8a8   : > { %2804 = vmatpush3.bf16.msra.mxu1 %v3168_v26 }
 0x8a9   : > { %2805 = vmatprep.subr.bf16.mxu1 %v4058_v0 }
 0x8ac   : > { %2806 = vmatpush3.bf16.msra.mxu1 %v3169_v27 }
 0x8ad   : > { %2807 = vmatprep.subr.bf16.mxu1 %v4058_v0 }
 0x8b0   : > { %2808 = vmatpush3.bf16.msra.mxu1 %v3170_v28  ;;  %v3179_v28 = vld [vmem:[#allocation28] sm:$0xff]  }
 0x8b1   : > { %2809 = vmatprep.subr.bf16.mxu1 %v4058_v0 }
 0x8b4   : > { %2810 = vmatpush3.bf16.msra.mxu1 %v3171_v29  ;;  %v3180_v29 = vld [vmem:[#allocation28 + $0x8] sm:$0xff]  }
 0x8b5   : > { %2811 = vmatprep.subr.bf16.mxu1 %v4058_v0 }
 0x8b8   : > { %2812 = vmatpush3.bf16.msra.mxu1 %v3172_v30  ;;  %v3181_v30 = vld [vmem:[#allocation28 + $0x10] sm:$0xff]  }
 0x8b9   : > { %2813 = vmatprep.subr.bf16.mxu1 %v4058_v0 }
 0x8bc   : > { %2814 = vmatpush3.bf16.msra.mxu1 %v3173_v31  ;;  %v3182_v31 = vld [vmem:[#allocation28 + $0x18] sm:$0xff]  }
 0x8bd   : > { %2815 = vmatprep.subr.bf16.mxu1 %v4058_v0 }
 0x8c0   : > { %2816 = vmatpush3.bf16.msra.mxu1 %v3174_v32  ;;  %v3183_v32 = vld [vmem:[#allocation28 + $0x20] sm:$0xff]  }
 0x96e   : > { %v1678_v34 = vpop.f32.mrb[20].mxu1 }
 0x96f   : > { %v2791_v35 = vpop.f32.mrb[21].mxu1 }
 0x970   : > { %v1681_v36 = vpop.f32.mrb[22].mxu1  ;;  %v3186_v35 = vld [vmem:[#allocation28 + $0x38] sm:$0xff]  }
 0x971   : > { %v2792_v37 = vpop.f32.mrb[23].mxu1 }
 0x976   : > { %v1740_v38 = vpop.f32.mrb[24].mxu1 }
 0x977   : > { %v1747_v39 = vmul.f32 %v1740_v38, %v1678_v34  ;;  %v2799_v40 = vpop.f32.mrb[25].mxu1  ;;  %v3185_v34 = vld [vmem:[#allocation28 + $0x30] sm:$0xff]  }
 0x978   : > { %v1743_v41 = vpop.f32.mrb[26].mxu1 }
 0x979   : > { %v1748_v42 = vmul.f32 %v1743_v41, %v1681_v36  ;;  %v2800_v43 = vpop.f32.mrb[27].mxu1  ;;  %v2650_v36 = vld [vmem:[#allocation26] ss:$0 sm:$0xff] }
 0x97b   : > { %v1749_v44 = vpack.c.bf16 %v1748_v42, %v1747_v39 }
 0x97d   : > { %2818 = vmatmul.mubr.bf16.vlgmr.msra.gmra.mrb[28].mxu1 %v1749_v44 }
 0xa50   : > { %v1848_v46 = vpop.f32.mrb[28].mxu1 }
 0xa51   : > { %v2819_v47 = vpop.f32.mrb[29].mxu1 }
 0xa52   : > { %v1851_v48 = vpop.f32.mrb[30].mxu1 }
 0xa53   : > { %v1855_v49 = vpack.c.bf16 %v1851_v48, %v1848_v46  ;;  %v2820_v50 = vpop.f32.mrb[31].mxu1 }
 0xa55   : > { %2826 = vmatmul.mubr.msk.bf16.vlgmr.msra.gmra.mrb[8].mxu0 %vm1285_vm4, %v1855_v49 }
 0xa56   : > { %2833 = vmatprep.mubr.msk.bf16.mxu0 %vm4059_vm0, %v4058_v0  ;;  %2830 = vmatpush3.bf16.msra.mxu0 %v3177_v8 }
 0xa57   : > { %2831 = vmatprep.subr.bf16.mxu0 %v4058_v0 }
 0xb28   : > { %v1916_v52 = vpop.f32.mrb[8].mxu0 }
 0xb29   : > { %v1917_v53 = vadd.f32 %v2644_v51, %v1916_v52  ;;  %v2827_v54 = vpop.f32.mrb[9].mxu0 }
 0xb2a   : > { %v1919_v55 = vpop.f32.mrb[10].mxu0 }
 0xb2b   : > { %v1920_v56 = vadd.f32 %v2644_v51, %v1919_v55  ;;  %v2828_v57 = vpop.f32.mrb[11].mxu0  ;;  %v1923_v58 = vadd.f32 %v1917_v53, %v4901_v18 }
 0xb2d   : > { %v1927_v59 = vsel %vm1285_vm4, %v1923_v58, 0.0  ;;  %v1924_v60 = vadd.f32 %v1920_v56, %v4903_v19  ;;  %v3178_v19 = vld [vmem:[#allocation25 + $0x8] sm:$0xff]  }
 0xb2e   : > { %1928 = vadd.xlane.f32.xlu1 %v1927_v59  ;;  %2832 = vmatpush3.bf16.msra.mxu0 %v3178_v19 }
 0xb2f   : > { %v1930_v61 = vsel %vm1285_vm4, %v1924_v60, 0.0  ;;  %2837 = vmatprep.subr.bf16.mxu0 %v4058_v0 }
 0xb30   : > { %1931 = vadd.xlane.f32.xlu0 %v1930_v61  ;;  %v2654_v61 = vld [vmem:[#allocation29] ss:$0 sm:$0xff] }
 0xbbb   : > { %v1929_v62 = vpop.xlane.xlu1 %1928 }
 0xbbc   : > { %v1934_v63 = vmul.f32 0.03125, %v1929_v62 }
 0xbbd   : > { %v1932_v1 = vpop.xlane.xlu0 %1931 }
 0xbbe   : > { %v1936_v2 = vsub.f32 %v1923_v58, %v1934_v63  ;;  %v1935_v3 = vmul.f32 0.03125, %v1932_v1 }
 0xbc0   : > { %v1937_v4 = vsub.f32 %v1924_v60, %v1935_v3  ;;  %v1938_v5 = vmul.f32 %v1936_v2, %v1936_v2 }
 0xbc2   : > { %v1940_v6 = vsel %vm1285_vm4, %v1938_v5, 0.0  ;;  %v1939_v7 = vmul.f32 %v1937_v4, %v1937_v4 }
 0xbc3   : > { %1941 = vadd.xlane.f32.xlu0 %v1940_v6 }
 0xbc4   : > { %v1943_v18 = vsel %vm1285_vm4, %v1939_v7, 0.0 }
 0xbc7   : > { %1944 = vadd.xlane.f32.xlu0 %v1943_v18 }
 0xc50   : > { %v1942_v9 = vpop.xlane.xlu0 %1941 }
 0xc51   : > { %v1946_v10 = vmul.f32 0.03125, %v1942_v9 }
 0xc53   : > { %v1948_v11 = vadd.f32 1e-05, %v1946_v10 }
 0xc54   : > { %v1945_v12 = vpop.xlane.xlu0 %1944 }
 0xc55   : > { %3195 = vrsqrt.f32 %v1948_v11  ;;  %v1947_v13 = vmul.f32 0.03125, %v1945_v12 }
 0xc57   : > { %v1949_v14 = vadd.f32 1e-05, %v1947_v13 }
 0xc59   : > { %3197 = vrsqrt.f32 %v1949_v14 }
 0xc5f   : > { %v3196_v15 = vpop.eup %3195 }
 0xc60   : > { %v1952_v16 = vmul.f32 %v3196_v15, %v1936_v2 }
 0xc62   : > { %v1960_v21 = vmul.f32 %v2648_v17, %v1952_v16 }
 0xc63   : > { %v3198_v20 = vpop.eup %3197 }
 0xc64   : > { %v1953_v22 = vmul.f32 %v3198_v20, %v1937_v4  ;;  %v4965_v25 = vadd.f32 %v2649_v23, %v1960_v21 }
 0xc66   : > { %v1961_v24 = vmul.f32 %v2648_v17, %v1953_v22 }
 0xc68   : > { %v4967_v26 = vadd.f32 %v2649_v23, %v1961_v24 }
 0xc6a   : > { %v1970_v27 = vpack.c.bf16 %v4967_v26, %v4965_v25 }
 0xc6c   : > { %2834 = vmatmul.mubr.msk.bf16.vlgmr.msra.gmra.mrb[12].mxu0 %vm1285_vm4, %v1970_v27 }
 0xc6d   : > { %2853 = vmatprep.mubr.msk.bf16.mxu0 %vm4059_vm0, %v4058_v0  ;;  %2838 = vmatpush3.bf16.msra.mxu0 %v3179_v28  ;;  %v2664_v28 = vld [vmem:[#allocation23] ss:$0 sm:$0xff] }
 0xc6e   : > { %2839 = vmatprep.subr.bf16.mxu0 %v4058_v0 }
 0xc71   : > { %2840 = vmatpush3.bf16.msra.mxu0 %v3180_v29 }
 0xc72   : > { %2841 = vmatprep.subr.bf16.mxu0 %v4058_v0 }
 0xc75   : > { %2842 = vmatpush3.bf16.msra.mxu0 %v3181_v30 }
 0xc76   : > { %2843 = vmatprep.subr.bf16.mxu0 %v4058_v0 }
 0xc79   : > { %2844 = vmatpush3.bf16.msra.mxu0 %v3182_v31 }
 0xc7a   : > { %2845 = vmatprep.subr.bf16.mxu0 %v4058_v0 }
 0xc7d   : > { %2846 = vmatpush3.bf16.msra.mxu0 %v3183_v32 }
 0xc7e   : > { %2847 = vmatprep.subr.bf16.mxu0 %v4058_v0 }
 0xc81   : > { %2848 = vmatpush3.bf16.msra.mxu0 %v3184_v33 }
 0xc82   : > { %2849 = vmatprep.subr.bf16.mxu0 %v4058_v0 }
 0xc85   : > { %2850 = vmatpush3.bf16.msra.mxu0 %v3185_v34 }
 0xc86   : > { %2851 = vmatprep.subr.bf16.mxu0 %v4058_v0 }
 0xc89   : > { %2852 = vmatpush3.bf16.msra.mxu0 %v3186_v35 }
 0xd3f   : > { %v2031_v37 = vpop.f32.mrb[12].mxu0 }
 0xd40   : > { %v2032_v38 = vadd.f32 %v2650_v36, %v2031_v37  ;;  %v2835_v39 = vpop.f32.mrb[13].mxu0 }
 0xd41   : > { %v2034_v40 = vpop.f32.mrb[14].mxu0 }
 0xd42   : > { %v2040_v41 = vmul.f32 0.044715, %v2032_v38  ;;  %v2035_v42 = vadd.f32 %v2650_v36, %v2034_v40  ;;  %v2836_v43 = vpop.f32.mrb[15].mxu0  ;;  %v2038_v55 = vmul.f32 0.5, %v2032_v38 }
 0xd44   : > { %v2042_v44 = vmul.f32 %v2040_v41, %v2032_v38  ;;  %v2041_v45 = vmul.f32 0.044715, %v2035_v42  ;;  %v2039_v56 = vmul.f32 0.5, %v2035_v42 }
 0xd46   : > { %v2044_v46 = vmul.f32 %v2042_v44, %v2032_v38  ;;  %v2043_v47 = vmul.f32 %v2041_v45, %v2035_v42 }
 0xd48   : > { %v2046_v48 = vadd.f32 %v2044_v46, %v2032_v38  ;;  %v2045_v49 = vmul.f32 %v2043_v47, %v2035_v42 }
 0xd4a   : > { %v2048_v50 = vmul.f32 0.7978846, %v2046_v48  ;;  %v2047_v51 = vadd.f32 %v2045_v49, %v2035_v42 }
 0xd4c   : > { %3199 = vtanh.f32 %v2048_v50  ;;  %v2049_v52 = vmul.f32 0.7978846, %v2047_v51 }
 0xd4e   : > { %3201 = vtanh.f32 %v2049_v52 }
 0xd56   : > { %v3200_v0 = vpop.eup %3199 }
 0xd57   : > { %v2052_v53 = vadd.f32 1.0, %v3200_v0 }
 0xd58   : > { %v3202_v54 = vpop.eup %3201 }
 0xd59   : > { %v2053_v57 = vadd.f32 1.0, %v3202_v54  ;;  %v2054_v58 = vmul.f32 %v2052_v53, %v2038_v55 }
 0xd5b   : > { %v2055_v59 = vmul.f32 %v2053_v57, %v2039_v56 }
 0xd5d   : > { %v2056_v60 = vpack.c.bf16 %v2055_v59, %v2054_v58 }
 0xd5f   : > { %2854 = vmatmul.mubr.bf16.vlgmr.msra.gmra.mrb[16].mxu0 %v2056_v60 }
 0xe32   : > { %v2162_v62 = vpop.f32.mrb[16].mxu0 }
 0xe33   : > { %v2855_v63 = vpop.f32.mrb[17].mxu0  ;;  %v2163_v2 = vadd.f32 %v2654_v61, %v2162_v62 }
 0xe34   : > { %v2165_v1 = vpop.f32.mrb[18].mxu0 }
 0xe35   : > { %v2166_v3 = vadd.f32 %v2654_v61, %v2165_v1  ;;  %v2856_v4 = vpop.f32.mrb[19].mxu0  ;;  %v2169_v7 = vadd.f32 %v2163_v2, %v4965_v25 }
 0xe37   : > { %v2170_v5 = vadd.f32 %v2166_v3, %v4967_v26  ;;  %v2173_v18 = vsel %vm1285_vm4, %v2169_v7, 0.0  ;;  %v2663_v26 = vld [vmem:[#allocation22] ss:$0 sm:$0xff] }
 0xe39   : > { %v2176_v6 = vsel %vm1285_vm4, %v2170_v5, 0.0 }
 0xe3a   : > { %2177 = vadd.xlane.f32.xlu0 %v2176_v6 }
 0xe3e   : > { %2174 = vadd.xlane.f32.xlu0 %v2173_v18 }
 0xec7   : > { %v2178_v8 = vpop.xlane.xlu0 %2177 }
 0xec8   : > { %v2180_v19 = vmul.f32 0.03125, %v2178_v8 }
 0xeca   : > { %v2182_v9 = vsub.f32 %v2170_v5, %v2180_v19 }
 0xecb   : > { %v2175_v10 = vpop.xlane.xlu0 %2174 }
 0xecc   : > { %v2179_v11 = vmul.f32 0.03125, %v2175_v10  ;;  %v2184_v12 = vmul.f32 %v2182_v9, %v2182_v9 }
 0xece   : > { %v2181_v13 = vsub.f32 %v2169_v7, %v2179_v11  ;;  %v2188_v14 = vsel %vm1285_vm4, %v2184_v12, 0.0 }
 0xecf   : > { %2189 = vadd.xlane.f32.xlu0 %v2188_v14 }
 0xed0   : > { %v2183_v15 = vmul.f32 %v2181_v13, %v2181_v13 }
 0xed2   : > { %v2185_v16 = vsel %vm1285_vm4, %v2183_v15, 0.0 }
 0xed3   : > { %2186 = vadd.xlane.f32.xlu1 %v2185_v16 }
 0xf5c   : > { %v2190_v17 = vpop.xlane.xlu0 %2189 }
 0xf5d   : > { %v2192_v20 = vmul.f32 0.03125, %v2190_v17 }
 0xf5f   : > { %v2194_v21 = vadd.f32 1e-05, %v2192_v20 }
 0xf60   : > { %v2187_v22 = vpop.xlane.xlu1 %2186 }
 0xf61   : > { %3203 = vrsqrt.f32 %v2194_v21  ;;  %v2191_v23 = vmul.f32 0.03125, %v2187_v22 }
 0xf63   : > { %v2193_v24 = vadd.f32 1e-05, %v2191_v23 }
 0xf65   : > { %3205 = vrsqrt.f32 %v2193_v24 }
 0xf6b   : > { %v3204_v25 = vpop.eup %3203 }
 0xf6c   : > { %v2198_v27 = vmul.f32 %v3204_v25, %v2182_v9 }
 0xf6e   : > { %v2206_v29 = vmul.f32 %v2663_v26, %v2198_v27 }
 0xf6f   : > { %v3206_v30 = vpop.eup %3205 }
 0xf70   : > { %v2197_v31 = vmul.f32 %v3206_v30, %v2181_v13  ;;  %v2214_v32 = vadd.f32 %v2664_v28, %v2206_v29 }
 0xf72   : > { %v2205_v33 = vmul.f32 %v2663_v26, %v2197_v31  ;;  %2217 = vrot.lane.b32.xlu0 %v2214_v32, %s4062_s13 }
 0xf74   : > { %v2213_v34 = vadd.f32 %v2664_v28, %v2205_v33 }
 0xf76   : > { %2215 = vst.msk [vmem:[%s1129_s18] sm:$0xff] %vm1285_vm4, %v2213_v34 }
 0xfe4   : > { %v2218_v35 = vpop.permute.xlu0 %2217 }
 0xfe5   : > { %2221 = vst.msk [vmem:[%s1129_s18] sm:$0xff] %vm2220_vm5, %v2218_v35 }
 0xfe6   : > { %3924 = shalt.err (!%p3921_p12)
}
 0xfe7   : > { %s3925_s19 = scalar_lea.hbm %s4993_s17, 128  ;;  %s3929_s6 = scalar_lea.hbm %s5199_s7, 256 }
 0xfe8   : > { %p3926_p13 = scmp.ne.s32.totalorder %s4993_s17, %s3925_s19  ;;  %p3930_p2 = scmp.lt.u32.totalorder %s4993_s17, %s5199_s7 }
 0xfe9   : > { %p3931_p6 = scmp.lt.u32.totalorder %s3929_s6, %s3925_s19  ;;  %p3933_p5 = scmp.lt.u32.totalorder %s3925_s19, %s4993_s17 }
 0xfea   : > { %p3927_p1 = pnand %p3926_p13, %p5200_p9 }
 0xfeb   : > { %p3932_p10 = por %p3931_p6, %p3930_p2 }
 0xfec   : > { %p3928_p3 = pneg %p3927_p1 }
 0xfed   : > { %p3934_p0 = por %p3933_p5, %p3932_p10 }
 0xfef   : > { %p3935_p7 = pnand %p3934_p0, %p3928_p3 }
 0xff1   : > { %3938 = shalt.err (!%p3935_p7)
}
 0xff2   : > { %2953 = dma.vmem_to_hbm [thread:$0]  (%p5200_p9), %s4995_s5, 128, %s4993_s17, %s2223_s4  }
 0xff3 PF: > { %s5201_s18 = sld [smem:[#allocation57_spill]]  ;;  %s5202_s9 = sld [smem:[#allocation60_spill]] }
 0xff4   : > { %p5203_p11 = scmp.ne.s32.totalorder %s5166_s0, 0 }
 0xff9   : > { %s2248_s1 = sand.u32 1, %s5201_s18   ;;  %p5204_p8 = scmp.ge.s32.totalorder %s5202_s9, 2 }
 0xffa   : > { %s2249_s3 = scalar_lea.sflag [#allocation4], %s2248_s1 }
 0xffb   : > { %p3033_p4 = pnand %p5204_p8, %p5203_p11 }
 0xffd   : > { %4012 = dma.done.wait (!%p3033_p4), %s2249_s3, 128  }
 0xffe   : > { %4014 = vsyncadd (!%p3033_p4), %s2249_s3, 4294967168  ;;  %s5205_s29 = sld [smem:[#allocation58_spill]]  ;;  %s5206_s2 = sld [smem:[#allocation59_spill]] }
 0xfff   : > { %p52_p12 = scmp.ge.s32.totalorder %s4717_s30, 4   ;;  %s5207_s6 = smov %s4729_s11 }
0x1001   :  { %54 = sbr.rel (!%p52_p12) target bundleno = 43 (0x2b), region = 270 }
0x1008   :  { %2254 = vsyncpa [#allocation3], 1 }
0x1009   :  { %2256 = vsyncpa [#allocation3 + $0x1], 1 }
0x100a   :  { %2257 = vsyncpa [#allocation6], 1 }
0x100b   :  { %2259 = vsyncpa [#allocation6 + $0x1], 1 }
0x100c   :  { %2260 = vsyncpa [#allocation9], 1 }
0x100d   :  { %2261 = vsyncpa [#allocation12], 1 }
0x100e   :  { %2262 = vsyncpa [#allocation15], 1 }
0x100f   :  { %2263 = vsyncpa [#allocation18], 1 }
0x1010   :  { %2264 = vsyncpa [#allocation21], 1 }
0x1011   :  { %2265 = vsyncpa [#allocation24], 1 }
0x1012   :  { %2266 = vsyncpa [#allocation27], 1 }
0x1013   :  { %2267 = vsyncpa [#allocation30], 1 }
0x1014   :  { %2268 = vsyncpa [#allocation33], 1 }
0x1015   :  { %2269 = vsyncpa [#allocation36], 1 }
0x1016   :  { %2270 = vsyncpa [#allocation39], 1 }
0x1017   :  { %2271 = vsyncpa [#allocation4], 1 }
0x1018   :  { %2273 = vsyncpa [#allocation4 + $0x1], 1 }

// kernel: tpu_custom_call.1
= control target key start
LH: loop header
LB: loop body
LE: loop exit
PB: predicated region body
PF: predicated region fallthrough
CT: control target
= control target key end

     0   :  { %s5037_s0 = inlined_call_operand.hbm [shape: f32[16,24], index: 0, kind: input, shape index: {}]   ;;  %s5038_s1 = inlined_call_operand.hbm [shape: f32[16,16], index: 1, kind: input, shape index: {}]   ;;  %s5039_s2 = inlined_call_operand.hbm [shape: bf16[24,32], index: 2, kind: input, shape index: {}]   ;;  %s5040_s3 = inlined_call_operand.hbm [shape: f32[1,32], index: 3, kind: input, shape index: {}]   ;;  %s5041_s4 = inlined_call_operand.hbm [shape: bf16[16,32], index: 4, kind: input, shape index: {}]   ;;  %s5042_s5 = inlined_call_operand.hbm [shape: f32[1,32], index: 5, kind: input, shape index: {}]   ;;  %s5043_s6 = inlined_call_operand.hbm [shape: bf16[32,96], index: 6, kind: input, shape index: {}]   ;;  %s5044_s7 = inlined_call_operand.hbm [shape: f32[1,96], index: 7, kind: input, shape index: {}]   ;;  %s5045_s8 = inlined_call_operand.hbm [shape: bf16[32,32], index: 8, kind: input, shape index: {}]   ;;  %s5046_s9 = inlined_call_operand.hbm [shape: f32[1,32], index: 9, kind: input, shape index: {}]   ;;  %s5047_s10 = inlined_call_operand.hbm [shape: f32[1,32], index: 10, kind: input, shape index: {}]   ;;  %s5048_s11 = inlined_call_operand.hbm [shape: f32[1,32], index: 11, kind: input, shape index: {}]   ;;  %s5049_s12 = inlined_call_operand.hbm [shape: f32[1,32], index: 12, kind: input, shape index: {}]   ;;  %s5050_s13 = inlined_call_operand.hbm [shape: f32[1,32], index: 13, kind: input, shape index: {}]   ;;  %s5051_s14 = inlined_call_operand.hbm [shape: bf16[32,128], index: 14, kind: input, shape index: {}]   ;;  %s5052_s15 = inlined_call_operand.hbm [shape: f32[1,128], index: 15, kind: input, shape index: {}]   ;;  %s5053_s16 = inlined_call_operand.hbm [shape: bf16[128,32], index: 16, kind: input, shape index: {}]   ;;  %s5054_s17 = inlined_call_operand.hbm [shape: f32[1,32], index: 17, kind: input, shape index: {}]   ;;  %s5055_s18 = inlined_call_operand.hbm [shape: bf16[32,128], index: 18, kind: input, shape index: {}]   ;;  %s5056_s19 = inlined_call_operand.hbm [shape: bf16[32,128], index: 19, kind: input, shape index: {}]   ;;  %s5057_s20 = inlined_call_operand.hbm [shape: bf16[128,16], index: 20, kind: input, shape index: {}]   ;;  %s5058_s21 = inlined_call_operand.hbm [shape: bf16[16,16], index: 21, kind: input, shape index: {}]   ;;  %s5059_s22 = inlined_call_operand.hbm [shape: bf16[16,128], index: 22, kind: input, shape index: {}]   ;;  %s5060_s23 = inlined_call_operand.hbm [shape: bf16[32,128], index: 23, kind: input, shape index: {}]   ;;  %s5061_s24 = inlined_call_operand.hbm [shape: bf16[128,32], index: 24, kind: input, shape index: {}]   ;;  %s5062_s25 = inlined_call_operand.hbm [shape: f32[16,64], index: 25, kind: output, shape index: {}]  }
   0x1   :  { %5099 = sst [smem:[#allocation63_spill]] %s5037_s0 }
   0x2   :  { %5100 = sst [smem:[#allocation64_spill]] %s5038_s1 }
   0x3   :  { %5101 = sst [smem:[#allocation65_spill]] %s5039_s2 }
   0x4   :  { %5102 = sst [smem:[#allocation66_spill]] %s5040_s3 }
   0x5   :  { %5103 = sst [smem:[#allocation67_spill]] %s5041_s4 }
   0x6   :  { %5104 = sst [smem:[#allocation68_spill]] %s5042_s5 }
   0x7   :  { %5105 = sst [smem:[#allocation69_spill]] %s5043_s6 }
   0x8   :  { %5106 = sst [smem:[#allocation70_spill]] %s5044_s7 }
   0x9   :  { %5107 = sst [smem:[#allocation71_spill]] %s5045_s8 }
   0xa   :  { %5108 = sst [smem:[#allocation72_spill]] %s5046_s9 }
   0xb   :  { %5109 = sst [smem:[#allocation73_spill]] %s5047_s10 }
   0xc   :  { %5110 = sst [smem:[#allocation74_spill]] %s5048_s11 }
   0xd   :  { %5111 = sst [smem:[#allocation75_spill]] %s5049_s12 }
   0xe   :  { %5112 = sst [smem:[#allocation76_spill]] %s5050_s13 }
   0xf   :  { %5113 = sst [smem:[#allocation77_spill]] %s5051_s14 }
  0x10   :  { %5114 = sst [smem:[#allocation78_spill]] %s5052_s15 }
  0x11   :  { %5115 = sst [smem:[#allocation79_spill]] %s5053_s16 }
  0x12   :  { %5116 = sst [smem:[#allocation80_spill]] %s5054_s17 }
  0x13   :  { %5117 = sst [smem:[#allocation81_spill]] %s5055_s18 }
  0x14   :  { %5118 = sst [smem:[#allocation82_spill]] %s5056_s19 }
  0x15   :  { %5119 = sst [smem:[#allocation83_spill]] %s5057_s20 }
  0x16   :  { %5120 = sst [smem:[#allocation84_spill]] %s5059_s22 }
  0x17   :  { %5121 = sst [smem:[#allocation85_spill]] %s5061_s24 }
  0x18   :  { %5122 = sst [smem:[#allocation86_spill]] %s5062_s25 }
  0x19   :  { %30 = vsyncpa [#allocation3], 0 }
  0x1a   :  { %32 = vsyncpa [#allocation3 + $0x1], 0 }
  0x1b   :  { %33 = vsyncpa [#allocation6], 0 }
  0x1c   :  { %35 = vsyncpa [#allocation6 + $0x1], 0 }
  0x1d   :  { %36 = vsyncpa [#allocation9], 0 }
  0x1e   :  { %37 = vsyncpa [#allocation12], 0 }
  0x1f   :  { %38 = vsyncpa [#allocation15], 0 }
  0x20   :  { %39 = vsyncpa [#allocation18], 0 }
  0x21   :  { %40 = vsyncpa [#allocation21], 0 }
  0x22   :  { %41 = vsyncpa [#allocation24], 0 }
  0x23   :  { %42 = vsyncpa [#allocation27], 0 }
  0x24   :  { %43 = vsyncpa [#allocation30], 0 }
  0x25   :  { %44 = vsyncpa [#allocation33], 0 }
  0x26   :  { %45 = vsyncpa [#allocation36], 0 }
  0x27   :  { %46 = vsyncpa [#allocation39], 0 }
  0x28   :  { %47 = vsyncpa [#allocation4], 0 }
  0x29   :  { %49 = vsyncpa [#allocation4 + $0x1], 0  ;;  %s4194_s29 = smov 0   ;;  %s4196_s2 = smov 0  }
  0x2a   :  { %s4198_s6 = smov 0   ;;  %s4200_s30 = smov 0  }
  0x2b LB: > { %5123 = sst [smem:[#allocation57_spill]] %s4017_s29  ;;  %s4031_s7 = smov [#allocation7]   ;;  %s4029_s30 = sphi %s4200_s30, %s4717_s30   ;;  %s4025_s6 = sphi %s4198_s6, %s5207_s6   ;;  %s4021_s2 = sphi %s4196_s2, %s5206_s2   ;;  %s4017_s29 = sphi %s4194_s29, %s5205_s29  }
  0x2c   : > { %5124 = sst [smem:[#allocation58_spill]] %s4021_s2  ;;  %s633_s3 = sshll.u32 %s4031_s7, 4  ;;  %s4220_s3 = int_to_ptr.vmem [resolvable:$true] %s633_s3 }
  0x2d   : > { %5125 = sst [smem:[#allocation59_spill]] %s4025_s6  ;;  %s4215_s26 = sadd.s32 4294967295, %s4029_s30  }
  0x2e   : > { %5126 = sst [smem:[#allocation60_spill]] %s4029_s30  ;;  %p2548_p0 = scmp.ge.s32.totalorder %s4029_s30, 1 }
  0x2f   : > { %5127 = sst [smem:[#allocation61_spill]] %s4215_s26  ;;  %p5089_p1 = scmp.eq.s32.totalorder %s4215_s26, 0 }
  0x30   : > { %p621_p2 = scmp.lt.s32.totalorder %s4029_s30, 3  ;;  %s4032_s8 = smov [#allocation8]  }
  0x31   : > { %s647_s27 = sshll.u32 %s4032_s8, 4  ;;  %s4033_s28 = smov [#allocation11]   ;;  %s4235_s27 = int_to_ptr.vmem [resolvable:$true] %s647_s27 }
  0x32   : > { %p4222_p3 = pnand %p2548_p0, %p621_p2  ;;  %s671_s9 = sshll.u32 %s4033_s28, 4  ;;  %s4237_s9 = int_to_ptr.vmem [resolvable:$true] %s671_s9 }
  0x33   : > { %s5131_s7 = sld [smem:[#allocation65_spill]] }
  0x34   : > { %s5128_s1 = scalar_select %p4222_p3, 1, 0 }
  0x35   : > { %p2955_p5 = pneg %p4222_p3 }
  0x36   : > { %5129 = sst [smem:[#allocation62_spill]] %s5128_s1 }
  0x37   : > { %p4231_p6 = pnand %p2955_p5, %p5089_p1 }
  0x39   : > { %s3207_s25 = scalar_lea.hbm %s5131_s7, 192  ;;  %p4247_p8 = pneg %p4231_p6 }
  0x3a   : > { %p3208_p7 = scmp.ne.s32.totalorder %s5131_s7, %s3207_s25  ;;  %p3214_p11 = scmp.lt.u32.totalorder %s3207_s25, %s5131_s7 }
  0x3c   : > { %p3210_p9 = pnand %p4247_p8, %p3208_p7 }
  0x3e   : > { %p3211_p10 = pneg %p3210_p9 }
  0x40   : > { %p3216_p12 = pnand %p3214_p11, %p3211_p10 }
  0x42   : > { %3219 = shalt.err (!%p3216_p12)
}
  0x43   : > { %s3220_s29 = scalar_lea.vmem %s4220_s3, 192  ;;  %p3228_p5 = scmp.lt.s32.totalorder %s4220_s3, %s4220_s3 }
  0x44   : > { %p3221_p13 = scmp.ne.s32.totalorder %s4220_s3, %s3220_s29  ;;  %p3229_p4 = scmp.lt.s32.totalorder %s3220_s29, %s3220_s29 }
  0x46   : > { %p3223_p0 = pnand %p3221_p13, %p4247_p8  ;;  %p3230_p7 = por %p3229_p4, %p3228_p5 }
  0x48   : > { %p3224_p2 = pneg %p3223_p0 }
  0x4a   : > { %p3231_p9 = pnand %p3230_p7, %p3224_p2 }
  0x4c   : > { %3234 = shalt.err (!%p3231_p9)
}
  0x4d   : > { %s5085_s1 = smov 64   ;;  %s5087_s25 = smov 4  }
  0x4e   : > { %2958 = dma.hbm_to_vmem [thread:$0]  (!%p4231_p6), %s5131_s7, 192, %s4220_s3, [#allocation6], %s5085_s1, %s5085_s1, %s5087_s25  }
  0x4f   : > { %s5133_s2 = sld [smem:[#allocation66_spill]] }
  0x55   : > { %s5134_s24 = smov %s5133_s2  ;;  %s3235_s29 = scalar_lea.hbm %s5133_s2, 16 }
  0x56   : > { %p3236_p4 = scmp.ne.s32.totalorder %s5134_s24, %s3235_s29  ;;  %p3242_p12 = scmp.lt.u32.totalorder %s3235_s29, %s5134_s24 }
  0x58   : > { %p3238_p10 = pnand %p3236_p4, %p4247_p8 }
  0x5a   : > { %p3239_p11 = pneg %p3238_p10 }
  0x5c   : > { %p3244_p13 = pnand %p3242_p12, %p3239_p11 }
  0x5e   : > { %3247 = shalt.err (!%p3244_p13)
}
  0x5f   : > { %s3248_s3 = scalar_lea.vmem %s4235_s27, 16  ;;  %s3255_s2 = scalar_lea.vmem %s4235_s27, 32 }
  0x60   : > { %p3249_p0 = scmp.ne.s32.totalorder %s4235_s27, %s3248_s3  ;;  %p3256_p7 = scmp.lt.s32.totalorder %s4235_s27, %s4235_s27 }
  0x61   : > { %p3257_p9 = scmp.lt.s32.totalorder %s3255_s2, %s3248_s3 }
  0x62   : > { %p3251_p2 = pnand %p3249_p0, %p4247_p8 }
  0x63   : > { %p3258_p4 = por %p3257_p9, %p3256_p7 }
  0x64   : > { %p3252_p5 = pneg %p3251_p2 }
  0x66   : > { %p3259_p10 = pnand %p3258_p4, %p3252_p5 }
  0x68   : > { %3262 = shalt.err (!%p3259_p10)
}
  0x69   : > { %2961 = dma.hbm_to_vmem [thread:$0]  (!%p4231_p6), %s5134_s24, 16, %s4235_s27, [#allocation9]  }
  0x6a   : > { %s5135_s26 = sld [smem:[#allocation68_spill]] }
  0x70   : > { %s3263_s5 = scalar_lea.hbm %s5135_s26, 16 }
  0x71   : > { %p3264_p11 = scmp.ne.s32.totalorder %s5135_s26, %s3263_s5  ;;  %p3270_p0 = scmp.lt.u32.totalorder %s3263_s5, %s5135_s26 }
  0x73   : > { %p3266_p12 = pnand %p3264_p11, %p4247_p8 }
  0x75   : > { %p3267_p13 = pneg %p3266_p12 }
  0x77   : > { %p3272_p2 = pnand %p3270_p0, %p3267_p13 }
  0x79   : > { %3275 = shalt.err (!%p3272_p2)
}
  0x7a   : > { %s3276_s27 = scalar_lea.vmem %s4237_s9, 16  ;;  %s3283_s2 = scalar_lea.vmem %s4237_s9, 32 }
  0x7b   : > { %p3277_p5 = scmp.ne.s32.totalorder %s4237_s9, %s3276_s27  ;;  %p3284_p4 = scmp.lt.s32.totalorder %s4237_s9, %s4237_s9 }
  0x7c   : > { %p3285_p10 = scmp.lt.s32.totalorder %s3283_s2, %s3276_s27 }
  0x7d   : > { %p3279_p7 = pnand %p3277_p5, %p4247_p8 }
  0x7e   : > { %p3286_p11 = por %p3285_p10, %p3284_p4 }
  0x7f   : > { %p3280_p9 = pneg %p3279_p7 }
  0x81   : > { %p3287_p12 = pnand %p3286_p11, %p3280_p9 }
  0x83   : > { %3290 = shalt.err (!%p3287_p12)
}
  0x84   : > { %2967 = dma.hbm_to_vmem [thread:$0]  (!%p4231_p6), %s5135_s26, 16, %s4237_s9, [#allocation12]  }
  0x85   : > { %s4036_s6 = smov [#allocation14]   ;;  %s4037_s5 = smov [#allocation17]  }
  0x86   : > { %s695_s30 = sshll.u32 %s4036_s6, 4  ;;  %s719_s0 = sshll.u32 %s4037_s5, 4  ;;  %s696_s30 = int_to_ptr.vmem [resolvable:$true] %s695_s30  ;;  %s720_s0 = int_to_ptr.vmem [resolvable:$true] %s719_s0 }
  0x87   : > { %s5136_s3 = sld [smem:[#allocation70_spill]] }
  0x8d   : > { %s3291_s27 = scalar_lea.hbm %s5136_s3, 16 }
  0x8e   : > { %p3292_p13 = scmp.ne.s32.totalorder %s5136_s3, %s3291_s27  ;;  %p3298_p5 = scmp.lt.u32.totalorder %s3291_s27, %s5136_s3 }
  0x90   : > { %p3294_p0 = pnand %p3292_p13, %p4247_p8 }
  0x92   : > { %p3295_p2 = pneg %p3294_p0 }
  0x94   : > { %p3300_p7 = pnand %p3298_p5, %p3295_p2 }
  0x96   : > { %3303 = shalt.err (!%p3300_p7)
}
  0x97   : > { %s3304_s9 = scalar_lea.vmem %s696_s30, 16  ;;  %s3311_s22 = scalar_lea.vmem %s696_s30, 32 }
  0x98   : > { %p3305_p9 = scmp.ne.s32.totalorder %s696_s30, %s3304_s9  ;;  %p3312_p11 = scmp.lt.s32.totalorder %s696_s30, %s696_s30 }
  0x99   : > { %p3313_p12 = scmp.lt.s32.totalorder %s3311_s22, %s3304_s9 }
  0x9a   : > { %p3307_p4 = pnand %p3305_p9, %p4247_p8 }
  0x9b   : > { %p3314_p1 = por %p3313_p12, %p3312_p11 }
  0x9c   : > { %p3308_p10 = pneg %p3307_p4 }
  0x9e   : > { %p3315_p3 = pnand %p3314_p1, %p3308_p10 }
  0xa0   : > { %3318 = shalt.err (!%p3315_p3)
}
  0xa1   : > { %2973 = dma.hbm_to_vmem [thread:$0]  (!%p4231_p6), %s5136_s3, 16, %s696_s30, [#allocation15]  }
  0xa2   : > { %s5137_s28 = sld [smem:[#allocation72_spill]] }
  0xa8   : > { %s3319_s29 = scalar_lea.hbm %s5137_s28, 16 }
  0xa9   : > { %p3320_p13 = scmp.ne.s32.totalorder %s5137_s28, %s3319_s29  ;;  %p3326_p3 = scmp.lt.u32.totalorder %s3319_s29, %s5137_s28 }
  0xab   : > { %p3322_p0 = pnand %p3320_p13, %p4247_p8 }
  0xad   : > { %p3323_p1 = pneg %p3322_p0 }
  0xaf   : > { %p3328_p2 = pnand %p3326_p3, %p3323_p1 }
  0xb1   : > { %3331 = shalt.err (!%p3328_p2)
}
  0xb2   : > { %s3332_s22 = scalar_lea.vmem %s720_s0, 16  ;;  %s3339_s30 = scalar_lea.vmem %s720_s0, 32 }
  0xb3   : > { %p3333_p5 = scmp.ne.s32.totalorder %s720_s0, %s3332_s22  ;;  %p3340_p4 = scmp.lt.s32.totalorder %s720_s0, %s720_s0 }
  0xb4   : > { %p3341_p10 = scmp.lt.s32.totalorder %s3339_s30, %s3332_s22 }
  0xb5   : > { %p3335_p7 = pnand %p3333_p5, %p4247_p8 }
  0xb6   : > { %p3342_p11 = por %p3341_p10, %p3340_p4 }
  0xb7   : > { %p3336_p9 = pneg %p3335_p7 }
  0xb9   : > { %p3343_p12 = pnand %p3342_p11, %p3336_p9 }
  0xbb   : > { %3346 = shalt.err (!%p3343_p12)
}
  0xbc   : > { %2979 = dma.hbm_to_vmem [thread:$0]  (!%p4231_p6), %s5137_s28, 16, %s720_s0, [#allocation18]  }
  0xbd   : > { %s4038_s25 = smov [#allocation20]   ;;  %s4039_s29 = smov [#allocation23]  }
  0xbe   : > { %s741_s5 = sshll.u32 %s4038_s25, 4  ;;  %s763_s27 = sshll.u32 %s4039_s29, 4  ;;  %s742_s5 = int_to_ptr.vmem [resolvable:$true] %s741_s5  ;;  %s764_s27 = int_to_ptr.vmem [resolvable:$true] %s763_s27 }
  0xbf   : > { %s5138_s11 = sld [smem:[#allocation74_spill]] }
  0xc5   : > { %s3347_s9 = scalar_lea.hbm %s5138_s11, 16 }
  0xc6   : > { %p3348_p13 = scmp.ne.s32.totalorder %s5138_s11, %s3347_s9  ;;  %p3354_p3 = scmp.lt.u32.totalorder %s3347_s9, %s5138_s11 }
  0xc8   : > { %p3350_p0 = pnand %p3348_p13, %p4247_p8 }
  0xca   : > { %p3351_p1 = pneg %p3350_p0 }
  0xcc   : > { %p3356_p2 = pnand %p3354_p3, %p3351_p1 }
  0xce   : > { %3359 = shalt.err (!%p3356_p2)
}
  0xcf   : > { %s3360_s0 = scalar_lea.vmem %s742_s5, 16  ;;  %s3367_s6 = scalar_lea.vmem %s742_s5, 32 }
  0xd0   : > { %p3361_p5 = scmp.ne.s32.totalorder %s742_s5, %s3360_s0  ;;  %p3368_p4 = scmp.lt.s32.totalorder %s742_s5, %s742_s5 }
  0xd1   : > { %p3369_p10 = scmp.lt.s32.totalorder %s3367_s6, %s3360_s0 }
  0xd2   : > { %p3363_p7 = pnand %p3361_p5, %p4247_p8 }
  0xd3   : > { %p3370_p11 = por %p3369_p10, %p3368_p4 }
  0xd4   : > { %p3364_p9 = pneg %p3363_p7 }
  0xd6   : > { %p3371_p12 = pnand %p3370_p11, %p3364_p9 }
  0xd8   : > { %3374 = shalt.err (!%p3371_p12)
}
  0xd9   : > { %2985 = dma.hbm_to_vmem [thread:$0]  (!%p4231_p6), %s5138_s11, 16, %s742_s5, [#allocation21]  }
  0xda   : > { %s5139_s13 = sld [smem:[#allocation76_spill]] }
  0xe0   : > { %s3375_s20 = scalar_lea.hbm %s5139_s13, 16 }
  0xe1   : > { %p3376_p13 = scmp.ne.s32.totalorder %s5139_s13, %s3375_s20  ;;  %p3382_p3 = scmp.lt.u32.totalorder %s3375_s20, %s5139_s13 }
  0xe3   : > { %p3378_p0 = pnand %p3376_p13, %p4247_p8 }
  0xe5   : > { %p3379_p1 = pneg %p3378_p0 }
  0xe7   : > { %p3384_p2 = pnand %p3382_p3, %p3379_p1 }
  0xe9   : > { %3387 = shalt.err (!%p3384_p2)
}
  0xea   : > { %s3388_s0 = scalar_lea.vmem %s764_s27, 16  ;;  %s3395_s5 = scalar_lea.vmem %s764_s27, 32 }
  0xeb   : > { %p3389_p5 = scmp.ne.s32.totalorder %s764_s27, %s3388_s0  ;;  %p3396_p4 = scmp.lt.s32.totalorder %s764_s27, %s764_s27 }
  0xec   : > { %p3397_p10 = scmp.lt.s32.totalorder %s3395_s5, %s3388_s0 }
  0xed   : > { %p3391_p7 = pnand %p3389_p5, %p4247_p8 }
  0xee   : > { %p3398_p11 = por %p3397_p10, %p3396_p4 }
  0xef   : > { %p3392_p9 = pneg %p3391_p7 }
  0xf1   : > { %p3399_p12 = pnand %p3398_p11, %p3392_p9 }
  0xf3   : > { %3402 = shalt.err (!%p3399_p12)
}
  0xf4   : > { %2991 = dma.hbm_to_vmem [thread:$0]  (!%p4231_p6), %s5139_s13, 16, %s764_s27, [#allocation24]  }
  0xf5   : > { %s4040_s29 = smov [#allocation26]   ;;  %s4041_s2 = smov [#allocation29]  }
  0xf6   : > { %s787_s3 = sshll.u32 %s4040_s29, 4  ;;  %s811_s20 = sshll.u32 %s4041_s2, 4  ;;  %s788_s3 = int_to_ptr.vmem [resolvable:$true] %s787_s3  ;;  %s812_s20 = int_to_ptr.vmem [resolvable:$true] %s811_s20 }
  0xf7   : > { %s5140_s15 = sld [smem:[#allocation78_spill]] }
  0xfd   : > { %s3403_s30 = scalar_lea.hbm %s5140_s15, 16 }
  0xfe   : > { %p3404_p13 = scmp.ne.s32.totalorder %s5140_s15, %s3403_s30  ;;  %p3410_p3 = scmp.lt.u32.totalorder %s3403_s30, %s5140_s15 }
 0x100   : > { %p3406_p0 = pnand %p3404_p13, %p4247_p8 }
 0x102   : > { %p3407_p1 = pneg %p3406_p0 }
 0x104   : > { %p3412_p2 = pnand %p3410_p3, %p3407_p1 }
 0x106   : > { %3415 = shalt.err (!%p3412_p2)
}
 0x107   : > { %s3416_s27 = scalar_lea.vmem %s788_s3, 16  ;;  %s3423_s25 = scalar_lea.vmem %s788_s3, 32 }
 0x108   : > { %p3417_p5 = scmp.ne.s32.totalorder %s788_s3, %s3416_s27  ;;  %p3424_p4 = scmp.lt.s32.totalorder %s788_s3, %s788_s3 }
 0x109   : > { %p3425_p10 = scmp.lt.s32.totalorder %s3423_s25, %s3416_s27 }
 0x10a   : > { %p3419_p7 = pnand %p3417_p5, %p4247_p8 }
 0x10b   : > { %p3426_p11 = por %p3425_p10, %p3424_p4 }
 0x10c   : > { %p3420_p9 = pneg %p3419_p7 }
 0x10e   : > { %p3427_p12 = pnand %p3426_p11, %p3420_p9 }
 0x110   : > { %3430 = shalt.err (!%p3427_p12)
}
 0x111   : > { %2997 = dma.hbm_to_vmem [thread:$0]  (!%p4231_p6), %s5140_s15, 16, %s788_s3, [#allocation27]  }
 0x112   : > { %s5141_s17 = sld [smem:[#allocation80_spill]] }
 0x118   : > { %s3431_s30 = scalar_lea.hbm %s5141_s17, 16 }
 0x119   : > { %p3432_p13 = scmp.ne.s32.totalorder %s5141_s17, %s3431_s30  ;;  %p3438_p3 = scmp.lt.u32.totalorder %s3431_s30, %s5141_s17 }
 0x11b   : > { %p3434_p0 = pnand %p3432_p13, %p4247_p8 }
 0x11d   : > { %p3435_p1 = pneg %p3434_p0 }
 0x11f   : > { %p3440_p2 = pnand %p3438_p3, %p3435_p1 }
 0x121   : > { %3443 = shalt.err (!%p3440_p2)
}
 0x122   : > { %s3444_s27 = scalar_lea.vmem %s812_s20, 16  ;;  %s3451_s3 = scalar_lea.vmem %s812_s20, 32 }
 0x123   : > { %p3445_p5 = scmp.ne.s32.totalorder %s812_s20, %s3444_s27  ;;  %p3452_p4 = scmp.lt.s32.totalorder %s812_s20, %s812_s20 }
 0x124   : > { %p3453_p10 = scmp.lt.s32.totalorder %s3451_s3, %s3444_s27 }
 0x125   : > { %p3447_p7 = pnand %p3445_p5, %p4247_p8 }
 0x126   : > { %p3454_p11 = por %p3453_p10, %p3452_p4 }
 0x127   : > { %p3448_p9 = pneg %p3447_p7 }
 0x129   : > { %p3455_p12 = pnand %p3454_p11, %p3448_p9 }
 0x12b   : > { %3458 = shalt.err (!%p3455_p12)
}
 0x12c   : > { %3003 = dma.hbm_to_vmem [thread:$0]  (!%p4231_p6), %s5141_s17, 16, %s812_s20, [#allocation30]  }
 0x12d   : > { %s4042_s2 = smov [#allocation32]   ;;  %s4043_s22 = smov [#allocation35]  }
 0x12e   : > { %s834_s9 = sshll.u32 %s4042_s2, 4  ;;  %s860_s30 = sshll.u32 %s4043_s22, 4  ;;  %s835_s9 = int_to_ptr.vmem [resolvable:$true] %s834_s9  ;;  %s861_s30 = int_to_ptr.vmem [resolvable:$true] %s860_s30 }
 0x12f   : > { %s5142_s19 = sld [smem:[#allocation82_spill]] }
 0x135   : > { %s3459_s5 = scalar_lea.hbm %s5142_s19, 256 }
 0x136   : > { %p3460_p13 = scmp.ne.s32.totalorder %s5142_s19, %s3459_s5  ;;  %p3466_p3 = scmp.lt.u32.totalorder %s3459_s5, %s5142_s19 }
 0x138   : > { %p3462_p0 = pnand %p3460_p13, %p4247_p8 }
 0x13a   : > { %p3463_p1 = pneg %p3462_p0 }
 0x13c   : > { %p3468_p2 = pnand %p3466_p3, %p3463_p1 }
 0x13e   : > { %3471 = shalt.err (!%p3468_p2)
}
 0x13f   : > { %s3472_s20 = scalar_lea.vmem %s835_s9, 256  ;;  %p3480_p4 = scmp.lt.s32.totalorder %s835_s9, %s835_s9 }
 0x140   : > { %p3473_p5 = scmp.ne.s32.totalorder %s835_s9, %s3472_s20  ;;  %p3481_p10 = scmp.lt.s32.totalorder %s3472_s20, %s3472_s20 }
 0x142   : > { %p3475_p7 = pnand %p3473_p5, %p4247_p8  ;;  %p3482_p11 = por %p3481_p10, %p3480_p4 }
 0x144   : > { %p3476_p9 = pneg %p3475_p7 }
 0x146   : > { %p3483_p12 = pnand %p3482_p11, %p3476_p9 }
 0x148   : > { %3486 = shalt.err (!%p3483_p12)
}
 0x149   : > { %s5143_s29 = smov 4   ;;  %s5144_s2 = smov 64  }
 0x14a   : > { %3009 = dma.hbm_to_vmem [thread:$0]  (!%p4231_p6), %s5142_s19, 256, %s835_s9, [#allocation33], %s5144_s2, %s5144_s2, %s5143_s29  }
 0x14b   : > { %s3487_s6 = scalar_lea.hbm %s5058_s21, 128 }
 0x14c   : > { %p3488_p13 = scmp.ne.s32.totalorder %s5058_s21, %s3487_s6  ;;  %p3494_p3 = scmp.lt.u32.totalorder %s3487_s6, %s5058_s21 }
 0x14e   : > { %p3490_p0 = pnand %p3488_p13, %p4247_p8 }
 0x150   : > { %p3491_p1 = pneg %p3490_p0 }
 0x152   : > { %p3496_p2 = pnand %p3494_p3, %p3491_p1 }
 0x154   : > { %3499 = shalt.err (!%p3496_p2)
}
 0x155   : > { %s3500_s22 = scalar_lea.vmem %s861_s30, 128  ;;  %p3508_p4 = scmp.lt.s32.totalorder %s861_s30, %s861_s30 }
 0x156   : > { %p3501_p5 = scmp.ne.s32.totalorder %s861_s30, %s3500_s22  ;;  %p3509_p10 = scmp.lt.s32.totalorder %s3500_s22, %s3500_s22 }
 0x158   : > { %p3503_p7 = pnand %p3501_p5, %p4247_p8  ;;  %p3510_p11 = por %p3509_p10, %p3508_p4 }
 0x15a   : > { %p3504_p9 = pneg %p3503_p7 }
 0x15c   : > { %p3511_p12 = pnand %p3510_p11, %p3504_p9 }
 0x15e   : > { %3514 = shalt.err (!%p3511_p12)
}
 0x15f   : > { %3015 = dma.hbm_to_vmem [thread:$0]  (!%p4231_p6), %s5058_s21, 128, %s861_s30, [#allocation36], %s5144_s2, %s5144_s2, %s5143_s29  }
 0x160   : > { %s4044_s0 = smov [#allocation38]   ;;  %s4045_s6 = smov [#allocation10]  }
 0x161   : > { %s886_s5 = sshll.u32 %s4044_s0, 4  ;;  %s657_s27 = sshll.u32 %s4045_s6, 4  ;;  %s887_s5 = int_to_ptr.vmem [resolvable:$true] %s886_s5  ;;  %s658_s27 = int_to_ptr.vmem [resolvable:$true] %s657_s27 }
 0x162   : > { %s3515_s20 = scalar_lea.hbm %s5060_s23, 256 }
 0x163   : > { %p3516_p13 = scmp.ne.s32.totalorder %s5060_s23, %s3515_s20  ;;  %p3522_p3 = scmp.lt.u32.totalorder %s3515_s20, %s5060_s23 }
 0x165   : > { %p3518_p0 = pnand %p3516_p13, %p4247_p8 }
 0x167   : > { %p3519_p1 = pneg %p3518_p0 }
 0x169   : > { %p3524_p2 = pnand %p3522_p3, %p3519_p1 }
 0x16b   : > { %3527 = shalt.err (!%p3524_p2)
}
 0x16c   : > { %s3528_s30 = scalar_lea.vmem %s887_s5, 256  ;;  %p3536_p4 = scmp.lt.s32.totalorder %s887_s5, %s887_s5 }
 0x16d   : > { %p3529_p5 = scmp.ne.s32.totalorder %s887_s5, %s3528_s30  ;;  %p3537_p10 = scmp.lt.s32.totalorder %s3528_s30, %s3528_s30 }
 0x16f   : > { %p3531_p7 = pnand %p3529_p5, %p4247_p8  ;;  %p3538_p11 = por %p3537_p10, %p3536_p4 }
 0x171   : > { %p3532_p9 = pneg %p3531_p7 }
 0x173   : > { %p3539_p12 = pnand %p3538_p11, %p3532_p9 }
 0x175   : > { %3542 = shalt.err (!%p3539_p12)
}
 0x176   : > { %3021 = dma.hbm_to_vmem [thread:$0]  (!%p4231_p6), %s5060_s23, 256, %s887_s5, [#allocation39], %s5144_s2, %s5144_s2, %s5143_s29  }
 0x177   : > { %s5145_s6 = sld [smem:[#allocation67_spill]] }
 0x17d   : > { %s5146_s3 = smov %s5145_s6  ;;  %s3543_s25 = scalar_lea.hbm %s5145_s6, 128 }
 0x17e   : > { %p3544_p13 = scmp.ne.s32.totalorder %s5146_s3, %s3543_s25  ;;  %p3550_p3 = scmp.lt.u32.totalorder %s3543_s25, %s5146_s3 }
 0x180   : > { %p3546_p0 = pnand %p3544_p13, %p4247_p8 }
 0x182   : > { %p3547_p1 = pneg %p3546_p0 }
 0x184   : > { %p3552_p2 = pnand %p3550_p3, %p3547_p1 }
 0x186   : > { %3555 = shalt.err (!%p3552_p2)
}
 0x187   : > { %s3556_s11 = scalar_lea.vmem %s658_s27, 128  ;;  %p3564_p4 = scmp.lt.s32.totalorder %s658_s27, %s658_s27 }
 0x188   : > { %p3557_p5 = scmp.ne.s32.totalorder %s658_s27, %s3556_s11  ;;  %p3565_p10 = scmp.lt.s32.totalorder %s3556_s11, %s3556_s11 }
 0x18a   : > { %p3559_p7 = pnand %p3557_p5, %p4247_p8  ;;  %p3566_p11 = por %p3565_p10, %p3564_p4 }
 0x18c   : > { %p3560_p9 = pneg %p3559_p7 }
 0x18e   : > { %p3567_p12 = pnand %p3566_p11, %p3560_p9 }
 0x190   : > { %3570 = shalt.err (!%p3567_p12)
}
 0x191   : > { %2964 = dma.hbm_to_vmem [thread:$0]  (!%p4231_p6), %s5146_s3, 128, %s658_s27, [#allocation9], %s5144_s2, %s5144_s2, %s5143_s29  }
 0x192   : > { %s4046_s1 = smov [#allocation13]   ;;  %s4047_s6 = smov [#allocation16]  }
 0x193   : > { %s681_s0 = sshll.u32 %s4046_s1, 4  ;;  %s705_s25 = sshll.u32 %s4047_s6, 4  ;;  %s682_s0 = int_to_ptr.vmem [resolvable:$true] %s681_s0  ;;  %s706_s25 = int_to_ptr.vmem [resolvable:$true] %s705_s25 }
 0x194   : > { %s5147_s9 = sld [smem:[#allocation69_spill]] }
 0x19a   : > { %s3571_s30 = scalar_lea.hbm %s5147_s9, 256 }
 0x19b   : > { %p3572_p13 = scmp.ne.s32.totalorder %s5147_s9, %s3571_s30  ;;  %p3578_p3 = scmp.lt.u32.totalorder %s3571_s30, %s5147_s9 }
 0x19d   : > { %p3574_p0 = pnand %p3572_p13, %p4247_p8 }
 0x19f   : > { %p3575_p1 = pneg %p3574_p0 }
 0x1a1   : > { %p3580_p2 = pnand %p3578_p3, %p3575_p1 }
 0x1a3   : > { %3583 = shalt.err (!%p3580_p2)
}
 0x1a4   : > { %s3584_s27 = scalar_lea.vmem %s682_s0, 256  ;;  %p3592_p4 = scmp.lt.s32.totalorder %s682_s0, %s682_s0 }
 0x1a5   : > { %p3585_p5 = scmp.ne.s32.totalorder %s682_s0, %s3584_s27  ;;  %p3593_p10 = scmp.lt.s32.totalorder %s3584_s27, %s3584_s27 }
 0x1a7   : > { %p3587_p7 = pnand %p3585_p5, %p4247_p8  ;;  %p3594_p11 = por %p3593_p10, %p3592_p4 }
 0x1a9   : > { %p3588_p9 = pneg %p3587_p7 }
 0x1ab   : > { %p3595_p12 = pnand %p3594_p11, %p3588_p9 }
 0x1ad   : > { %3598 = shalt.err (!%p3595_p12)
}
 0x1ae   : > { %2970 = dma.hbm_to_vmem [thread:$0]  (!%p4231_p6), %s5147_s9, 256, %s682_s0, [#allocation12], %s5144_s2, %s5144_s2, %s5143_s29  }
 0x1af   : > { %s5148_s6 = sld [smem:[#allocation71_spill]] }
 0x1b5   : > { %s5149_s20 = smov %s5148_s6  ;;  %s3599_s22 = scalar_lea.hbm %s5148_s6, 256 }
 0x1b6   : > { %p3600_p13 = scmp.ne.s32.totalorder %s5149_s20, %s3599_s22  ;;  %p3606_p3 = scmp.lt.u32.totalorder %s3599_s22, %s5149_s20 }
 0x1b8   : > { %p3602_p0 = pnand %p3600_p13, %p4247_p8 }
 0x1ba   : > { %p3603_p1 = pneg %p3602_p0 }
 0x1bc   : > { %p3608_p2 = pnand %p3606_p3, %p3603_p1 }
 0x1be   : > { %3611 = shalt.err (!%p3608_p2)
}
 0x1bf   : > { %s3612_s13 = scalar_lea.vmem %s706_s25, 256  ;;  %p3620_p4 = scmp.lt.s32.totalorder %s706_s25, %s706_s25 }
 0x1c0   : > { %p3613_p5 = scmp.ne.s32.totalorder %s706_s25, %s3612_s13  ;;  %p3621_p10 = scmp.lt.s32.totalorder %s3612_s13, %s3612_s13 }
 0x1c2   : > { %p3615_p7 = pnand %p3613_p5, %p4247_p8  ;;  %p3622_p11 = por %p3621_p10, %p3620_p4 }
 0x1c4   : > { %p3616_p9 = pneg %p3615_p7 }
 0x1c6   : > { %p3623_p12 = pnand %p3622_p11, %p3616_p9 }
 0x1c8   : > { %3626 = shalt.err (!%p3623_p12)
}
 0x1c9   : > { %2976 = dma.hbm_to_vmem [thread:$0]  (!%p4231_p6), %s5149_s20, 256, %s706_s25, [#allocation15], %s5144_s2, %s5144_s2, %s5143_s29  }
 0x1ca   : > { %s4048_s7 = smov [#allocation19]   ;;  %s4049_s6 = smov [#allocation22]  }
 0x1cb   : > { %s730_s1 = sshll.u32 %s4048_s7, 4  ;;  %s752_s22 = sshll.u32 %s4049_s6, 4  ;;  %s731_s1 = int_to_ptr.vmem [resolvable:$true] %s730_s1  ;;  %s753_s22 = int_to_ptr.vmem [resolvable:$true] %s752_s22 }
 0x1cc   : > { %s5150_s10 = sld [smem:[#allocation73_spill]] }
 0x1d2   : > { %s3627_s5 = scalar_lea.hbm %s5150_s10, 16 }
 0x1d3   : > { %p3628_p13 = scmp.ne.s32.totalorder %s5150_s10, %s3627_s5  ;;  %p3634_p3 = scmp.lt.u32.totalorder %s3627_s5, %s5150_s10 }
 0x1d5   : > { %p3630_p0 = pnand %p3628_p13, %p4247_p8 }
 0x1d7   : > { %p3631_p1 = pneg %p3630_p0 }
 0x1d9   : > { %p3636_p2 = pnand %p3634_p3, %p3631_p1 }
 0x1db   : > { %3639 = shalt.err (!%p3636_p2)
}
 0x1dc   : > { %s3640_s25 = scalar_lea.vmem %s731_s1, 16  ;;  %s3647_s15 = scalar_lea.vmem %s731_s1, 32 }
 0x1dd   : > { %p3641_p5 = scmp.ne.s32.totalorder %s731_s1, %s3640_s25  ;;  %p3648_p4 = scmp.lt.s32.totalorder %s731_s1, %s731_s1 }
 0x1de   : > { %p3649_p10 = scmp.lt.s32.totalorder %s3647_s15, %s3640_s25 }
 0x1df   : > { %p3643_p7 = pnand %p3641_p5, %p4247_p8 }
 0x1e0   : > { %p3650_p11 = por %p3649_p10, %p3648_p4 }
 0x1e1   : > { %p3644_p9 = pneg %p3643_p7 }
 0x1e3   : > { %p3651_p12 = pnand %p3650_p11, %p3644_p9 }
 0x1e5   : > { %3654 = shalt.err (!%p3651_p12)
}
 0x1e6   : > { %2982 = dma.hbm_to_vmem [thread:$0]  (!%p4231_p6), %s5150_s10, 16, %s731_s1, [#allocation18]  }
 0x1e7   : > { %s5151_s12 = sld [smem:[#allocation75_spill]] }
 0x1ed   : > { %s3655_s11 = scalar_lea.hbm %s5151_s12, 16 }
 0x1ee   : > { %p3656_p13 = scmp.ne.s32.totalorder %s5151_s12, %s3655_s11  ;;  %p3662_p3 = scmp.lt.u32.totalorder %s3655_s11, %s5151_s12 }
 0x1f0   : > { %p3658_p0 = pnand %p3656_p13, %p4247_p8 }
 0x1f2   : > { %p3659_p1 = pneg %p3658_p0 }
 0x1f4   : > { %p3664_p2 = pnand %p3662_p3, %p3659_p1 }
 0x1f6   : > { %3667 = shalt.err (!%p3664_p2)
}
 0x1f7   : > { %s3668_s25 = scalar_lea.vmem %s753_s22, 16  ;;  %s3675_s1 = scalar_lea.vmem %s753_s22, 32 }
 0x1f8   : > { %p3669_p5 = scmp.ne.s32.totalorder %s753_s22, %s3668_s25  ;;  %p3676_p4 = scmp.lt.s32.totalorder %s753_s22, %s753_s22 }
 0x1f9   : > { %p3677_p10 = scmp.lt.s32.totalorder %s3675_s1, %s3668_s25 }
 0x1fa   : > { %p3671_p7 = pnand %p3669_p5, %p4247_p8 }
 0x1fb   : > { %p3678_p11 = por %p3677_p10, %p3676_p4 }
 0x1fc   : > { %p3672_p9 = pneg %p3671_p7 }
 0x1fe   : > { %p3679_p12 = pnand %p3678_p11, %p3672_p9 }
 0x200   : > { %3682 = shalt.err (!%p3679_p12)
}
 0x201   : > { %2988 = dma.hbm_to_vmem [thread:$0]  (!%p4231_p6), %s5151_s12, 16, %s753_s22, [#allocation21]  }
 0x202   : > { %s4050_s6 = smov [#allocation25]   ;;  %s4051_s30 = smov [#allocation28]  }
 0x203   : > { %s773_s3 = sshll.u32 %s4050_s6, 4  ;;  %s797_s11 = sshll.u32 %s4051_s30, 4  ;;  %s774_s3 = int_to_ptr.vmem [resolvable:$true] %s773_s3  ;;  %s798_s11 = int_to_ptr.vmem [resolvable:$true] %s797_s11 }
 0x204   : > { %s5152_s14 = sld [smem:[#allocation77_spill]] }
 0x20a   : > { %s3683_s13 = scalar_lea.hbm %s5152_s14, 256 }
 0x20b   : > { %p3684_p13 = scmp.ne.s32.totalorder %s5152_s14, %s3683_s13  ;;  %p3690_p3 = scmp.lt.u32.totalorder %s3683_s13, %s5152_s14 }
 0x20d   : > { %p3686_p0 = pnand %p3684_p13, %p4247_p8 }
 0x20f   : > { %p3687_p1 = pneg %p3686_p0 }
 0x211   : > { %p3692_p2 = pnand %p3690_p3, %p3687_p1 }
 0x213   : > { %3695 = shalt.err (!%p3692_p2)
}
 0x214   : > { %s3696_s22 = scalar_lea.vmem %s774_s3, 256  ;;  %p3704_p4 = scmp.lt.s32.totalorder %s774_s3, %s774_s3 }
 0x215   : > { %p3697_p5 = scmp.ne.s32.totalorder %s774_s3, %s3696_s22  ;;  %p3705_p10 = scmp.lt.s32.totalorder %s3696_s22, %s3696_s22 }
 0x217   : > { %p3699_p7 = pnand %p3697_p5, %p4247_p8  ;;  %p3706_p11 = por %p3705_p10, %p3704_p4 }
 0x219   : > { %p3700_p9 = pneg %p3699_p7 }
 0x21b   : > { %p3707_p12 = pnand %p3706_p11, %p3700_p9 }
 0x21d   : > { %3710 = shalt.err (!%p3707_p12)
}
 0x21e   : > { %2994 = dma.hbm_to_vmem [thread:$0]  (!%p4231_p6), %s5152_s14, 256, %s774_s3, [#allocation24], %s5144_s2, %s5144_s2, %s5143_s29  }
 0x21f   : > { %s5153_s16 = sld [smem:[#allocation79_spill]] }
 0x225   : > { %s3711_s27 = scalar_lea.hbm %s5153_s16, 1024 }
 0x226   : > { %p3712_p13 = scmp.ne.s32.totalorder %s5153_s16, %s3711_s27  ;;  %p3718_p3 = scmp.lt.u32.totalorder %s3711_s27, %s5153_s16 }
 0x228   : > { %p3714_p0 = pnand %p3712_p13, %p4247_p8 }
 0x22a   : > { %p3715_p1 = pneg %p3714_p0 }
 0x22c   : > { %p3720_p2 = pnand %p3718_p3, %p3715_p1 }
 0x22e   : > { %3723 = shalt.err (!%p3720_p2)
}
 0x22f   : > { %s3724_s15 = scalar_lea.vmem %s798_s11, 1024  ;;  %p3732_p4 = scmp.lt.s32.totalorder %s798_s11, %s798_s11 }
 0x230   : > { %p3725_p5 = scmp.ne.s32.totalorder %s798_s11, %s3724_s15  ;;  %p3733_p10 = scmp.lt.s32.totalorder %s3724_s15, %s3724_s15 }
 0x232   : > { %p3727_p7 = pnand %p3725_p5, %p4247_p8  ;;  %p3734_p11 = por %p3733_p10, %p3732_p4 }
 0x234   : > { %p3728_p9 = pneg %p3727_p7 }
 0x236   : > { %p3735_p12 = pnand %p3734_p11, %p3728_p9 }
 0x238   : > { %3738 = shalt.err (!%p3735_p12)
}
 0x239   : > { %3000 = dma.hbm_to_vmem [thread:$0]  (!%p4231_p6), %s5153_s16, 1024, %s798_s11, [#allocation27], %s5144_s2, %s5144_s2, %s5143_s29  }
 0x23a   : > { %s4052_s7 = smov [#allocation31]   ;;  %s4053_s30 = smov [#allocation34]  }
 0x23b   : > { %s821_s6 = sshll.u32 %s4052_s7, 4  ;;  %s847_s5 = sshll.u32 %s4053_s30, 4  ;;  %s822_s6 = int_to_ptr.vmem [resolvable:$true] %s821_s6  ;;  %s848_s5 = int_to_ptr.vmem [resolvable:$true] %s847_s5 }
 0x23c   : > { %s5154_s18 = sld [smem:[#allocation81_spill]] }
 0x242   : > { %s3739_s0 = scalar_lea.hbm %s5154_s18, 256 }
 0x243   : > { %p3740_p13 = scmp.ne.s32.totalorder %s5154_s18, %s3739_s0  ;;  %p3746_p3 = scmp.lt.u32.totalorder %s3739_s0, %s5154_s18 }
 0x245   : > { %p3742_p0 = pnand %p3740_p13, %p4247_p8 }
 0x247   : > { %p3743_p1 = pneg %p3742_p0 }
 0x249   : > { %p3748_p2 = pnand %p3746_p3, %p3743_p1 }
 0x24b   : > { %3751 = shalt.err (!%p3748_p2)
}
 0x24c   : > { %s3752_s11 = scalar_lea.vmem %s822_s6, 256  ;;  %p3760_p4 = scmp.lt.s32.totalorder %s822_s6, %s822_s6 }
 0x24d   : > { %p3753_p5 = scmp.ne.s32.totalorder %s822_s6, %s3752_s11  ;;  %p3761_p10 = scmp.lt.s32.totalorder %s3752_s11, %s3752_s11 }
 0x24f   : > { %p3755_p7 = pnand %p3753_p5, %p4247_p8  ;;  %p3762_p11 = por %p3761_p10, %p3760_p4 }
 0x251   : > { %p3756_p9 = pneg %p3755_p7 }
 0x253   : > { %p3763_p12 = pnand %p3762_p11, %p3756_p9 }
 0x255   : > { %3766 = shalt.err (!%p3763_p12)
}
 0x256   : > { %3006 = dma.hbm_to_vmem [thread:$0]  (!%p4231_p6), %s5154_s18, 256, %s822_s6, [#allocation30], %s5144_s2, %s5144_s2, %s5143_s29  }
 0x257   : > { %s5155_s13 = sld [smem:[#allocation83_spill]] }
 0x25d   : > { %s3767_s0 = scalar_lea.hbm %s5155_s13, 1024 }
 0x25e   : > { %p3768_p13 = scmp.ne.s32.totalorder %s5155_s13, %s3767_s0  ;;  %p3774_p3 = scmp.lt.u32.totalorder %s3767_s0, %s5155_s13 }
 0x260   : > { %p3770_p0 = pnand %p3768_p13, %p4247_p8 }
 0x262   : > { %p3771_p1 = pneg %p3770_p0 }
 0x264   : > { %p3776_p2 = pnand %p3774_p3, %p3771_p1 }
 0x266   : > { %3779 = shalt.err (!%p3776_p2)
}
 0x267   : > { %s3780_s11 = scalar_lea.vmem %s848_s5, 1024  ;;  %p3788_p4 = scmp.lt.s32.totalorder %s848_s5, %s848_s5 }
 0x268   : > { %p3781_p5 = scmp.ne.s32.totalorder %s848_s5, %s3780_s11  ;;  %p3789_p10 = scmp.lt.s32.totalorder %s3780_s11, %s3780_s11 }
 0x26a   : > { %p3783_p7 = pnand %p3781_p5, %p4247_p8  ;;  %p3790_p11 = por %p3789_p10, %p3788_p4 }
 0x26c   : > { %p3784_p9 = pneg %p3783_p7 }
 0x26e   : > { %p3791_p12 = pnand %p3790_p11, %p3784_p9 }
 0x270   : > { %3794 = shalt.err (!%p3791_p12)
}
 0x271   : > { %3012 = dma.hbm_to_vmem [thread:$0]  (!%p4231_p6), %s5155_s13, 1024, %s848_s5, [#allocation33], %s5144_s2, %s5144_s2, %s5143_s29  }
 0x272   : > { %s4054_s7 = smov [#allocation37]   ;;  %s4055_s27 = smov [#allocation40]  }
 0x273   : > { %s873_s30 = sshll.u32 %s4054_s7, 4  ;;  %s899_s0 = sshll.u32 %s4055_s27, 4  ;;  %s874_s30 = int_to_ptr.vmem [resolvable:$true] %s873_s30  ;;  %s900_s0 = int_to_ptr.vmem [resolvable:$true] %s899_s0 }
 0x274   : > { %s5156_s15 = sld [smem:[#allocation84_spill]] }
 0x27a   : > { %s3795_s3 = scalar_lea.hbm %s5156_s15, 128 }
 0x27b   : > { %p3796_p13 = scmp.ne.s32.totalorder %s5156_s15, %s3795_s3  ;;  %p3802_p3 = scmp.lt.u32.totalorder %s3795_s3, %s5156_s15 }
 0x27d   : > { %p3798_p0 = pnand %p3796_p13, %p4247_p8 }
 0x27f   : > { %p3799_p1 = pneg %p3798_p0 }
 0x281   : > { %p3804_p2 = pnand %p3802_p3, %p3799_p1 }
 0x283   : > { %3807 = shalt.err (!%p3804_p2)
}
 0x284   : > { %s3808_s5 = scalar_lea.vmem %s874_s30, 128  ;;  %p3816_p4 = scmp.lt.s32.totalorder %s874_s30, %s874_s30 }
 0x285   : > { %p3809_p5 = scmp.ne.s32.totalorder %s874_s30, %s3808_s5  ;;  %p3817_p10 = scmp.lt.s32.totalorder %s3808_s5, %s3808_s5 }
 0x287   : > { %p3811_p7 = pnand %p3809_p5, %p4247_p8  ;;  %p3818_p11 = por %p3817_p10, %p3816_p4 }
 0x289   : > { %p3812_p9 = pneg %p3811_p7 }
 0x28b   : > { %p3819_p12 = pnand %p3818_p11, %p3812_p9 }
 0x28d   : > { %3822 = shalt.err (!%p3819_p12)
}
 0x28e   : > { %3018 = dma.hbm_to_vmem [thread:$0]  (!%p4231_p6), %s5156_s15, 128, %s874_s30, [#allocation36], %s5144_s2, %s5144_s2, %s5143_s29  }
 0x28f   : > { %s5157_s27 = sld [smem:[#allocation85_spill]] }
 0x295   : > { %s3823_s25 = scalar_lea.hbm %s5157_s27, 1024 }
 0x296   : > { %p3824_p13 = scmp.ne.s32.totalorder %s5157_s27, %s3823_s25  ;;  %p3830_p3 = scmp.lt.u32.totalorder %s3823_s25, %s5157_s27 }
 0x298   : > { %p3826_p0 = pnand %p3824_p13, %p4247_p8 }
 0x29a   : > { %p3827_p1 = pneg %p3826_p0 }
 0x29c   : > { %p3832_p2 = pnand %p3830_p3, %p3827_p1 }
 0x29e   : > { %3835 = shalt.err (!%p3832_p2)
}
 0x29f   : > { %s3836_s5 = scalar_lea.vmem %s900_s0, 1024  ;;  %p3844_p4 = scmp.lt.s32.totalorder %s900_s0, %s900_s0 }
 0x2a0   : > { %p3837_p5 = scmp.ne.s32.totalorder %s900_s0, %s3836_s5  ;;  %p3845_p10 = scmp.lt.s32.totalorder %s3836_s5, %s3836_s5 }
 0x2a2   : > { %p3839_p7 = pnand %p3837_p5, %p4247_p8  ;;  %p3846_p11 = por %p3845_p10, %p3844_p4 }
 0x2a4   : > { %p3840_p9 = pneg %p3839_p7 }
 0x2a6   : > { %p3847_p12 = pnand %p3846_p11, %p3840_p9 }
 0x2a8   : > { %3850 = shalt.err (!%p3847_p12)
}
 0x2a9   : > { %s5158_s9 = sld [smem:[#allocation60_spill]]  ;;  %s5159_s22 = sld [smem:[#allocation59_spill]] }
 0x2aa   : > { %s5160_s8 = sld [smem:[#allocation58_spill]]  ;;  %s5161_s7 = sld [smem:[#allocation57_spill]] }
 0x2ab   : > { %s5162_s25 = sld [smem:[#allocation61_spill]]  ;;  %s5169_s14 = sld [smem:[#allocation64_spill]] }
 0x2ac   : > { %3024 = dma.hbm_to_vmem [thread:$0]  (!%p4231_p6), %s5157_s27, 1024, %s900_s0, [#allocation39], %s5144_s2, %s5144_s2, %s5143_s29  }
 0x2af   : > { %s2547_s4 = sadd.s32 4294967294, %s5158_s9   ;;  %s4717_s30 = sadd.s32 1, %s5158_s9  }
 0x2b0   : > { %s62_s1 = sadd.s32 1, %s5159_s22  ;;  %s59_s3 = ssub.s32 %s5158_s9, %s4717_s30 }
 0x2b1   : > { %p69_p8 = scmp.ne.s32.totalorder %s5159_s22, %s5160_s8  ;;  %p60_p13 = scmp.eq.s32.totalorder %s59_s3, 0 }
 0x2b2   : > { %p70_p0 = scmp.eq.s32.totalorder %s5158_s9, 0  ;;  %p75_p1 = scmp.ne.s32.totalorder %s5160_s8, %s5161_s7 }
 0x2b3   : > { %p608_p3 = scmp.eq.s32.totalorder %s5162_s25, 1  ;;  %p5163_p5 = scmp.eq.s32.totalorder %s5162_s25, 0 }
 0x2b4   : > { %s4729_s11 = scalar_select %p60_p13, %s5159_s22, %s62_s1  }
 0x2b5   : > { %p71_p2 = por %p70_p0, %p69_p8  ;;  %p4733_p7 = por %p5163_p5, %p75_p1 }
 0x2b6   : > { %p4737_p6 = por %p608_p3, %p69_p8  ;;  %p614_p9 = scmp.eq.s32.totalorder %s2547_s4, 1 }
 0x2b7   : > { %s5164_s6 = scalar_select %p4733_p7, 1, 0 }
 0x2b8   : > { %s5165_s29 = scalar_select %p4737_p6, 1, 0 }
 0x2b9   : > { %p3059_p4 = scmp.lt.s32.totalorder %s5158_s9, 2  ;;  %s913_s2 = sand.u32 1, %s5159_s22  }
 0x2ba   : > { %p4743_p10 = por %p614_p9, %p75_p1  ;;  %s4747_s5 = sshll.u32 %s913_s2, 3 }
 0x2bb   : > { %s2574_s10 = sshll.u32 %s5158_s9, 7  ;;  %s5167_s25 = sld [smem:[#allocation63_spill]] }
 0x2bc   : > { %s5166_s0 = scalar_select %p4743_p10, 1, 0 }
 0x2bd   : > { %s917_s4 = scalar_lea.vmem [#allocation2], %s4747_s5  ;;  %p4756_p11 = pnand %p3059_p4, %p71_p2 }
 0x2be   : > { %s924_s3 = sshll.u32 %s917_s4, 4  ;;  %s4765_s8 = scalar_lea.hbm %s5169_s14, %s2574_s10  ;;  %s4760_s3 = int_to_ptr.vmem [resolvable:$true] %s924_s3 }
 0x2bf   : > { %s914_s7 = scalar_lea.sflag [#allocation3], %s913_s2  ;;  %p3853_p8 = pneg %p4756_p11 }
 0x2c1   : > { %s4753_s1 = scalar_lea.hbm %s5167_s25, %s2574_s10  ;;  %s3856_s17 = scalar_lea.hbm %s5167_s25, 256 }
 0x2c2   : > { %s3851_s15 = scalar_lea.hbm %s4753_s1, 128  ;;  %p3857_p1 = scmp.lt.u32.totalorder %s4753_s1, %s5167_s25 }
 0x2c3   : > { %p3852_p12 = scmp.ne.s32.totalorder %s4753_s1, %s3851_s15  ;;  %p3858_p3 = scmp.lt.u32.totalorder %s3856_s17, %s3851_s15 }
 0x2c4   : > { %p3860_p5 = scmp.lt.u32.totalorder %s3851_s15, %s4753_s1 }
 0x2c5   : > { %p3854_p13 = pnand %p3853_p8, %p3852_p12  ;;  %p3859_p2 = por %p3858_p3, %p3857_p1 }
 0x2c7   : > { %p3855_p0 = pneg %p3854_p13  ;;  %p3861_p9 = por %p3860_p5, %p3859_p2 }
 0x2c9   : > { %p3862_p4 = pnand %p3861_p9, %p3855_p0 }
 0x2cb   : > { %3865 = shalt.err (!%p3862_p4)
}
 0x2cc   : > { %s3866_s12 = scalar_lea.vmem %s4760_s3, 128  ;;  %s4056_s16 = smov [#allocation2]  }
 0x2cd   : > { %p3867_p12 = scmp.ne.s32.totalorder %s4760_s3, %s3866_s12  ;;  %s3871_s13 = sshll.u32 %s4056_s16, 4  ;;  %s3872_s13 = int_to_ptr.vmem [resolvable:$false] %s3871_s13 }
 0x2ce   : > { %s3873_s18 = scalar_lea.vmem %s3872_s13, 256  ;;  %p3874_p6 = scmp.lt.s32.totalorder %s4760_s3, %s3872_s13 }
 0x2cf   : > { %p3869_p13 = pnand %p3867_p12, %p3853_p8  ;;  %p3875_p1 = scmp.lt.s32.totalorder %s3873_s18, %s3866_s12 }
 0x2d1   : > { %p3870_p10 = pneg %p3869_p13  ;;  %p3876_p3 = por %p3875_p1, %p3874_p6 }
 0x2d3   : > { %p3877_p2 = pnand %p3876_p3, %p3870_p10 }
 0x2d5   : > { %3880 = shalt.err (!%p3877_p2)
}
 0x2d6   : > { %3028 = dma.hbm_to_vmem [thread:$0]  (!%p4756_p11), %s4753_s1, 128, %s4760_s3, %s914_s7  }
 0x2d7   : > { %s931_s17 = sand.u32 1, %s5158_s9   ;;  %s935_s19 = scalar_lea.vmem [#allocation5], %s4747_s5 }
 0x2d8   : > { %s942_s15 = sshll.u32 %s935_s19, 4  ;;  %s932_s2 = scalar_lea.sflag [#allocation6], %s931_s17  ;;  %s943_s15 = int_to_ptr.vmem [resolvable:$true] %s942_s15 }
 0x2d9   : > { %s3881_s10 = scalar_lea.hbm %s4765_s8, 128  ;;  %s3886_s16 = scalar_lea.hbm %s5169_s14, 256 }
 0x2da   : > { %p3882_p6 = scmp.ne.s32.totalorder %s4765_s8, %s3881_s10  ;;  %p3887_p5 = scmp.lt.u32.totalorder %s4765_s8, %s5169_s14 }
 0x2db   : > { %p3888_p9 = scmp.lt.u32.totalorder %s3886_s16, %s3881_s10  ;;  %p3890_p12 = scmp.lt.u32.totalorder %s3881_s10, %s4765_s8 }
 0x2dc   : > { %p3884_p10 = pnand %p3882_p6, %p3853_p8 }
 0x2dd   : > { %p3889_p4 = por %p3888_p9, %p3887_p5 }
 0x2de   : > { %p3885_p0 = pneg %p3884_p10 }
 0x2df   : > { %p3891_p13 = por %p3890_p12, %p3889_p4 }
 0x2e1   : > { %p3892_p1 = pnand %p3891_p13, %p3885_p0 }
 0x2e3   : > { %3895 = shalt.err (!%p3892_p1)
}
 0x2e4   : > { %s3896_s9 = scalar_lea.vmem %s943_s15, 128  ;;  %s4057_s5 = smov [#allocation5]  }
 0x2e5   : > { %p3897_p3 = scmp.ne.s32.totalorder %s943_s15, %s3896_s9  ;;  %s3901_s1 = sshll.u32 %s4057_s5, 4  ;;  %s3902_s1 = int_to_ptr.vmem [resolvable:$false] %s3901_s1 }
 0x2e6   : > { %s3903_s3 = scalar_lea.vmem %s3902_s1, 256  ;;  %p3904_p10 = scmp.lt.s32.totalorder %s943_s15, %s3902_s1 }
 0x2e7   : > { %p3899_p2 = pnand %p3897_p3, %p3853_p8  ;;  %p3905_p7 = scmp.lt.s32.totalorder %s3903_s3, %s3896_s9 }
 0x2e9   : > { %p3900_p6 = pneg %p3899_p2  ;;  %p3906_p5 = por %p3905_p7, %p3904_p10 }
 0x2eb   : > { %p3907_p9 = pnand %p3906_p5, %p3900_p6 }
 0x2ed   : > { %3910 = shalt.err (!%p3907_p9)
}
 0x2ee   : > { %3031 = dma.hbm_to_vmem [thread:$0]  (!%p4756_p11), %s4765_s8, 128, %s943_s15, %s932_s2  }
 0x2ef   : > { %s5170_s7 = sld [smem:[#allocation62_spill]] }
 0x2f5   : > { %p5171_p0 = scmp.ne.s32.totalorder %s5170_s7, 0 }
 0x2f6   : > { %s5172_s17 = sld [smem:[#allocation58_spill]] (!%p5171_p0)  ;;  %p5173_p7 = scmp.ne.s32.totalorder (!%p5171_p0), %s5164_s6, 0 }
 0x2f7   : > { %951 = sbr.rel (%p5171_p0) target bundleno = 4083 (0xff3), region = 120 }
 0x2fc   : > { %s4816_s19 = sand.u32 (!%p5171_p0), 1, %s5172_s17  }
 0x2fd   : > { %s4819_s10 = sshll.u32 (!%p5171_p0), %s4816_s19, 3  ;;  %s954_s4 = scalar_lea.sflag (!%p5171_p0), [#allocation3], %s4816_s19 }
 0x2fe   : > { %s957_s12 = scalar_lea.vmem [#allocation2], %s4819_s10 }
 0x2ff   : > { %3956 = dma.done.wait (%p5173_p7), %s954_s4, 128  }
 0x300   : > { %3958 = vsyncadd (%p5173_p7), %s954_s4, 4294967168  ;;  %s5174_s22 = sld [smem:[#allocation61_spill]]  ;;  %s966_s2 = scalar_lea.vmem [#allocation5], %s4819_s10 }
 0x306   : > { %s962_s8 = sand.u32 1, %s5174_s22  }
 0x307   : > { %s963_s15 = scalar_lea.sflag [#allocation6], %s962_s8 }
 0x308   : > { %3960 = dma.done.wait (%p5173_p7), %s963_s15, 128  }
 0x309   : > { %3962 = vsyncadd (%p5173_p7), %s963_s15, 4294967168  ;;  %p5175_p11 = scmp.eq.s32.totalorder %s5174_s22, 0 }
 0x30b   : > { %3964 = dma.done.wait (%p5175_p11), [#allocation6], 192   ;;  %p5176_p8 = pmov %p5175_p11 }
 0x30d   : > { %3966 = vsyncadd (%p5176_p8), [#allocation6], 4294967104  ;;  %p5177_p4 = pmov %p5176_p8 }
 0x30f   : > { %3968 = dma.done.wait (%p5177_p4), [#allocation9], 144   ;;  %p5178_p12 = pmov %p5177_p4 }
 0x310   : > { %p5179_p13 = pmov %p5177_p4 }
 0x311   : > { %3970 = vsyncadd (%p5178_p12), [#allocation9], 4294967152 }
 0x312   : > { %3972 = dma.done.wait (%p5179_p13), [#allocation12], 272   ;;  %p5180_p1 = pmov %p5177_p4 }
 0x314   : > { %3974 = vsyncadd (%p5180_p1), [#allocation12], 4294967024  ;;  %p5181_p3 = pmov %p5180_p1 }
 0x315   : > { %p5182_p2 = pmov %p5180_p1 }
 0x316   : > { %3976 = dma.done.wait (%p5181_p3), [#allocation15], 272  }
 0x317   : > { %3978 = vsyncadd (%p5182_p2), [#allocation15], 4294967024  ;;  %p5183_p6 = pmov %p5180_p1 }
 0x318   : > { %p5184_p10 = pmov %p5180_p1 }
 0x319   : > { %3980 = dma.done.wait (%p5183_p6), [#allocation18], 32  }
 0x31a   : > { %3982 = vsyncadd (%p5184_p10), [#allocation18], 4294967264  ;;  %p5185_p5 = pmov %p5180_p1 }
 0x31b   : > { %p5186_p9 = pmov %p5180_p1 }
 0x31c   : > { %3984 = dma.done.wait (%p5185_p5), [#allocation21], 32  }
 0x31d   : > { %3986 = vsyncadd (%p5186_p9), [#allocation21], 4294967264  ;;  %p5187_p0 = pmov %p5180_p1 }
 0x31f   : > { %3988 = dma.done.wait (%p5187_p0), [#allocation24], 272   ;;  %p5188_p7 = pmov %p5187_p0 }
 0x320   : > { %p5189_p11 = pmov %p5187_p0 }
 0x321   : > { %3990 = vsyncadd (%p5188_p7), [#allocation24], 4294967024 }
 0x322   : > { %3992 = dma.done.wait (%p5189_p11), [#allocation27], 1040   ;;  %p5190_p8 = pmov %p5187_p0 }
 0x323   : > { %p5191_p4 = pmov %p5187_p0 }
 0x324   : > { %3994 = vsyncadd (%p5190_p8), [#allocation27], 4294966256 }
 0x325   : > { %3996 = dma.done.wait (%p5191_p4), [#allocation30], 272   ;;  %p5192_p12 = pmov %p5187_p0 }
 0x326   : > { %p5193_p13 = pmov %p5187_p0 }
 0x327   : > { %3998 = vsyncadd (%p5192_p12), [#allocation30], 4294967024 }
 0x328   : > { %4000 = dma.done.wait (%p5193_p13), [#allocation33], 1280   ;;  %p5194_p1 = pmov %p5187_p0 }
 0x329   : > { %p5195_p3 = pmov %p5187_p0 }
 0x32a   : > { %4002 = vsyncadd (%p5194_p1), [#allocation33], 4294966016 }
 0x32b   : > { %4004 = dma.done.wait (%p5195_p3), [#allocation36], 256   ;;  %p5196_p2 = pmov %p5187_p0 }
 0x32c   : > { %p5197_p6 = pmov %p5187_p0 }
 0x32d   : > { %4006 = vsyncadd (%p5196_p2), [#allocation36], 4294967040 }
 0x32e   : > { %4008 = dma.done.wait (%p5197_p6), [#allocation39], 1280   ;;  %p5198_p10 = pmov %p5187_p0 }
 0x32f   : > { %v4058_v0 = vmov 0.0   ;;  %vm4059_vm0 = vmmov 0   ;;  %v3146_v1 = vld [vmem:[#allocation7] sm:$0xff]   ;;  %vm1156_vm1 = vcmask 1043456   ;;  %v3147_v2 = vld [vmem:[#allocation7 + $0x8] ss:$0 sps:$4 sm:$0xff]  }
 0x330   : > { %4010 = vsyncadd (%p5198_p10), [#allocation39], 4294966016  ;;  %2723 = vmatprep.subr.bf16.mxu1 %v4058_v0  ;;  %2727 = vmatprep.mubr.msk.bf16.mxu1 %vm4059_vm0, %v4058_v0  ;;  %v1131_v3 = vld [vmem:[%s957_s12] sm:$0xff]  ;;  %v1158_v4 = vsel %vm1156_vm1, %v3147_v2, 0  ;;  %vm1152_vm2 = vcmask 195584   ;;  %vm1217_vm3 = vcmask 130048  }
 0x331   : > { %2745 = vmatprep.subr.bf16.mxu0 %v4058_v0  ;;  %2749 = vmatprep.mubr.msk.bf16.mxu0 %vm4059_vm0, %v4058_v0  ;;  %v3148_v5 = vld [vmem:[#allocation10] sm:$0xff]   ;;  %v1132_v6 = vpack.c.bf16 %v1131_v3, %v1131_v3  ;;  %v3149_v9 = vld [vmem:[#allocation13] sm:$0xff]   ;;  %v3150_v10 = vld [vmem:[#allocation13 + $0x8] sm:$0xff]   ;;  %vm1285_vm4 = vcmask 261120   ;;  %s4060_s6 = smov 96   ;;  %s4061_s16 = smov 64  }
 0x332   : > { %2724 = vmatpush3.bf16.msra.mxu1 %v3146_v1  ;;  %v1200_v7 = vld [vmem:[%s966_s2] sm:$0xff]  ;;  %v2604_v15 = vld [vmem:[#allocation8] ss:$0 sm:$0xff]  ;;  %v3152_v25 = vld [vmem:[#allocation31 + $0x8] sm:$0xff]   ;;  %s4062_s13 = smov 32   ;;  %s1129_s18 = scalar_lea.vmem [#allocation41], %s4819_s10 }
 0x333   : > { %2725 = vmatprep.subr.bf16.mxu1 %v4058_v0  ;;  %v1201_v8 = vpack.c.bf16 %v1200_v7, %v1200_v7  ;;  %v2608_v16 = vld [vmem:[#allocation11] ss:$0 sm:$0xff]  ;;  %v3151_v24 = vld [vmem:[#allocation31] sm:$0xff]   ;;  %v3153_v26 = vld [vmem:[#allocation32] sm:$0xff]   ;;  %s2666_s9 = sshll.u32 %s5174_s22, 7  ;;  %s2236_s5 = sshll.u32 %s1129_s18, 4  ;;  %s4995_s5 = int_to_ptr.vmem [resolvable:$true] %s2236_s5 }
 0x334   : > { %2746 = vmatpush3.bf16.msra.mxu0 %v3151_v24  ;;  %v3154_v27 = vld [vmem:[#allocation32 + $0x8] sm:$0xff]   ;;  %v2611_v28 = vld [vmem:[#allocation14] ss:$0 sm:$0xff]  ;;  %v3155_v37 = vld [vmem:[#allocation34] sm:$0xff]   ;;  %vm2220_vm5 = vcmask 523520   ;;  %s5199_s7 = sld [smem:[#allocation86_spill]] }
 0x335   : > { %2747 = vmatprep.subr.bf16.mxu0 %v4058_v0  ;;  %v3156_v38 = vld [vmem:[#allocation34 + $0x8] sm:$0xff]   ;;  %v3157_v39 = vld [vmem:[#allocation34 + $0x10] sm:$0xff]   ;;  %v3158_v40 = vld [vmem:[#allocation34 + $0x18] sm:$0xff]   ;;  %s2223_s4 = scalar_lea.sflag [#allocation4], %s4816_s19  ;;  %s3911_s12 = scalar_lea.vmem %s4995_s5, 128 }
 0x336   : > { %2726 = vmatpush3.bf16.msra.mxu1 %v1158_v4  ;;  %v3159_v41 = vld [vmem:[#allocation34 + $0x20] sm:$0xff]   ;;  %v3160_v42 = vld [vmem:[#allocation34 + $0x28] sm:$0xff]   ;;  %v3161_v44 = vld [vmem:[#allocation34 + $0x30] sm:$0xff]   ;;  %p3912_p5 = scmp.ne.s32.totalorder %s4995_s5, %s3911_s12  ;;  %p5200_p9 = scmp.ne.s32.totalorder %s5165_s29, 0 }
 0x337   : > { %2731 = vmatprep.subr.bf16.mxu1 %v4058_v0  ;;  %v3162_v45 = vld [vmem:[#allocation34 + $0x38] sm:$0xff]   ;;  %v3163_v63 = vld [vmem:[#allocation35] sm:$0xff]   ;;  %s4063_s10 = smov [#allocation41]  }
 0x338   : > { %2748 = vmatpush3.bf16.msra.mxu0 %v3152_v25  ;;  %v3167_v24 = vld [vmem:[#allocation40] sm:$0xff]   ;;  %p3913_p0 = pnand %p3912_p5, %p5200_p9  ;;  %s3915_s22 = sshll.u32 %s4063_s10, 4  ;;  %s3916_s22 = int_to_ptr.vmem [resolvable:$false] %s3915_s22 }
 0x339   : > { %2728 = vmatmul.mubr.msk.bf16.vlgmr.msra.gmra.mrb[0].mxu1 %vm1152_vm2, %v1132_v6  ;;  %2761 = vmatprep.subr.bf16.mxu0 %v4058_v0  ;;  %s3917_s8 = scalar_lea.vmem %s3916_s22, 256  ;;  %p3918_p11 = scmp.lt.s32.totalorder %s4995_s5, %s3916_s22 }
 0x33a   : > { %2732 = vmatpush3.bf16.msra.mxu1 %v3148_v5  ;;  %2733 = vmatprep.mubr.msk.bf16.mxu1 %vm4059_vm0, %v4058_v0  ;;  %s4993_s17 = scalar_lea.hbm %s5199_s7, %s2666_s9  ;;  %p3914_p7 = pneg %p3913_p0 }
 0x33b   : > { %2737 = vmatprep.subr.bf16.mxu1 %v4058_v0  ;;  %p3919_p8 = scmp.lt.s32.totalorder %s3917_s8, %s3911_s12 }
 0x33d   : > { %p3920_p4 = por %p3919_p8, %p3918_p11 }
 0x33f   : > { %p3921_p12 = pnand %p3920_p4, %p3914_p7 }
 0x341   : > { %2734 = vmatmul.mubr.msk.bf16.vlgmr.msra.gmra.mrb[4].mxu1 %vm1217_vm3, %v1201_v8 }
 0x342   : > { %2741 = vmatprep.mubr.msk.bf16.mxu1 %vm4059_vm0, %v4058_v0  ;;  %2738 = vmatpush3.bf16.msra.mxu1 %v3149_v9 }
 0x343   : > { %2739 = vmatprep.subr.bf16.mxu1 %v4058_v0 }
 0x346   : > { %2740 = vmatpush3.bf16.msra.mxu1 %v3150_v10  ;;  %v3164_v10 = vld [vmem:[#allocation37] sm:$0xff]  }
 0x347   : > { %2753 = vmatprep.subr.bf16.mxu1 %v4058_v0 }
 0x40c   : > { %v1194_v11 = vpop.f32.mrb[0].mxu1 }
 0x40d   : > { %v2729_v12 = vpop.f32.mrb[1].mxu1  ;;  %v4901_v18 = vadd.f32 %v2604_v15, %v1194_v11 }
 0x40e   : > { %v1197_v13 = vpop.f32.mrb[2].mxu1 }
 0x40f   : > { %v2730_v14 = vpop.f32.mrb[3].mxu1 }
 0x414   : > { %v1255_v17 = vpop.f32.mrb[4].mxu1 }
 0x415   : > { %v4903_v19 = vadd.f32 %v2608_v16, %v1255_v17  ;;  %v2735_v20 = vpop.f32.mrb[5].mxu1 }
 0x416   : > { %v1258_v21 = vpop.f32.mrb[6].mxu1 }
 0x417   : > { %v1261_v22 = vpack.c.bf16 %v4903_v19, %v4901_v18  ;;  %v2736_v23 = vpop.f32.mrb[7].mxu1  ;;  %v3165_v21 = vld [vmem:[#allocation38] sm:$0xff]  }
 0x418   : > { %v3166_v23 = vld [vmem:[#allocation38 + $0x8] sm:$0xff]  }
 0x419   : > { %2742 = vmatmul.mubr.msk.bf16.vlgmr.msra.gmra.mrb[8].mxu1 %vm1285_vm4, %v1261_v22 }
 0x41a   : > { %2757 = vmatprep.mubr.msk.bf16.mxu1 %vm4059_vm0, %v4058_v0  ;;  %2754 = vmatpush3.bf16.msra.mxu1 %v3153_v26  ;;  %v3168_v26 = vld [vmem:[#allocation40 + $0x8] sm:$0xff]  }
 0x41b   : > { %2755 = vmatprep.subr.bf16.mxu1 %v4058_v0 }
 0x41e   : > { %2756 = vmatpush3.bf16.msra.mxu1 %v3154_v27  ;;  %v3169_v27 = vld [vmem:[#allocation40 + $0x10] sm:$0xff]  }
 0x41f   : > { %2781 = vmatprep.subr.bf16.mxu1 %v4058_v0 }
 0x4ec   : > { %v1323_v29 = vpop.f32.mrb[8].mxu1 }
 0x4ed   : > { %v2743_v30 = vpop.f32.mrb[9].mxu1  ;;  %v1324_v32 = vadd.f32 %v2611_v28, %v1323_v29  ;;  %v3171_v29 = vld [vmem:[#allocation40 + $0x20] sm:$0xff]  }
 0x4ee   : > { %v1326_v31 = vpop.f32.mrb[10].mxu1  ;;  %v3172_v30 = vld [vmem:[#allocation40 + $0x28] sm:$0xff]  }
 0x4ef   : > { %v1327_v33 = vadd.f32 %v2611_v28, %v1326_v31  ;;  %v2744_v34 = vpop.f32.mrb[11].mxu1  ;;  %v3170_v28 = vld [vmem:[#allocation40 + $0x18] sm:$0xff]   ;;  %v3173_v31 = vld [vmem:[#allocation40 + $0x30] sm:$0xff]  }
 0x4f1   : > { %v1330_v35 = vpack.c.bf16 %v1327_v33, %v1324_v32  ;;  %v1391_v36 = vpack.c.bf16 %v1324_v32, %v1327_v33  ;;  %v3174_v32 = vld [vmem:[#allocation40 + $0x38] sm:$0xff]  }
 0x4f2   : > { %v3175_v33 = vld [vmem:[#allocation16] sm:$0xff]  }
 0x4f3   : > { %1397 = vrot.lane.b32.xlu0 %v1391_v36, %s4060_s6  ;;  %2750 = vmatmul.mubr.msk.bf16.vlgmr.msra.gmra.mrb[0].mxu0 %vm1285_vm4, %v1330_v35 }
 0x4f4   : > { %2777 = vmatprep.mubr.msk.bf16.mxu0 %vm4059_vm0, %v4058_v0  ;;  %2762 = vmatpush3.bf16.msra.mxu0 %v3155_v37 }
 0x4f5   : > { %2763 = vmatprep.subr.bf16.mxu0 %v4058_v0 }
 0x4f8   : > { %2764 = vmatpush3.bf16.msra.mxu0 %v3156_v38 }
 0x4f9   : > { %2765 = vmatprep.subr.bf16.mxu0 %v4058_v0 }
 0x4fc   : > { %2766 = vmatpush3.bf16.msra.mxu0 %v3157_v39 }
 0x4fd   : > { %2767 = vmatprep.subr.bf16.mxu0 %v4058_v0 }
 0x500   : > { %2768 = vmatpush3.bf16.msra.mxu0 %v3158_v40 }
 0x501   : > { %2769 = vmatprep.subr.bf16.mxu0 %v4058_v0 }
 0x504   : > { %2770 = vmatpush3.bf16.msra.mxu0 %v3159_v41 }
 0x505   : > { %2771 = vmatprep.subr.bf16.mxu0 %v4058_v0 }
 0x508   : > { %2772 = vmatpush3.bf16.msra.mxu0 %v3160_v42 }
 0x509   : > { %2773 = vmatprep.subr.bf16.mxu0 %v4058_v0 }
 0x50c   : > { %2774 = vmatpush3.bf16.msra.mxu0 %v3161_v44 }
 0x50d   : > { %2775 = vmatprep.subr.bf16.mxu0 %v4058_v0 }
 0x510   : > { %2776 = vmatpush3.bf16.msra.mxu0 %v3162_v45  ;;  %v3176_v45 = vld [vmem:[#allocation16 + $0x8] sm:$0xff]  }
 0x511   : > { %2821 = vmatprep.subr.bf16.mxu0 %v4058_v0 }
 0x565   : > { %v1398_v43 = vpop.permute.xlu0 %1397 }
 0x566   : > { %2758 = vmatmul.mubr.msk.bf16.vlgmr.msra.gmra.mrb[12].mxu1 %vm1285_vm4, %v1398_v43 }
 0x567   : > { %2783 = vmatprep.mubr.msk.bf16.mxu1 %vm4059_vm0, %v4058_v0  ;;  %2782 = vmatpush3.bf16.msra.mxu1 %v3163_v63 }
 0x568   : > { %2787 = vmatprep.subr.bf16.mxu1 %v4058_v0 }
 0x5c6   : > { %v1384_v46 = vpop.f32.mrb[0].mxu0 }
 0x5c7   : > { %v2751_v47 = vpop.f32.mrb[1].mxu0 }
 0x5c8   : > { %v1387_v48 = vpop.f32.mrb[2].mxu0 }
 0x5c9   : > { %v2752_v49 = vpop.f32.mrb[3].mxu0 }
 0x639   : > { %v1448_v50 = vpop.f32.mrb[12].mxu1 }
 0x63a   : > { %v1455_v51 = vmul.f32 %v1448_v50, %v1384_v46  ;;  %v2759_v52 = vpop.f32.mrb[13].mxu1 }
 0x63b   : > { %v1451_v53 = vpop.f32.mrb[14].mxu1 }
 0x63c   : > { %v1456_v54 = vmul.f32 %v1451_v53, %v1387_v48  ;;  %v2760_v55 = vpop.f32.mrb[15].mxu1 }
 0x63e   : > { %v1457_v56 = vpack.c.bf16 %v1456_v54, %v1455_v51  ;;  %v2644_v51 = vld [vmem:[#allocation17] ss:$0 sm:$0xff] }
 0x640   : > { %2778 = vmatmul.mubr.bf16.vlgmr.msra.gmra.mrb[4].mxu0 %v1457_v56 }
 0x641   : > { %2825 = vmatprep.mubr.msk.bf16.mxu0 %vm4059_vm0, %v4058_v0  ;;  %2822 = vmatpush3.bf16.msra.mxu0 %v3175_v33  ;;  %v3184_v33 = vld [vmem:[#allocation28 + $0x28] sm:$0xff]  }
 0x642   : > { %2823 = vmatprep.subr.bf16.mxu0 %v4058_v0 }
 0x645   : > { %2824 = vmatpush3.bf16.msra.mxu0 %v3176_v45 }
 0x646   : > { %2829 = vmatprep.subr.bf16.mxu0 %v4058_v0 }
 0x713   : > { %v1556_v57 = vpop.f32.mrb[4].mxu0 }
 0x714   : > { %v2779_v58 = vpop.f32.mrb[5].mxu0  ;;  %v1563_v59 = vsel %vm1217_vm3, %v1556_v57, -inf }
 0x715   : > { %1564 = vmax.xlane.f32.xlu0 %v1563_v59  ;;  %v1559_v60 = vpop.f32.mrb[6].mxu0 }
 0x716   : > { %v2780_v61 = vpop.f32.mrb[7].mxu0  ;;  %v1566_v62 = vsel %vm1217_vm3, %v1559_v60, -inf }
 0x717   : > { %1567 = vmax.xlane.f32.xlu1 %v1566_v62 }
 0x728   : > { %1689 = vrot.lane.b32.xlu1 %v1391_v36, %s4061_s16 }
 0x7a2   : > { %v1565_v1 = vpop.xlane.xlu0 %1564 }
 0x7a3   : > { %v1569_v2 = vsub.f32 %v1556_v57, %v1565_v1 }
 0x7a4   : > { %v1568_v3 = vpop.xlane.xlu1 %1567 }
 0x7a5   : > { %v1571_v4 = vmul.f32 1.442695, %v1569_v2  ;;  %v1570_v5 = vsub.f32 %v1559_v60, %v1568_v3 }
 0x7a7   : > { %v1573_v6 = vmul.f32 1.442695, %v1570_v5  ;;  %3187 = vpow2.f32 %v1571_v4 }
 0x7a8   : > { %v1690_v25 = vpop.permute.xlu1 %1689 }
 0x7a9   : > { %3189 = vpow2.f32 %v1573_v6 }
 0x7b1   : > { %v3188_v7 = vpop.eup %3187 }
 0x7b3   : > { %v3190_v8 = vpop.eup %3189 }
 0x7b4   : > { %v1575_v9 = vpack.c.bf16 %v3190_v8, %v3188_v7 }
 0x7b6   : > { %2784 = vmatmul.mubr.msk.bf16.vlgmr.msra.gmra.mrb[16].mxu1 %vm1217_vm3, %v1575_v9 }
 0x7b7   : > { %2789 = vmatprep.mubr.msk.bf16.mxu1 %vm4059_vm0, %v4058_v0  ;;  %2788 = vmatpush3.bf16.msra.mxu1 %v3164_v10 }
 0x7b8   : > { %2793 = vmatprep.subr.bf16.mxu1 %v4058_v0 }
 0x889   : > { %v1621_v11 = vpop.f32.mrb[16].mxu1 }
 0x88a   : > { %3191 = vrcp.f32 %v1621_v11  ;;  %v2785_v12 = vpop.f32.mrb[17].mxu1 }
 0x88b   : > { %v1624_v13 = vpop.f32.mrb[18].mxu1 }
 0x88c   : > { %3193 = vrcp.f32 %v1624_v13  ;;  %v2786_v14 = vpop.f32.mrb[19].mxu1 }
 0x894   : > { %v3192_v15 = vpop.eup %3191 }
 0x895   : > { %v1630_v17 = vmul.f32 %v3192_v15, %v3188_v7 }
 0x896   : > { %v3194_v16 = vpop.eup %3193 }
 0x897   : > { %v1631_v20 = vmul.f32 %v3194_v16, %v3190_v8  ;;  %v3177_v8 = vld [vmem:[#allocation25] sm:$0xff]  }
 0x899   : > { %v1632_v22 = vpack.c.bf16 %v1631_v20, %v1630_v17  ;;  %v2648_v17 = vld [vmem:[#allocation19] ss:$0 sm:$0xff] }
 0x89b   : > { %2790 = vmatmul.mubr.msk.bf16.vlgmr.msra.gmra.mrb[20].mxu1 %vm1217_vm3, %v1632_v22 }
 0x89c   : > { %2794 = vmatpush3.bf16.msra.mxu1 %v3165_v21  ;;  %2797 = vmatprep.mubr.msk.bf16.mxu1 %vm4059_vm0, %v4058_v0 }
 0x89d   : > { %2795 = vmatprep.subr.bf16.mxu1 %v4058_v0 }
 0x8a0   : > { %2796 = vmatpush3.bf16.msra.mxu1 %v3166_v23  ;;  %v2649_v23 = vld [vmem:[#allocation20] ss:$0 sm:$0xff] }
 0x8a1   : > { %2801 = vmatprep.subr.bf16.mxu1 %v4058_v0 }
 0x8a3   : > { %2798 = vmatmul.mubr.msk.bf16.vlgmr.msra.gmra.mrb[24].mxu1 %vm1285_vm4, %v1690_v25 }
 0x8a4   : > { %2802 = vmatpush3.bf16.msra.mxu1 %v3167_v24  ;;  %2817 = vmatprep.mubr.msk.bf16.mxu1 %vm4059_vm0, %v4058_v0 }
 0x8a5   : > { %2803 = vmatprep.subr.bf16.mxu1 %v4058_v0 }
 0x8a8   : > { %2804 = vmatpush3.bf16.msra.mxu1 %v3168_v26 }
 0x8a9   : > { %2805 = vmatprep.subr.bf16.mxu1 %v4058_v0 }
 0x8ac   : > { %2806 = vmatpush3.bf16.msra.mxu1 %v3169_v27 }
 0x8ad   : > { %2807 = vmatprep.subr.bf16.mxu1 %v4058_v0 }
 0x8b0   : > { %2808 = vmatpush3.bf16.msra.mxu1 %v3170_v28  ;;  %v3179_v28 = vld [vmem:[#allocation28] sm:$0xff]  }
 0x8b1   : > { %2809 = vmatprep.subr.bf16.mxu1 %v4058_v0 }
 0x8b4   : > { %2810 = vmatpush3.bf16.msra.mxu1 %v3171_v29  ;;  %v3180_v29 = vld [vmem:[#allocation28 + $0x8] sm:$0xff]  }
 0x8b5   : > { %2811 = vmatprep.subr.bf16.mxu1 %v4058_v0 }
 0x8b8   : > { %2812 = vmatpush3.bf16.msra.mxu1 %v3172_v30  ;;  %v3181_v30 = vld [vmem:[#allocation28 + $0x10] sm:$0xff]  }
 0x8b9   : > { %2813 = vmatprep.subr.bf16.mxu1 %v4058_v0 }
 0x8bc   : > { %2814 = vmatpush3.bf16.msra.mxu1 %v3173_v31  ;;  %v3182_v31 = vld [vmem:[#allocation28 + $0x18] sm:$0xff]  }
 0x8bd   : > { %2815 = vmatprep.subr.bf16.mxu1 %v4058_v0 }
 0x8c0   : > { %2816 = vmatpush3.bf16.msra.mxu1 %v3174_v32  ;;  %v3183_v32 = vld [vmem:[#allocation28 + $0x20] sm:$0xff]  }
 0x96e   : > { %v1678_v34 = vpop.f32.mrb[20].mxu1 }
 0x96f   : > { %v2791_v35 = vpop.f32.mrb[21].mxu1 }
 0x970   : > { %v1681_v36 = vpop.f32.mrb[22].mxu1  ;;  %v3186_v35 = vld [vmem:[#allocation28 + $0x38] sm:$0xff]  }
 0x971   : > { %v2792_v37 = vpop.f32.mrb[23].mxu1 }
 0x976   : > { %v1740_v38 = vpop.f32.mrb[24].mxu1 }
 0x977   : > { %v1747_v39 = vmul.f32 %v1740_v38, %v1678_v34  ;;  %v2799_v40 = vpop.f32.mrb[25].mxu1  ;;  %v3185_v34 = vld [vmem:[#allocation28 + $0x30] sm:$0xff]  }
 0x978   : > { %v1743_v41 = vpop.f32.mrb[26].mxu1 }
 0x979   : > { %v1748_v42 = vmul.f32 %v1743_v41, %v1681_v36  ;;  %v2800_v43 = vpop.f32.mrb[27].mxu1  ;;  %v2650_v36 = vld [vmem:[#allocation26] ss:$0 sm:$0xff] }
 0x97b   : > { %v1749_v44 = vpack.c.bf16 %v1748_v42, %v1747_v39 }
 0x97d   : > { %2818 = vmatmul.mubr.bf16.vlgmr.msra.gmra.mrb[28].mxu1 %v1749_v44 }
 0xa50   : > { %v1848_v46 = vpop.f32.mrb[28].mxu1 }
 0xa51   : > { %v2819_v47 = vpop.f32.mrb[29].mxu1 }
 0xa52   : > { %v1851_v48 = vpop.f32.mrb[30].mxu1 }
 0xa53   : > { %v1855_v49 = vpack.c.bf16 %v1851_v48, %v1848_v46  ;;  %v2820_v50 = vpop.f32.mrb[31].mxu1 }
 0xa55   : > { %2826 = vmatmul.mubr.msk.bf16.vlgmr.msra.gmra.mrb[8].mxu0 %vm1285_vm4, %v1855_v49 }
 0xa56   : > { %2833 = vmatprep.mubr.msk.bf16.mxu0 %vm4059_vm0, %v4058_v0  ;;  %2830 = vmatpush3.bf16.msra.mxu0 %v3177_v8 }
 0xa57   : > { %2831 = vmatprep.subr.bf16.mxu0 %v4058_v0 }
 0xb28   : > { %v1916_v52 = vpop.f32.mrb[8].mxu0 }
 0xb29   : > { %v1917_v53 = vadd.f32 %v2644_v51, %v1916_v52  ;;  %v2827_v54 = vpop.f32.mrb[9].mxu0 }
 0xb2a   : > { %v1919_v55 = vpop.f32.mrb[10].mxu0 }
 0xb2b   : > { %v1920_v56 = vadd.f32 %v2644_v51, %v1919_v55  ;;  %v2828_v57 = vpop.f32.mrb[11].mxu0  ;;  %v1923_v58 = vadd.f32 %v1917_v53, %v4901_v18 }
 0xb2d   : > { %v1927_v59 = vsel %vm1285_vm4, %v1923_v58, 0.0  ;;  %v1924_v60 = vadd.f32 %v1920_v56, %v4903_v19  ;;  %v3178_v19 = vld [vmem:[#allocation25 + $0x8] sm:$0xff]  }
 0xb2e   : > { %1928 = vadd.xlane.f32.xlu1 %v1927_v59  ;;  %2832 = vmatpush3.bf16.msra.mxu0 %v3178_v19 }
 0xb2f   : > { %v1930_v61 = vsel %vm1285_vm4, %v1924_v60, 0.0  ;;  %2837 = vmatprep.subr.bf16.mxu0 %v4058_v0 }
 0xb30   : > { %1931 = vadd.xlane.f32.xlu0 %v1930_v61  ;;  %v2654_v61 = vld [vmem:[#allocation29] ss:$0 sm:$0xff] }
 0xbbb   : > { %v1929_v62 = vpop.xlane.xlu1 %1928 }
 0xbbc   : > { %v1934_v63 = vmul.f32 0.03125, %v1929_v62 }
 0xbbd   : > { %v1932_v1 = vpop.xlane.xlu0 %1931 }
 0xbbe   : > { %v1936_v2 = vsub.f32 %v1923_v58, %v1934_v63  ;;  %v1935_v3 = vmul.f32 0.03125, %v1932_v1 }
 0xbc0   : > { %v1937_v4 = vsub.f32 %v1924_v60, %v1935_v3  ;;  %v1938_v5 = vmul.f32 %v1936_v2, %v1936_v2 }
 0xbc2   : > { %v1940_v6 = vsel %vm1285_vm4, %v1938_v5, 0.0  ;;  %v1939_v7 = vmul.f32 %v1937_v4, %v1937_v4 }
 0xbc3   : > { %1941 = vadd.xlane.f32.xlu0 %v1940_v6 }
 0xbc4   : > { %v1943_v18 = vsel %vm1285_vm4, %v1939_v7, 0.0 }
 0xbc7   : > { %1944 = vadd.xlane.f32.xlu0 %v1943_v18 }
 0xc50   : > { %v1942_v9 = vpop.xlane.xlu0 %1941 }
 0xc51   : > { %v1946_v10 = vmul.f32 0.03125, %v1942_v9 }
 0xc53   : > { %v1948_v11 = vadd.f32 1e-05, %v1946_v10 }
 0xc54   : > { %v1945_v12 = vpop.xlane.xlu0 %1944 }
 0xc55   : > { %3195 = vrsqrt.f32 %v1948_v11  ;;  %v1947_v13 = vmul.f32 0.03125, %v1945_v12 }
 0xc57   : > { %v1949_v14 = vadd.f32 1e-05, %v1947_v13 }
 0xc59   : > { %3197 = vrsqrt.f32 %v1949_v14 }
 0xc5f   : > { %v3196_v15 = vpop.eup %3195 }
 0xc60   : > { %v1952_v16 = vmul.f32 %v3196_v15, %v1936_v2 }
 0xc62   : > { %v1960_v21 = vmul.f32 %v2648_v17, %v1952_v16 }
 0xc63   : > { %v3198_v20 = vpop.eup %3197 }
 0xc64   : > { %v1953_v22 = vmul.f32 %v3198_v20, %v1937_v4  ;;  %v4965_v25 = vadd.f32 %v2649_v23, %v1960_v21 }
 0xc66   : > { %v1961_v24 = vmul.f32 %v2648_v17, %v1953_v22 }
 0xc68   : > { %v4967_v26 = vadd.f32 %v2649_v23, %v1961_v24 }
 0xc6a   : > { %v1970_v27 = vpack.c.bf16 %v4967_v26, %v4965_v25 }
 0xc6c   : > { %2834 = vmatmul.mubr.msk.bf16.vlgmr.msra.gmra.mrb[12].mxu0 %vm1285_vm4, %v1970_v27 }
 0xc6d   : > { %2853 = vmatprep.mubr.msk.bf16.mxu0 %vm4059_vm0, %v4058_v0  ;;  %2838 = vmatpush3.bf16.msra.mxu0 %v3179_v28  ;;  %v2664_v28 = vld [vmem:[#allocation23] ss:$0 sm:$0xff] }
 0xc6e   : > { %2839 = vmatprep.subr.bf16.mxu0 %v4058_v0 }
 0xc71   : > { %2840 = vmatpush3.bf16.msra.mxu0 %v3180_v29 }
 0xc72   : > { %2841 = vmatprep.subr.bf16.mxu0 %v4058_v0 }
 0xc75   : > { %2842 = vmatpush3.bf16.msra.mxu0 %v3181_v30 }
 0xc76   : > { %2843 = vmatprep.subr.bf16.mxu0 %v4058_v0 }
 0xc79   : > { %2844 = vmatpush3.bf16.msra.mxu0 %v3182_v31 }
 0xc7a   : > { %2845 = vmatprep.subr.bf16.mxu0 %v4058_v0 }
 0xc7d   : > { %2846 = vmatpush3.bf16.msra.mxu0 %v3183_v32 }
 0xc7e   : > { %2847 = vmatprep.subr.bf16.mxu0 %v4058_v0 }
 0xc81   : > { %2848 = vmatpush3.bf16.msra.mxu0 %v3184_v33 }
 0xc82   : > { %2849 = vmatprep.subr.bf16.mxu0 %v4058_v0 }
 0xc85   : > { %2850 = vmatpush3.bf16.msra.mxu0 %v3185_v34 }
 0xc86   : > { %2851 = vmatprep.subr.bf16.mxu0 %v4058_v0 }
 0xc89   : > { %2852 = vmatpush3.bf16.msra.mxu0 %v3186_v35 }
 0xd3f   : > { %v2031_v37 = vpop.f32.mrb[12].mxu0 }
 0xd40   : > { %v2032_v38 = vadd.f32 %v2650_v36, %v2031_v37  ;;  %v2835_v39 = vpop.f32.mrb[13].mxu0 }
 0xd41   : > { %v2034_v40 = vpop.f32.mrb[14].mxu0 }
 0xd42   : > { %v2040_v41 = vmul.f32 0.044715, %v2032_v38  ;;  %v2035_v42 = vadd.f32 %v2650_v36, %v2034_v40  ;;  %v2836_v43 = vpop.f32.mrb[15].mxu0  ;;  %v2038_v55 = vmul.f32 0.5, %v2032_v38 }
 0xd44   : > { %v2042_v44 = vmul.f32 %v2040_v41, %v2032_v38  ;;  %v2041_v45 = vmul.f32 0.044715, %v2035_v42  ;;  %v2039_v56 = vmul.f32 0.5, %v2035_v42 }
 0xd46   : > { %v2044_v46 = vmul.f32 %v2042_v44, %v2032_v38  ;;  %v2043_v47 = vmul.f32 %v2041_v45, %v2035_v42 }
 0xd48   : > { %v2046_v48 = vadd.f32 %v2044_v46, %v2032_v38  ;;  %v2045_v49 = vmul.f32 %v2043_v47, %v2035_v42 }
 0xd4a   : > { %v2048_v50 = vmul.f32 0.7978846, %v2046_v48  ;;  %v2047_v51 = vadd.f32 %v2045_v49, %v2035_v42 }
 0xd4c   : > { %3199 = vtanh.f32 %v2048_v50  ;;  %v2049_v52 = vmul.f32 0.7978846, %v2047_v51 }
 0xd4e   : > { %3201 = vtanh.f32 %v2049_v52 }
 0xd56   : > { %v3200_v0 = vpop.eup %3199 }
 0xd57   : > { %v2052_v53 = vadd.f32 1.0, %v3200_v0 }
 0xd58   : > { %v3202_v54 = vpop.eup %3201 }
 0xd59   : > { %v2053_v57 = vadd.f32 1.0, %v3202_v54  ;;  %v2054_v58 = vmul.f32 %v2052_v53, %v2038_v55 }
 0xd5b   : > { %v2055_v59 = vmul.f32 %v2053_v57, %v2039_v56 }
 0xd5d   : > { %v2056_v60 = vpack.c.bf16 %v2055_v59, %v2054_v58 }
 0xd5f   : > { %2854 = vmatmul.mubr.bf16.vlgmr.msra.gmra.mrb[16].mxu0 %v2056_v60 }
 0xe32   : > { %v2162_v62 = vpop.f32.mrb[16].mxu0 }
 0xe33   : > { %v2855_v63 = vpop.f32.mrb[17].mxu0  ;;  %v2163_v2 = vadd.f32 %v2654_v61, %v2162_v62 }
 0xe34   : > { %v2165_v1 = vpop.f32.mrb[18].mxu0 }
 0xe35   : > { %v2166_v3 = vadd.f32 %v2654_v61, %v2165_v1  ;;  %v2856_v4 = vpop.f32.mrb[19].mxu0  ;;  %v2169_v7 = vadd.f32 %v2163_v2, %v4965_v25 }
 0xe37   : > { %v2170_v5 = vadd.f32 %v2166_v3, %v4967_v26  ;;  %v2173_v18 = vsel %vm1285_vm4, %v2169_v7, 0.0  ;;  %v2663_v26 = vld [vmem:[#allocation22] ss:$0 sm:$0xff] }
 0xe39   : > { %v2176_v6 = vsel %vm1285_vm4, %v2170_v5, 0.0 }
 0xe3a   : > { %2177 = vadd.xlane.f32.xlu0 %v2176_v6 }
 0xe3e   : > { %2174 = vadd.xlane.f32.xlu0 %v2173_v18 }
 0xec7   : > { %v2178_v8 = vpop.xlane.xlu0 %2177 }
 0xec8   : > { %v2180_v19 = vmul.f32 0.03125, %v2178_v8 }
 0xeca   : > { %v2182_v9 = vsub.f32 %v2170_v5, %v2180_v19 }
 0xecb   : > { %v2175_v10 = vpop.xlane.xlu0 %2174 }
 0xecc   : > { %v2179_v11 = vmul.f32 0.03125, %v2175_v10  ;;  %v2184_v12 = vmul.f32 %v2182_v9, %v2182_v9 }
 0xece   : > { %v2181_v13 = vsub.f32 %v2169_v7, %v2179_v11  ;;  %v2188_v14 = vsel %vm1285_vm4, %v2184_v12, 0.0 }
 0xecf   : > { %2189 = vadd.xlane.f32.xlu0 %v2188_v14 }
 0xed0   : > { %v2183_v15 = vmul.f32 %v2181_v13, %v2181_v13 }
 0xed2   : > { %v2185_v16 = vsel %vm1285_vm4, %v2183_v15, 0.0 }
 0xed3   : > { %2186 = vadd.xlane.f32.xlu1 %v2185_v16 }
 0xf5c   : > { %v2190_v17 = vpop.xlane.xlu0 %2189 }
 0xf5d   : > { %v2192_v20 = vmul.f32 0.03125, %v2190_v17 }
 0xf5f   : > { %v2194_v21 = vadd.f32 1e-05, %v2192_v20 }
 0xf60   : > { %v2187_v22 = vpop.xlane.xlu1 %2186 }
 0xf61   : > { %3203 = vrsqrt.f32 %v2194_v21  ;;  %v2191_v23 = vmul.f32 0.03125, %v2187_v22 }
 0xf63   : > { %v2193_v24 = vadd.f32 1e-05, %v2191_v23 }
 0xf65   : > { %3205 = vrsqrt.f32 %v2193_v24 }
 0xf6b   : > { %v3204_v25 = vpop.eup %3203 }
 0xf6c   : > { %v2198_v27 = vmul.f32 %v3204_v25, %v2182_v9 }
 0xf6e   : > { %v2206_v29 = vmul.f32 %v2663_v26, %v2198_v27 }
 0xf6f   : > { %v3206_v30 = vpop.eup %3205 }
 0xf70   : > { %v2197_v31 = vmul.f32 %v3206_v30, %v2181_v13  ;;  %v2214_v32 = vadd.f32 %v2664_v28, %v2206_v29 }
 0xf72   : > { %v2205_v33 = vmul.f32 %v2663_v26, %v2197_v31  ;;  %2217 = vrot.lane.b32.xlu0 %v2214_v32, %s4062_s13 }
 0xf74   : > { %v2213_v34 = vadd.f32 %v2664_v28, %v2205_v33 }
 0xf76   : > { %2215 = vst.msk [vmem:[%s1129_s18] sm:$0xff] %vm1285_vm4, %v2213_v34 }
 0xfe4   : > { %v2218_v35 = vpop.permute.xlu0 %2217 }
 0xfe5   : > { %2221 = vst.msk [vmem:[%s1129_s18] sm:$0xff] %vm2220_vm5, %v2218_v35 }
 0xfe6   : > { %3924 = shalt.err (!%p3921_p12)
}
 0xfe7   : > { %s3925_s19 = scalar_lea.hbm %s4993_s17, 128  ;;  %s3929_s6 = scalar_lea.hbm %s5199_s7, 256 }
 0xfe8   : > { %p3926_p13 = scmp.ne.s32.totalorder %s4993_s17, %s3925_s19  ;;  %p3930_p2 = scmp.lt.u32.totalorder %s4993_s17, %s5199_s7 }
 0xfe9   : > { %p3931_p6 = scmp.lt.u32.totalorder %s3929_s6, %s3925_s19  ;;  %p3933_p5 = scmp.lt.u32.totalorder %s3925_s19, %s4993_s17 }
 0xfea   : > { %p3927_p1 = pnand %p3926_p13, %p5200_p9 }
 0xfeb   : > { %p3932_p10 = por %p3931_p6, %p3930_p2 }
 0xfec   : > { %p3928_p3 = pneg %p3927_p1 }
 0xfed   : > { %p3934_p0 = por %p3933_p5, %p3932_p10 }
 0xfef   : > { %p3935_p7 = pnand %p3934_p0, %p3928_p3 }
 0xff1   : > { %3938 = shalt.err (!%p3935_p7)
}
 0xff2   : > { %2953 = dma.vmem_to_hbm [thread:$0]  (%p5200_p9), %s4995_s5, 128, %s4993_s17, %s2223_s4  }
 0xff3 PF: > { %s5201_s18 = sld [smem:[#allocation57_spill]]  ;;  %s5202_s9 = sld [smem:[#allocation60_spill]] }
 0xff4   : > { %p5203_p11 = scmp.ne.s32.totalorder %s5166_s0, 0 }
 0xff9   : > { %s2248_s1 = sand.u32 1, %s5201_s18   ;;  %p5204_p8 = scmp.ge.s32.totalorder %s5202_s9, 2 }
 0xffa   : > { %s2249_s3 = scalar_lea.sflag [#allocation4], %s2248_s1 }
 0xffb   : > { %p3033_p4 = pnand %p5204_p8, %p5203_p11 }
 0xffd   : > { %4012 = dma.done.wait (!%p3033_p4), %s2249_s3, 128  }
 0xffe   : > { %4014 = vsyncadd (!%p3033_p4), %s2249_s3, 4294967168  ;;  %s5205_s29 = sld [smem:[#allocation58_spill]]  ;;  %s5206_s2 = sld [smem:[#allocation59_spill]] }
 0xfff   : > { %p52_p12 = scmp.ge.s32.totalorder %s4717_s30, 4   ;;  %s5207_s6 = smov %s4729_s11 }
0x1001   :  { %54 = sbr.rel (!%p52_p12) target bundleno = 43 (0x2b), region = 270 }
0x1008   :  { %2254 = vsyncpa [#allocation3], 1 }
0x1009   :  { %2256 = vsyncpa [#allocation3 + $0x1], 1 }
0x100a   :  { %2257 = vsyncpa [#allocation6], 1 }
0x100b   :  { %2259 = vsyncpa [#allocation6 + $0x1], 1 }
0x100c   :  { %2260 = vsyncpa [#allocation9], 1 }
0x100d   :  { %2261 = vsyncpa [#allocation12], 1 }
0x100e   :  { %2262 = vsyncpa [#allocation15], 1 }
0x100f   :  { %2263 = vsyncpa [#allocation18], 1 }
0x1010   :  { %2264 = vsyncpa [#allocation21], 1 }
0x1011   :  { %2265 = vsyncpa [#allocation24], 1 }
0x1012   :  { %2266 = vsyncpa [#allocation27], 1 }
0x1013   :  { %2267 = vsyncpa [#allocation30], 1 }
0x1014   :  { %2268 = vsyncpa [#allocation33], 1 }
0x1015   :  { %2269 = vsyncpa [#allocation36], 1 }
0x1016   :  { %2270 = vsyncpa [#allocation39], 1 }
0x1017   :  { %2271 = vsyncpa [#allocation4], 1 }
0x1018   :  { %2273 = vsyncpa [#allocation4 + $0x1], 1 }

</bundles_post_ra>
